<compile_context>
chip_gen: v6e
topology: v6e:2x2x1
jax: 0.10.0
libtpu: 0.0.40
codegen_flags: <defaults>
</compile_context>

<pallas_src>
import jax
import jax.numpy as jnp
from jax.experimental import pallas as pl
from jax.experimental.pallas import tpu as pltpu

# ---------------- configuration (small, consistent with the module) ----------
B           = 2
IN_CH       = 3
IMG         = 16
PATCH       = 8
EMBED       = 32
DEPTH       = 2
HEADS       = 4
MLP_RATIO   = 4.0
NUM_CLASSES = 10
FILM_IN     = 1

NUM_PATCHES = (IMG // PATCH) ** 2              # 4
TOKENS      = NUM_PATCHES + 1                  # cls token + patches = 5
PAD_TOKENS  = ((TOKENS + 7) // 8) * 8          # 8: sublane-aligned token count
HEAD_DIM    = EMBED // HEADS
MLP_HIDDEN  = int(EMBED * MLP_RATIO)
PATCH_DIM   = IN_CH * PATCH * PATCH            # 192

GATE_SCALE  = 10.0                             # args.gate_scale
GATE_CENTER = 30.0                             # args.gate_center
ACT_EPS     = 0.01                             # self.eps
LN_EPS      = 1e-6
MASK_BIAS   = -1000.0                          # masked_softmax_bias
ATTN_SCALE  = HEAD_DIM ** -0.5


# ============================ fused Pallas kernel ============================
def _fused_act_vit_kernel(
    tokp_ref, lam_ref,                                     # per-image inputs
    valid_ref, base_ref, patchw_ref,
    ln1w_ref, ln1b_ref, f1gw_ref, f1gb_ref, f1bw_ref, f1bb_ref,
    qw_ref, qb_ref, kw_ref, kb_ref, vw_ref, vb_ref,
    projw_ref, projb_ref,
    ln2w_ref, ln2b_ref, f2gw_ref, f2gb_ref, f2bw_ref, f2bb_ref,
    fc1w_ref, fc1b_ref, fc2w_ref, fc2b_ref,
    normw_ref, normb_ref, headw_ref, headb_ref,
    o_ref,
):
    f32 = jnp.float32
    lam = lam_ref[...]                         # (PAD_TOKENS, FILM_IN)
    valid = valid_ref[...]                     # (PAD_TOKENS, 1); 0 on pad rows

    def layer_norm(z, w, b):
        mu = jnp.mean(z, axis=-1, keepdims=True)
        d = z - mu
        var = jnp.mean(d * d, axis=-1, keepdims=True)
        return d * jax.lax.rsqrt(var + LN_EPS) * w + b

    def gelu_erf(z):
        # exact-erf GELU via Abramowitz-Stegun 7.1.26 (|err| < 1.5e-7);
        # uses only exp / mul / add so it lowers cleanly (EUP + VPU, free here)
        u = z * 0.7071067811865476
        au = jnp.abs(u)
        t = 1.0 / (1.0 + 0.3275911 * au)
        poly = t * (0.254829592 + t * (-0.284496736 + t * (1.421413741
                  + t * (-1.453152027 + t * 1.061405429))))
        erf_abs = 1.0 - poly * jnp.exp(-au * au)
        erf_u = jnp.where(u >= 0.0, erf_abs, -erf_abs)
        return 0.5 * z * (1.0 + erf_u)

    def film(z, gw, gb, bw, bb):
        # TODO(synk): FiLM_ViT_Layer source not provided; standard FiLM
        # (Linear(in -> 2*dim); y = x*gamma + beta, per-image) is assumed.
        if FILM_IN == 1:
            gamma = lam * gw + gb              # (P,1)*(1,C)+(1,C) -> (P,C)
            beta = lam * bw + bb
        else:
            gamma = jnp.dot(lam, gw, preferred_element_type=f32) + gb
            beta = jnp.dot(lam, bw, preferred_element_type=f32) + bb
        return z * gamma + beta

    ones_col = jnp.ones((PAD_TOKENS, 1), f32)
    # lane selector for channel 0 (halting score reads x[:, :, 0])
    ch0_sel = jnp.where(
        jax.lax.broadcasted_iota(jnp.int32, (1, EMBED), 1) == 0, 1.0, 0.0)

    # ---- patch embed + cls token + pos embed (patch bias folded into base) --
    x = jnp.dot(tokp_ref[...], patchw_ref[...],
                preferred_element_type=f32) + base_ref[...]       # (P, C)

    c_tok = jnp.zeros((PAD_TOKENS, 1), f32)
    R_tok = jnp.ones((PAD_TOKENS, 1), f32)
    active = valid                      # mask_token; pads start (& stay) halted
    output = jnp.zeros((PAD_TOKENS, EMBED), f32)
    out = x

    for d in range(DEPTH):
        out = out * active
        halt = 1.0 - active
        # broadcast the (P,1) halt column across keys via the MXU (avoids an
        # XLU transpose): key_bias[i, j] = MASK_BIAS * halt[j]
        key_bias = MASK_BIAS * jax.lax.dot_general(
            ones_col, halt, (((1,), (1,)), ((), ())),
            preferred_element_type=f32)                            # (P, P)

        # ---------------- attention branch ----------------
        x_res = out
        h = layer_norm(out * active, ln1w_ref[d], ln1b_ref[d]) * active
        h = film(h, f1gw_ref[d], f1gb_ref[d], f1bw_ref[d], f1bb_ref[d])

        attn = jnp.zeros((PAD_TOKENS, EMBED), f32) + projb_ref[d]  # proj bias
        for hh in range(HEADS):
            q = jnp.dot(h, qw_ref[d, hh], preferred_element_type=f32) + qb_ref[d, hh]
            k = jnp.dot(h, kw_ref[d, hh], preferred_element_type=f32) + kb_ref[d, hh]
            v = jnp.dot(h, vw_ref[d, hh], preferred_element_type=f32) + vb_ref[d, hh]
            s = jax.lax.dot_general(q, k, (((1,), (1,)), ((), ())),
                                    preferred_element_type=f32) * ATTN_SCALE
            s = s + key_bias
            s = s - jnp.max(s, axis=-1, keepdims=True)
            e = jnp.exp(s)
            p = e * pl.reciprocal(jnp.sum(e, axis=-1, keepdims=True), approx=True)
            av = jnp.dot(p, v, preferred_element_type=f32)          # (P, hd)
            # fold the output projection in per head -> lane-dense (P, C)
            attn = attn + jnp.dot(av, projw_ref[d, hh],
                                  preferred_element_type=f32)
        out = x_res + attn

        # ---------------- MLP branch ----------------
        x_res = out
        h = layer_norm(out * active, ln2w_ref[d], ln2b_ref[d]) * active
        h = film(h, f2gw_ref[d], f2gb_ref[d], f2bw_ref[d], f2bb_ref[d])
        h = jnp.dot(h, fc1w_ref[d], preferred_element_type=f32) + fc1b_ref[d]
        h = gelu_erf(h)
        h = jnp.dot(h, fc2w_ref[d], preferred_element_type=f32) + fc2b_ref[d]
        out = x_res + h

        # ---------------- halting score + ACT bookkeeping (act_mode == 4) ----
        if d == DEPTH - 1:
            h_tok = jnp.ones((PAD_TOKENS, 1), f32)
        else:
            ch0 = jnp.sum(out * ch0_sel, axis=-1, keepdims=True)    # x[:, :, 0]
            h_tok = 1.0 / (1.0 + jnp.exp(-(ch0 * GATE_SCALE - GATE_CENTER)))
        blk = out * active
        c_tok = c_tok + h_tok
        reached = jnp.where(c_tok > 1.0 - ACT_EPS, 1.0, 0.0) * active
        delta1 = blk * R_tok * reached
        not_reached = jnp.where(c_tok < 1.0 - ACT_EPS, 1.0, 0.0)
        R_tok = R_tok - not_reached * h_tok
        delta2 = blk * h_tok * not_reached
        active = not_reached * valid            # pad rows stay halted forever
        output = output + delta1 + delta2

    # ---------------- final LayerNorm + classification head ----------------
    xf = layer_norm(output, normw_ref[...], normb_ref[...])
    o_ref[...] = jnp.dot(xf, headw_ref[...],
                         preferred_element_type=f32) + headb_ref[...]


# ============================ wrapper / glue =================================
_W_NAMES = (
    'valid', 'tok_base', 'patch_w',
    'ln1_w', 'ln1_b', 'f1_gw', 'f1_gb', 'f1_bw', 'f1_bb',
    'q_w', 'q_b', 'k_w', 'k_b', 'v_w', 'v_b', 'proj_w', 'proj_b',
    'ln2_w', 'ln2_b', 'f2_gw', 'f2_gb', 'f2_bw', 'f2_bb',
    'fc1_w', 'fc1_b', 'fc2_w', 'fc2_b',
    'norm_w', 'norm_b', 'head_w', 'head_b',
)


def _zero_index_map(ndim):
    def imap(b):
        return (0,) * ndim
    return imap


def forward(x_img, lam, kp):
    """ACTVisionTransformer.forward, act_mode=4 (eval: dropout/droppath = id)."""
    Bn = x_img.shape[0]
    hp = IMG // PATCH

    # PatchEmbed glue: Conv2d(kernel=stride=PATCH) == patch extraction; the
    # matmul itself runs inside the fused kernel.  Patches are scattered into
    # the padded token layout (row 0 = cls, rows 1..4 = patches, 5..7 = pad).
    patches = (x_img.reshape(Bn, IN_CH, hp, PATCH, hp, PATCH)
               .transpose(0, 2, 4, 1, 3, 5)
               .reshape(Bn, NUM_PATCHES, PATCH_DIM))
    tok_patch = jnp.zeros((Bn, PAD_TOKENS, PATCH_DIM), jnp.float32)
    tok_patch = tok_patch.at[:, 1:1 + NUM_PATCHES, :].set(patches)
    tok_patch = tok_patch.reshape(Bn * PAD_TOKENS, PATCH_DIM)
    lam_rows = jnp.repeat(lam.astype(jnp.float32), PAD_TOKENS, axis=0)

    weights = tuple(kp[name] for name in _W_NAMES)
    in_specs = (
        [pl.BlockSpec((PAD_TOKENS, PATCH_DIM), lambda b: (b, 0)),
         pl.BlockSpec((PAD_TOKENS, FILM_IN), lambda b: (b, 0))]
        + [pl.BlockSpec(tuple(w.shape), _zero_index_map(w.ndim)) for w in weights]
    )

    logits_all = pl.pallas_call(
        _fused_act_vit_kernel,
        out_shape=jax.ShapeDtypeStruct((Bn * PAD_TOKENS, NUM_CLASSES), jnp.float32),
        grid=(Bn,),
        in_specs=in_specs,
        out_specs=pl.BlockSpec((PAD_TOKENS, NUM_CLASSES), lambda b: (b, 0)),
        compiler_params=pltpu.CompilerParams(
            dimension_semantics=("parallel",)),  # v7x: one image per TensorCore
    )(tok_patch, lam_rows, *weights)

    # cls-token logits
    return logits_all.reshape(Bn, PAD_TOKENS, NUM_CLASSES)[:, 0, :]


# ============================ parameters =====================================
def init_params(key):
    """Torch-layout parameters (same parameterization as the nn.Module)."""
    keys = iter(jax.random.split(key, 64))

    def nrm(shape, std=0.02):
        return jax.random.normal(next(keys), shape, dtype=jnp.float32) * std

    film_bias = jnp.concatenate([jnp.ones((EMBED,), jnp.float32),
                                 jnp.zeros((EMBED,), jnp.float32)])  # gamma~1, beta~0

    params = {
        'patch_w': nrm((PATCH_DIM, EMBED)),
        'patch_b': jnp.zeros((EMBED,), jnp.float32),
        'cls_token': nrm((1, 1, EMBED)),
        'pos_embed': nrm((1, TOKENS, EMBED)),
        'norm_w': jnp.ones((EMBED,), jnp.float32),
        'norm_b': jnp.zeros((EMBED,), jnp.float32),
        'head_w': nrm((EMBED, NUM_CLASSES)),
        'head_b': jnp.zeros((NUM_CLASSES,), jnp.float32),
        'blocks': [],
    }
    for _ in range(DEPTH):
        params['blocks'].append({
            'ln1_w': jnp.ones((EMBED,), jnp.float32),
            'ln1_b': jnp.zeros((EMBED,), jnp.float32),
            'film1_w': nrm((FILM_IN, 2 * EMBED)),
            'film1_b': film_bias,
            'qkv_w': nrm((EMBED, 3 * EMBED)),
            'qkv_b': jnp.zeros((3 * EMBED,), jnp.float32),
            'proj_w': nrm((EMBED, EMBED)),
            'proj_b': jnp.zeros((EMBED,), jnp.float32),
            'ln2_w': jnp.ones((EMBED,), jnp.float32),
            'ln2_b': jnp.zeros((EMBED,), jnp.float32),
            'film2_w': nrm((FILM_IN, 2 * EMBED)),
            'film2_b': film_bias,
            'fc1_w': nrm((EMBED, MLP_HIDDEN)),
            'fc1_b': jnp.zeros((MLP_HIDDEN,), jnp.float32),
            'fc2_w': nrm((MLP_HIDDEN, EMBED)),
            'fc2_b': jnp.zeros((EMBED,), jnp.float32),
        })
    return params


def pack_params(p):
    """Convert torch-layout params to the stacked / per-head VMEM layout."""
    f32 = jnp.float32
    D, C, H, hd, HID = DEPTH, EMBED, HEADS, HEAD_DIM, MLP_HIDDEN

    def stk(name):
        return jnp.stack([jnp.asarray(b[name], f32) for b in p['blocks']])

    ln1_w = stk('ln1_w').reshape(D, 1, C)
    ln1_b = stk('ln1_b').reshape(D, 1, C)
    ln2_w = stk('ln2_w').reshape(D, 1, C)
    ln2_b = stk('ln2_b').reshape(D, 1, C)

    film1_w, film1_b = stk('film1_w'), stk('film1_b')   # (D,FILM_IN,2C), (D,2C)
    film2_w, film2_b = stk('film2_w'), stk('film2_b')
    f1_gw, f1_bw = film1_w[:, :, :C], film1_w[:, :, C:]
    f1_gb, f1_bb = film1_b[:, :C].reshape(D, 1, C), film1_b[:, C:].reshape(D, 1, C)
    f2_gw, f2_bw = film2_w[:, :, :C], film2_w[:, :, C:]
    f2_gb, f2_bb = film2_b[:, :C].reshape(D, 1, C), film2_b[:, C:].reshape(D, 1, C)

    # per-head slabs indexed on leading dims inside the kernel
    qkv_w = stk('qkv_w').reshape(D, C, 3, H, hd).transpose(0, 2, 3, 1, 4)  # (D,3,H,C,hd)
    qkv_b = stk('qkv_b').reshape(D, 3, H, 1, hd)
    proj_w = stk('proj_w').reshape(D, H, hd, C)
    proj_b = stk('proj_b').reshape(D, 1, C)

    fc1_w = stk('fc1_w')
    fc1_b = stk('fc1_b').reshape(D, 1, HID)
    fc2_w = stk('fc2_w')
    fc2_b = stk('fc2_b').reshape(D, 1, C)

    # token base: cls+pos on row 0, pos+patch_bias on patch rows, 0 on pad rows
    pos = jnp.asarray(p['pos_embed'], f32)[0]            # (TOKENS, C)
    base = jnp.zeros((PAD_TOKENS, C), f32)
    base = base.at[0].set(jnp.asarray(p['cls_token'], f32).reshape(C) + pos[0])
    base = base.at[1:TOKENS].set(pos[1:] + jnp.asarray(p['patch_b'], f32)[None, :])
    valid = (jnp.arange(PAD_TOKENS) < TOKENS).astype(f32).reshape(PAD_TOKENS, 1)

    return {
        'valid': valid,
        'tok_base': base,
        'patch_w': jnp.asarray(p['patch_w'], f32),
        'ln1_w': ln1_w, 'ln1_b': ln1_b,
        'f1_gw': f1_gw, 'f1_gb': f1_gb, 'f1_bw': f1_bw, 'f1_bb': f1_bb,
        'q_w': qkv_w[:, 0], 'q_b': qkv_b[:, 0],
        'k_w': qkv_w[:, 1], 'k_b': qkv_b[:, 1],
        'v_w': qkv_w[:, 2], 'v_b': qkv_b[:, 2],
        'proj_w': proj_w, 'proj_b': proj_b,
        'ln2_w': ln2_w, 'ln2_b': ln2_b,
        'f2_gw': f2_gw, 'f2_gb': f2_gb, 'f2_bw': f2_bw, 'f2_bb': f2_bb,
        'fc1_w': fc1_w, 'fc1_b': fc1_b, 'fc2_w': fc2_w, 'fc2_b': fc2_b,
        'norm_w': jnp.asarray(p['norm_w'], f32).reshape(1, C),
        'norm_b': jnp.asarray(p['norm_b'], f32).reshape(1, C),
        'head_w': jnp.asarray(p['head_w'], f32),
        'head_b': jnp.asarray(p['head_b'], f32).reshape(1, NUM_CLASSES),
    }


# ============================ main ==========================================
if __name__ == "__main__":
    key = jax.random.PRNGKey(0)
    kparam, kx, kl = jax.random.split(key, 3)
    params = init_params(kparam)
    kp = pack_params(params)

    x = jax.random.normal(kx, (B, IN_CH, IMG, IMG), dtype=jnp.float32)
    lam = jax.random.uniform(kl, (B, FILM_IN), dtype=jnp.float32)

    fwd = jax.jit(forward)
    logits = fwd(x, lam, kp)
    jax.block_until_ready(logits)
    assert logits.shape == (B, NUM_CLASSES)
    assert bool(jnp.all(jnp.isfinite(logits)))
    print("KERNEL_OK")
</pallas_src>

<mosaic_0001>
module attributes {stable_mosaic.version = 11 : i64} {
  func.func @_fused_act_vit_kernel(%arg0: i32, %arg1: memref<8x192xf32, #tpu.memory_space<vmem>>, %arg2: memref<8x1xf32, #tpu.memory_space<vmem>>, %arg3: memref<8x1xf32, #tpu.memory_space<vmem>>, %arg4: memref<8x32xf32, #tpu.memory_space<vmem>>, %arg5: memref<192x32xf32, #tpu.memory_space<vmem>>, %arg6: memref<2x1x32xf32, #tpu.memory_space<vmem>>, %arg7: memref<2x1x32xf32, #tpu.memory_space<vmem>>, %arg8: memref<2x1x32xf32, #tpu.memory_space<vmem>>, %arg9: memref<2x1x32xf32, #tpu.memory_space<vmem>>, %arg10: memref<2x1x32xf32, #tpu.memory_space<vmem>>, %arg11: memref<2x1x32xf32, #tpu.memory_space<vmem>>, %arg12: memref<2x4x32x8xf32, #tpu.memory_space<vmem>>, %arg13: memref<2x4x1x8xf32, #tpu.memory_space<vmem>>, %arg14: memref<2x4x32x8xf32, #tpu.memory_space<vmem>>, %arg15: memref<2x4x1x8xf32, #tpu.memory_space<vmem>>, %arg16: memref<2x4x32x8xf32, #tpu.memory_space<vmem>>, %arg17: memref<2x4x1x8xf32, #tpu.memory_space<vmem>>, %arg18: memref<2x4x8x32xf32, #tpu.memory_space<vmem>>, %arg19: memref<2x1x32xf32, #tpu.memory_space<vmem>>, %arg20: memref<2x1x32xf32, #tpu.memory_space<vmem>>, %arg21: memref<2x1x32xf32, #tpu.memory_space<vmem>>, %arg22: memref<2x1x32xf32, #tpu.memory_space<vmem>>, %arg23: memref<2x1x32xf32, #tpu.memory_space<vmem>>, %arg24: memref<2x1x32xf32, #tpu.memory_space<vmem>>, %arg25: memref<2x1x32xf32, #tpu.memory_space<vmem>>, %arg26: memref<2x32x128xf32, #tpu.memory_space<vmem>>, %arg27: memref<2x1x128xf32, #tpu.memory_space<vmem>>, %arg28: memref<2x128x32xf32, #tpu.memory_space<vmem>>, %arg29: memref<2x1x32xf32, #tpu.memory_space<vmem>>, %arg30: memref<1x32xf32, #tpu.memory_space<vmem>>, %arg31: memref<1x32xf32, #tpu.memory_space<vmem>>, %arg32: memref<32x10xf32, #tpu.memory_space<vmem>>, %arg33: memref<1x10xf32, #tpu.memory_space<vmem>>, %arg34: memref<8x10xf32, #tpu.memory_space<vmem>>) attributes {dimension_semantics = [#tpu.dimension_semantics<parallel>], iteration_bounds = array<i64: 2>, scalar_prefetch = 0 : i64, scratch_operands = 0 : i64, tpu.core_type = #tpu.core_type<tc>, window_params = [{transform_indices = @transform_0, window_bounds = array<i64: 8, 192>}, {transform_indices = @transform_1, window_bounds = array<i64: 8, 1>}, {pipeline_mode = #tpu.pipeline_mode<synchronous>, transform_indices = @transform_2, window_bounds = array<i64: 8, 1>}, {pipeline_mode = #tpu.pipeline_mode<synchronous>, transform_indices = @transform_3, window_bounds = array<i64: 8, 32>}, {pipeline_mode = #tpu.pipeline_mode<synchronous>, transform_indices = @transform_4, window_bounds = array<i64: 192, 32>}, {pipeline_mode = #tpu.pipeline_mode<synchronous>, transform_indices = @transform_5, window_bounds = array<i64: 2, 1, 32>}, {pipeline_mode = #tpu.pipeline_mode<synchronous>, transform_indices = @transform_6, window_bounds = array<i64: 2, 1, 32>}, {pipeline_mode = #tpu.pipeline_mode<synchronous>, transform_indices = @transform_7, window_bounds = array<i64: 2, 1, 32>}, {pipeline_mode = #tpu.pipeline_mode<synchronous>, transform_indices = @transform_8, window_bounds = array<i64: 2, 1, 32>}, {pipeline_mode = #tpu.pipeline_mode<synchronous>, transform_indices = @transform_9, window_bounds = array<i64: 2, 1, 32>}, {pipeline_mode = #tpu.pipeline_mode<synchronous>, transform_indices = @transform_10, window_bounds = array<i64: 2, 1, 32>}, {pipeline_mode = #tpu.pipeline_mode<synchronous>, transform_indices = @transform_11, window_bounds = array<i64: 2, 4, 32, 8>}, {pipeline_mode = #tpu.pipeline_mode<synchronous>, transform_indices = @transform_12, window_bounds = array<i64: 2, 4, 1, 8>}, {pipeline_mode = #tpu.pipeline_mode<synchronous>, transform_indices = @transform_13, window_bounds = array<i64: 2, 4, 32, 8>}, {pipeline_mode = #tpu.pipeline_mode<synchronous>, transform_indices = @transform_14, window_bounds = array<i64: 2, 4, 1, 8>}, {pipeline_mode = #tpu.pipeline_mode<synchronous>, transform_indices = @transform_15, window_bounds = array<i64: 2, 4, 32, 8>}, {pipeline_mode = #tpu.pipeline_mode<synchronous>, transform_indices = @transform_16, window_bounds = array<i64: 2, 4, 1, 8>}, {pipeline_mode = #tpu.pipeline_mode<synchronous>, transform_indices = @transform_17, window_bounds = array<i64: 2, 4, 8, 32>}, {pipeline_mode = #tpu.pipeline_mode<synchronous>, transform_indices = @transform_18, window_bounds = array<i64: 2, 1, 32>}, {pipeline_mode = #tpu.pipeline_mode<synchronous>, transform_indices = @transform_19, window_bounds = array<i64: 2, 1, 32>}, {pipeline_mode = #tpu.pipeline_mode<synchronous>, transform_indices = @transform_20, window_bounds = array<i64: 2, 1, 32>}, {pipeline_mode = #tpu.pipeline_mode<synchronous>, transform_indices = @transform_21, window_bounds = array<i64: 2, 1, 32>}, {pipeline_mode = #tpu.pipeline_mode<synchronous>, transform_indices = @transform_22, window_bounds = array<i64: 2, 1, 32>}, {pipeline_mode = #tpu.pipeline_mode<synchronous>, transform_indices = @transform_23, window_bounds = array<i64: 2, 1, 32>}, {pipeline_mode = #tpu.pipeline_mode<synchronous>, transform_indices = @transform_24, window_bounds = array<i64: 2, 1, 32>}, {pipeline_mode = #tpu.pipeline_mode<synchronous>, transform_indices = @transform_25, window_bounds = array<i64: 2, 32, 128>}, {pipeline_mode = #tpu.pipeline_mode<synchronous>, transform_indices = @transform_26, window_bounds = array<i64: 2, 1, 128>}, {pipeline_mode = #tpu.pipeline_mode<synchronous>, transform_indices = @transform_27, window_bounds = array<i64: 2, 128, 32>}, {pipeline_mode = #tpu.pipeline_mode<synchronous>, transform_indices = @transform_28, window_bounds = array<i64: 2, 1, 32>}, {pipeline_mode = #tpu.pipeline_mode<synchronous>, transform_indices = @transform_29, window_bounds = array<i64: 1, 32>}, {pipeline_mode = #tpu.pipeline_mode<synchronous>, transform_indices = @transform_30, window_bounds = array<i64: 1, 32>}, {pipeline_mode = #tpu.pipeline_mode<synchronous>, transform_indices = @transform_31, window_bounds = array<i64: 32, 10>}, {pipeline_mode = #tpu.pipeline_mode<synchronous>, transform_indices = @transform_32, window_bounds = array<i64: 1, 10>}, {transform_indices = @transform_33, window_bounds = array<i64: 8, 10>}]} {
    %c0 = arith.constant 0 : index
    %c0_0 = arith.constant 0 : index
    %0 = vector.load %arg2[%c0, %c0_0] : memref<8x1xf32, #tpu.memory_space<vmem>>, vector<8x1xf32>
    %c0_1 = arith.constant 0 : index
    %c0_2 = arith.constant 0 : index
    %1 = vector.load %arg3[%c0_1, %c0_2] : memref<8x1xf32, #tpu.memory_space<vmem>>, vector<8x1xf32>
    %cst = arith.constant 1.000000e+00 : f32
    %2 = vector.broadcast %cst : f32 to vector<8x1xf32>
    %3 = tpu.iota {dimensions = array<i32: 1>} : vector<1x32xi32>
    %c0_i32 = arith.constant 0 : i32
    %4 = vector.broadcast %c0_i32 : i32 to vector<1x32xi32>
    %5 = arith.cmpi eq, %3, %4 : vector<1x32xi32>
    %cst_3 = arith.constant 1.000000e+00 : f32
    %cst_4 = arith.constant 0.000000e+00 : f32
    %6 = vector.broadcast %cst_3 : f32 to vector<1x32xf32>
    %7 = vector.broadcast %cst_4 : f32 to vector<1x32xf32>
    %8 = arith.select %5, %6, %7 : vector<1x32xi1>, vector<1x32xf32>
    %c0_5 = arith.constant 0 : index
    %c0_6 = arith.constant 0 : index
    %9 = vector.load %arg1[%c0_5, %c0_6] : memref<8x192xf32, #tpu.memory_space<vmem>>, vector<8x192xf32>
    %c0_7 = arith.constant 0 : index
    %c0_8 = arith.constant 0 : index
    %10 = vector.load %arg5[%c0_7, %c0_8] : memref<192x32xf32, #tpu.memory_space<vmem>>, vector<192x32xf32>
    %cst_9 = arith.constant dense<0.000000e+00> : vector<8x32xf32>
    %11 = tpu.matmul %9, %10, %cst_9 {dimension_numbers = #tpu.dot_dimension_numbers<[1], [0], [0], [1], [0, 0, 1, 1], [], []>} : vector<8x192xf32>, vector<192x32xf32>, vector<8x32xf32> -> vector<8x32xf32>
    %c0_10 = arith.constant 0 : index
    %c0_11 = arith.constant 0 : index
    %12 = vector.load %arg4[%c0_10, %c0_11] : memref<8x32xf32, #tpu.memory_space<vmem>>, vector<8x32xf32>
    %13 = arith.addf %11, %12 : vector<8x32xf32>
    %cst_12 = arith.constant 0.000000e+00 : f32
    %14 = vector.broadcast %cst_12 : f32 to vector<8x1xf32>
    %cst_13 = arith.constant 1.000000e+00 : f32
    %15 = vector.broadcast %cst_13 : f32 to vector<8x1xf32>
    %cst_14 = arith.constant 0.000000e+00 : f32
    %16 = vector.broadcast %cst_14 : f32 to vector<8x32xf32>
    %17 = vector.broadcast %1 : vector<8x1xf32> to vector<8x32xf32>
    %18 = arith.mulf %13, %17 : vector<8x32xf32>
    %cst_15 = arith.constant 1.000000e+00 : f32
    %19 = vector.broadcast %cst_15 : f32 to vector<8x1xf32>
    %20 = arith.subf %19, %1 : vector<8x1xf32>
    %cst_16 = arith.constant dense<0.000000e+00> : vector<8x8xf32>
    %21 = tpu.matmul %2, %20, %cst_16 {dimension_numbers = #tpu.dot_dimension_numbers<[1], [1], [0], [0], [0, 0, 1, 0], [], []>} : vector<8x1xf32>, vector<8x1xf32>, vector<8x8xf32> -> vector<8x8xf32>
    %cst_17 = arith.constant -1.000000e+03 : f32
    %22 = vector.broadcast %cst_17 : f32 to vector<8x8xf32>
    %23 = arith.mulf %22, %21 : vector<8x8xf32>
    %24 = vector.broadcast %1 : vector<8x1xf32> to vector<8x32xf32>
    %25 = arith.mulf %18, %24 : vector<8x32xf32>
    %c0_18 = arith.constant 0 : index
    %c0_19 = arith.constant 0 : index
    %c0_20 = arith.constant 0 : index
    %26 = vector.load %arg6[%c0_18, %c0_19, %c0_20] : memref<2x1x32xf32, #tpu.memory_space<vmem>>, vector<1x1x32xf32>
    %27 = vector.shape_cast %26 : vector<1x1x32xf32> to vector<1x32xf32>
    %c0_21 = arith.constant 0 : index
    %c0_22 = arith.constant 0 : index
    %c0_23 = arith.constant 0 : index
    %28 = vector.load %arg7[%c0_21, %c0_22, %c0_23] : memref<2x1x32xf32, #tpu.memory_space<vmem>>, vector<1x1x32xf32>
    %29 = vector.shape_cast %28 : vector<1x1x32xf32> to vector<1x32xf32>
    %cst_24 = arith.constant dense<0.000000e+00> : vector<8xf32>
    %30 = vector.multi_reduction <add>, %25, %cst_24 [1] : vector<8x32xf32> to vector<8xf32>
    %31 = vector.shape_cast %30 : vector<8xf32> to vector<8x1xf32>
    %cst_25 = arith.constant 3.200000e+01 : f32
    %32 = vector.broadcast %cst_25 : f32 to vector<8x1xf32>
    %33 = arith.divf %31, %32 : vector<8x1xf32>
    %34 = vector.broadcast %33 : vector<8x1xf32> to vector<8x32xf32>
    %35 = arith.subf %25, %34 : vector<8x32xf32>
    %36 = arith.mulf %35, %35 : vector<8x32xf32>
    %cst_26 = arith.constant dense<0.000000e+00> : vector<8xf32>
    %37 = vector.multi_reduction <add>, %36, %cst_26 [1] : vector<8x32xf32> to vector<8xf32>
    %38 = vector.shape_cast %37 : vector<8xf32> to vector<8x1xf32>
    %cst_27 = arith.constant 3.200000e+01 : f32
    %39 = vector.broadcast %cst_27 : f32 to vector<8x1xf32>
    %40 = arith.divf %38, %39 : vector<8x1xf32>
    %cst_28 = arith.constant 9.99999997E-7 : f32
    %41 = vector.broadcast %cst_28 : f32 to vector<8x1xf32>
    %42 = arith.addf %40, %41 : vector<8x1xf32>
    %43 = math.rsqrt %42 : vector<8x1xf32>
    %44 = vector.broadcast %43 : vector<8x1xf32> to vector<8x32xf32>
    %45 = arith.mulf %35, %44 : vector<8x32xf32>
    %46 = vector.broadcast %27 : vector<1x32xf32> to vector<8x32xf32>
    %47 = arith.mulf %45, %46 : vector<8x32xf32>
    %48 = vector.broadcast %29 : vector<1x32xf32> to vector<8x32xf32>
    %49 = arith.addf %47, %48 : vector<8x32xf32>
    %50 = vector.broadcast %1 : vector<8x1xf32> to vector<8x32xf32>
    %51 = arith.mulf %49, %50 : vector<8x32xf32>
    %c0_29 = arith.constant 0 : index
    %c0_30 = arith.constant 0 : index
    %c0_31 = arith.constant 0 : index
    %52 = vector.load %arg8[%c0_29, %c0_30, %c0_31] : memref<2x1x32xf32, #tpu.memory_space<vmem>>, vector<1x1x32xf32>
    %53 = vector.shape_cast %52 : vector<1x1x32xf32> to vector<1x32xf32>
    %c0_32 = arith.constant 0 : index
    %c0_33 = arith.constant 0 : index
    %c0_34 = arith.constant 0 : index
    %54 = vector.load %arg9[%c0_32, %c0_33, %c0_34] : memref<2x1x32xf32, #tpu.memory_space<vmem>>, vector<1x1x32xf32>
    %55 = vector.shape_cast %54 : vector<1x1x32xf32> to vector<1x32xf32>
    %c0_35 = arith.constant 0 : index
    %c0_36 = arith.constant 0 : index
    %c0_37 = arith.constant 0 : index
    %56 = vector.load %arg10[%c0_35, %c0_36, %c0_37] : memref<2x1x32xf32, #tpu.memory_space<vmem>>, vector<1x1x32xf32>
    %57 = vector.shape_cast %56 : vector<1x1x32xf32> to vector<1x32xf32>
    %c0_38 = arith.constant 0 : index
    %c0_39 = arith.constant 0 : index
    %c0_40 = arith.constant 0 : index
    %58 = vector.load %arg11[%c0_38, %c0_39, %c0_40] : memref<2x1x32xf32, #tpu.memory_space<vmem>>, vector<1x1x32xf32>
    %59 = vector.shape_cast %58 : vector<1x1x32xf32> to vector<1x32xf32>
    %60 = vector.broadcast %0 : vector<8x1xf32> to vector<8x32xf32>
    %61 = vector.broadcast %53 : vector<1x32xf32> to vector<8x32xf32>
    %62 = arith.mulf %60, %61 : vector<8x32xf32>
    %63 = vector.broadcast %55 : vector<1x32xf32> to vector<8x32xf32>
    %64 = arith.addf %62, %63 : vector<8x32xf32>
    %65 = vector.broadcast %0 : vector<8x1xf32> to vector<8x32xf32>
    %66 = vector.broadcast %57 : vector<1x32xf32> to vector<8x32xf32>
    %67 = arith.mulf %65, %66 : vector<8x32xf32>
    %68 = vector.broadcast %59 : vector<1x32xf32> to vector<8x32xf32>
    %69 = arith.addf %67, %68 : vector<8x32xf32>
    %70 = arith.mulf %51, %64 : vector<8x32xf32>
    %71 = arith.addf %70, %69 : vector<8x32xf32>
    %cst_41 = arith.constant 0.000000e+00 : f32
    %72 = vector.broadcast %cst_41 : f32 to vector<8x32xf32>
    %c0_42 = arith.constant 0 : index
    %c0_43 = arith.constant 0 : index
    %c0_44 = arith.constant 0 : index
    %73 = vector.load %arg19[%c0_42, %c0_43, %c0_44] : memref<2x1x32xf32, #tpu.memory_space<vmem>>, vector<1x1x32xf32>
    %74 = vector.shape_cast %73 : vector<1x1x32xf32> to vector<1x32xf32>
    %75 = vector.broadcast %74 : vector<1x32xf32> to vector<8x32xf32>
    %76 = arith.addf %72, %75 : vector<8x32xf32>
    %c0_45 = arith.constant 0 : index
    %c0_46 = arith.constant 0 : index
    %c0_47 = arith.constant 0 : index
    %c0_48 = arith.constant 0 : index
    %77 = vector.load %arg12[%c0_45, %c0_46, %c0_47, %c0_48] : memref<2x4x32x8xf32, #tpu.memory_space<vmem>>, vector<1x1x32x8xf32>
    %78 = vector.shape_cast %77 : vector<1x1x32x8xf32> to vector<32x8xf32>
    %cst_49 = arith.constant dense<0.000000e+00> : vector<8x8xf32>
    %79 = tpu.matmul %71, %78, %cst_49 {dimension_numbers = #tpu.dot_dimension_numbers<[1], [0], [0], [1], [0, 0, 1, 1], [], []>} : vector<8x32xf32>, vector<32x8xf32>, vector<8x8xf32> -> vector<8x8xf32>
    %c0_50 = arith.constant 0 : index
    %c0_51 = arith.constant 0 : index
    %c0_52 = arith.constant 0 : index
    %c0_53 = arith.constant 0 : index
    %80 = vector.load %arg13[%c0_50, %c0_51, %c0_52, %c0_53] : memref<2x4x1x8xf32, #tpu.memory_space<vmem>>, vector<1x1x1x8xf32>
    %81 = vector.shape_cast %80 : vector<1x1x1x8xf32> to vector<1x8xf32>
    %82 = vector.broadcast %81 : vector<1x8xf32> to vector<8x8xf32>
    %83 = arith.addf %79, %82 : vector<8x8xf32>
    %c0_54 = arith.constant 0 : index
    %c0_55 = arith.constant 0 : index
    %c0_56 = arith.constant 0 : index
    %c0_57 = arith.constant 0 : index
    %84 = vector.load %arg14[%c0_54, %c0_55, %c0_56, %c0_57] : memref<2x4x32x8xf32, #tpu.memory_space<vmem>>, vector<1x1x32x8xf32>
    %85 = vector.shape_cast %84 : vector<1x1x32x8xf32> to vector<32x8xf32>
    %cst_58 = arith.constant dense<0.000000e+00> : vector<8x8xf32>
    %86 = tpu.matmul %71, %85, %cst_58 {dimension_numbers = #tpu.dot_dimension_numbers<[1], [0], [0], [1], [0, 0, 1, 1], [], []>} : vector<8x32xf32>, vector<32x8xf32>, vector<8x8xf32> -> vector<8x8xf32>
    %c0_59 = arith.constant 0 : index
    %c0_60 = arith.constant 0 : index
    %c0_61 = arith.constant 0 : index
    %c0_62 = arith.constant 0 : index
    %87 = vector.load %arg15[%c0_59, %c0_60, %c0_61, %c0_62] : memref<2x4x1x8xf32, #tpu.memory_space<vmem>>, vector<1x1x1x8xf32>
    %88 = vector.shape_cast %87 : vector<1x1x1x8xf32> to vector<1x8xf32>
    %89 = vector.broadcast %88 : vector<1x8xf32> to vector<8x8xf32>
    %90 = arith.addf %86, %89 : vector<8x8xf32>
    %c0_63 = arith.constant 0 : index
    %c0_64 = arith.constant 0 : index
    %c0_65 = arith.constant 0 : index
    %c0_66 = arith.constant 0 : index
    %91 = vector.load %arg16[%c0_63, %c0_64, %c0_65, %c0_66] : memref<2x4x32x8xf32, #tpu.memory_space<vmem>>, vector<1x1x32x8xf32>
    %92 = vector.shape_cast %91 : vector<1x1x32x8xf32> to vector<32x8xf32>
    %cst_67 = arith.constant dense<0.000000e+00> : vector<8x8xf32>
    %93 = tpu.matmul %71, %92, %cst_67 {dimension_numbers = #tpu.dot_dimension_numbers<[1], [0], [0], [1], [0, 0, 1, 1], [], []>} : vector<8x32xf32>, vector<32x8xf32>, vector<8x8xf32> -> vector<8x8xf32>
    %c0_68 = arith.constant 0 : index
    %c0_69 = arith.constant 0 : index
    %c0_70 = arith.constant 0 : index
    %c0_71 = arith.constant 0 : index
    %94 = vector.load %arg17[%c0_68, %c0_69, %c0_70, %c0_71] : memref<2x4x1x8xf32, #tpu.memory_space<vmem>>, vector<1x1x1x8xf32>
    %95 = vector.shape_cast %94 : vector<1x1x1x8xf32> to vector<1x8xf32>
    %96 = vector.broadcast %95 : vector<1x8xf32> to vector<8x8xf32>
    %97 = arith.addf %93, %96 : vector<8x8xf32>
    %cst_72 = arith.constant dense<0.000000e+00> : vector<8x8xf32>
    %98 = tpu.matmul %83, %90, %cst_72 {dimension_numbers = #tpu.dot_dimension_numbers<[1], [1], [0], [0], [0, 0, 1, 0], [], []>} : vector<8x8xf32>, vector<8x8xf32>, vector<8x8xf32> -> vector<8x8xf32>
    %cst_73 = arith.constant 0.353553385 : f32
    %99 = vector.broadcast %cst_73 : f32 to vector<8x8xf32>
    %100 = arith.mulf %98, %99 : vector<8x8xf32>
    %101 = arith.addf %100, %23 : vector<8x8xf32>
    %cst_74 = arith.constant dense<0xFF800000> : vector<8xf32>
    %102 = vector.multi_reduction <maximumf>, %101, %cst_74 [1] : vector<8x8xf32> to vector<8xf32>
    %103 = vector.shape_cast %102 : vector<8xf32> to vector<8x1xf32>
    %104 = vector.broadcast %103 : vector<8x1xf32> to vector<8x8xf32>
    %105 = arith.subf %101, %104 : vector<8x8xf32>
    %106 = math.exp %105 : vector<8x8xf32>
    %cst_75 = arith.constant dense<0.000000e+00> : vector<8xf32>
    %107 = vector.multi_reduction <add>, %106, %cst_75 [1] : vector<8x8xf32> to vector<8xf32>
    %108 = vector.shape_cast %107 : vector<8xf32> to vector<8x1xf32>
    %109 = tpu.reciprocal %108 {approx = true} : vector<8x1xf32> -> vector<8x1xf32>
    %110 = vector.broadcast %109 : vector<8x1xf32> to vector<8x8xf32>
    %111 = arith.mulf %106, %110 : vector<8x8xf32>
    %cst_76 = arith.constant dense<0.000000e+00> : vector<8x8xf32>
    %112 = tpu.matmul %111, %97, %cst_76 {dimension_numbers = #tpu.dot_dimension_numbers<[1], [0], [0], [1], [0, 0, 1, 1], [], []>} : vector<8x8xf32>, vector<8x8xf32>, vector<8x8xf32> -> vector<8x8xf32>
    %c0_77 = arith.constant 0 : index
    %c0_78 = arith.constant 0 : index
    %c0_79 = arith.constant 0 : index
    %c0_80 = arith.constant 0 : index
    %113 = vector.load %arg18[%c0_77, %c0_78, %c0_79, %c0_80] : memref<2x4x8x32xf32, #tpu.memory_space<vmem>>, vector<1x1x8x32xf32>
    %114 = vector.shape_cast %113 : vector<1x1x8x32xf32> to vector<8x32xf32>
    %cst_81 = arith.constant dense<0.000000e+00> : vector<8x32xf32>
    %115 = tpu.matmul %112, %114, %cst_81 {dimension_numbers = #tpu.dot_dimension_numbers<[1], [0], [0], [1], [0, 0, 1, 1], [], []>} : vector<8x8xf32>, vector<8x32xf32>, vector<8x32xf32> -> vector<8x32xf32>
    %116 = arith.addf %76, %115 : vector<8x32xf32>
    %c0_82 = arith.constant 0 : index
    %c1 = arith.constant 1 : index
    %c0_83 = arith.constant 0 : index
    %c0_84 = arith.constant 0 : index
    %117 = vector.load %arg12[%c0_82, %c1, %c0_83, %c0_84] : memref<2x4x32x8xf32, #tpu.memory_space<vmem>>, vector<1x1x32x8xf32>
    %118 = vector.shape_cast %117 : vector<1x1x32x8xf32> to vector<32x8xf32>
    %cst_85 = arith.constant dense<0.000000e+00> : vector<8x8xf32>
    %119 = tpu.matmul %71, %118, %cst_85 {dimension_numbers = #tpu.dot_dimension_numbers<[1], [0], [0], [1], [0, 0, 1, 1], [], []>} : vector<8x32xf32>, vector<32x8xf32>, vector<8x8xf32> -> vector<8x8xf32>
    %c0_86 = arith.constant 0 : index
    %c1_87 = arith.constant 1 : index
    %c0_88 = arith.constant 0 : index
    %c0_89 = arith.constant 0 : index
    %120 = vector.load %arg13[%c0_86, %c1_87, %c0_88, %c0_89] : memref<2x4x1x8xf32, #tpu.memory_space<vmem>>, vector<1x1x1x8xf32>
    %121 = vector.shape_cast %120 : vector<1x1x1x8xf32> to vector<1x8xf32>
    %122 = vector.broadcast %121 : vector<1x8xf32> to vector<8x8xf32>
    %123 = arith.addf %119, %122 : vector<8x8xf32>
    %c0_90 = arith.constant 0 : index
    %c1_91 = arith.constant 1 : index
    %c0_92 = arith.constant 0 : index
    %c0_93 = arith.constant 0 : index
    %124 = vector.load %arg14[%c0_90, %c1_91, %c0_92, %c0_93] : memref<2x4x32x8xf32, #tpu.memory_space<vmem>>, vector<1x1x32x8xf32>
    %125 = vector.shape_cast %124 : vector<1x1x32x8xf32> to vector<32x8xf32>
    %cst_94 = arith.constant dense<0.000000e+00> : vector<8x8xf32>
    %126 = tpu.matmul %71, %125, %cst_94 {dimension_numbers = #tpu.dot_dimension_numbers<[1], [0], [0], [1], [0, 0, 1, 1], [], []>} : vector<8x32xf32>, vector<32x8xf32>, vector<8x8xf32> -> vector<8x8xf32>
    %c0_95 = arith.constant 0 : index
    %c1_96 = arith.constant 1 : index
    %c0_97 = arith.constant 0 : index
    %c0_98 = arith.constant 0 : index
    %127 = vector.load %arg15[%c0_95, %c1_96, %c0_97, %c0_98] : memref<2x4x1x8xf32, #tpu.memory_space<vmem>>, vector<1x1x1x8xf32>
    %128 = vector.shape_cast %127 : vector<1x1x1x8xf32> to vector<1x8xf32>
    %129 = vector.broadcast %128 : vector<1x8xf32> to vector<8x8xf32>
    %130 = arith.addf %126, %129 : vector<8x8xf32>
    %c0_99 = arith.constant 0 : index
    %c1_100 = arith.constant 1 : index
    %c0_101 = arith.constant 0 : index
    %c0_102 = arith.constant 0 : index
    %131 = vector.load %arg16[%c0_99, %c1_100, %c0_101, %c0_102] : memref<2x4x32x8xf32, #tpu.memory_space<vmem>>, vector<1x1x32x8xf32>
    %132 = vector.shape_cast %131 : vector<1x1x32x8xf32> to vector<32x8xf32>
    %cst_103 = arith.constant dense<0.000000e+00> : vector<8x8xf32>
    %133 = tpu.matmul %71, %132, %cst_103 {dimension_numbers = #tpu.dot_dimension_numbers<[1], [0], [0], [1], [0, 0, 1, 1], [], []>} : vector<8x32xf32>, vector<32x8xf32>, vector<8x8xf32> -> vector<8x8xf32>
    %c0_104 = arith.constant 0 : index
    %c1_105 = arith.constant 1 : index
    %c0_106 = arith.constant 0 : index
    %c0_107 = arith.constant 0 : index
    %134 = vector.load %arg17[%c0_104, %c1_105, %c0_106, %c0_107] : memref<2x4x1x8xf32, #tpu.memory_space<vmem>>, vector<1x1x1x8xf32>
    %135 = vector.shape_cast %134 : vector<1x1x1x8xf32> to vector<1x8xf32>
    %136 = vector.broadcast %135 : vector<1x8xf32> to vector<8x8xf32>
    %137 = arith.addf %133, %136 : vector<8x8xf32>
    %cst_108 = arith.constant dense<0.000000e+00> : vector<8x8xf32>
    %138 = tpu.matmul %123, %130, %cst_108 {dimension_numbers = #tpu.dot_dimension_numbers<[1], [1], [0], [0], [0, 0, 1, 0], [], []>} : vector<8x8xf32>, vector<8x8xf32>, vector<8x8xf32> -> vector<8x8xf32>
    %cst_109 = arith.constant 0.353553385 : f32
    %139 = vector.broadcast %cst_109 : f32 to vector<8x8xf32>
    %140 = arith.mulf %138, %139 : vector<8x8xf32>
    %141 = arith.addf %140, %23 : vector<8x8xf32>
    %cst_110 = arith.constant dense<0xFF800000> : vector<8xf32>
    %142 = vector.multi_reduction <maximumf>, %141, %cst_110 [1] : vector<8x8xf32> to vector<8xf32>
    %143 = vector.shape_cast %142 : vector<8xf32> to vector<8x1xf32>
    %144 = vector.broadcast %143 : vector<8x1xf32> to vector<8x8xf32>
    %145 = arith.subf %141, %144 : vector<8x8xf32>
    %146 = math.exp %145 : vector<8x8xf32>
    %cst_111 = arith.constant dense<0.000000e+00> : vector<8xf32>
    %147 = vector.multi_reduction <add>, %146, %cst_111 [1] : vector<8x8xf32> to vector<8xf32>
    %148 = vector.shape_cast %147 : vector<8xf32> to vector<8x1xf32>
    %149 = tpu.reciprocal %148 {approx = true} : vector<8x1xf32> -> vector<8x1xf32>
    %150 = vector.broadcast %149 : vector<8x1xf32> to vector<8x8xf32>
    %151 = arith.mulf %146, %150 : vector<8x8xf32>
    %cst_112 = arith.constant dense<0.000000e+00> : vector<8x8xf32>
    %152 = tpu.matmul %151, %137, %cst_112 {dimension_numbers = #tpu.dot_dimension_numbers<[1], [0], [0], [1], [0, 0, 1, 1], [], []>} : vector<8x8xf32>, vector<8x8xf32>, vector<8x8xf32> -> vector<8x8xf32>
    %c0_113 = arith.constant 0 : index
    %c1_114 = arith.constant 1 : index
    %c0_115 = arith.constant 0 : index
    %c0_116 = arith.constant 0 : index
    %153 = vector.load %arg18[%c0_113, %c1_114, %c0_115, %c0_116] : memref<2x4x8x32xf32, #tpu.memory_space<vmem>>, vector<1x1x8x32xf32>
    %154 = vector.shape_cast %153 : vector<1x1x8x32xf32> to vector<8x32xf32>
    %cst_117 = arith.constant dense<0.000000e+00> : vector<8x32xf32>
    %155 = tpu.matmul %152, %154, %cst_117 {dimension_numbers = #tpu.dot_dimension_numbers<[1], [0], [0], [1], [0, 0, 1, 1], [], []>} : vector<8x8xf32>, vector<8x32xf32>, vector<8x32xf32> -> vector<8x32xf32>
    %156 = arith.addf %116, %155 : vector<8x32xf32>
    %c0_118 = arith.constant 0 : index
    %c2 = arith.constant 2 : index
    %c0_119 = arith.constant 0 : index
    %c0_120 = arith.constant 0 : index
    %157 = vector.load %arg12[%c0_118, %c2, %c0_119, %c0_120] : memref<2x4x32x8xf32, #tpu.memory_space<vmem>>, vector<1x1x32x8xf32>
    %158 = vector.shape_cast %157 : vector<1x1x32x8xf32> to vector<32x8xf32>
    %cst_121 = arith.constant dense<0.000000e+00> : vector<8x8xf32>
    %159 = tpu.matmul %71, %158, %cst_121 {dimension_numbers = #tpu.dot_dimension_numbers<[1], [0], [0], [1], [0, 0, 1, 1], [], []>} : vector<8x32xf32>, vector<32x8xf32>, vector<8x8xf32> -> vector<8x8xf32>
    %c0_122 = arith.constant 0 : index
    %c2_123 = arith.constant 2 : index
    %c0_124 = arith.constant 0 : index
    %c0_125 = arith.constant 0 : index
    %160 = vector.load %arg13[%c0_122, %c2_123, %c0_124, %c0_125] : memref<2x4x1x8xf32, #tpu.memory_space<vmem>>, vector<1x1x1x8xf32>
    %161 = vector.shape_cast %160 : vector<1x1x1x8xf32> to vector<1x8xf32>
    %162 = vector.broadcast %161 : vector<1x8xf32> to vector<8x8xf32>
    %163 = arith.addf %159, %162 : vector<8x8xf32>
    %c0_126 = arith.constant 0 : index
    %c2_127 = arith.constant 2 : index
    %c0_128 = arith.constant 0 : index
    %c0_129 = arith.constant 0 : index
    %164 = vector.load %arg14[%c0_126, %c2_127, %c0_128, %c0_129] : memref<2x4x32x8xf32, #tpu.memory_space<vmem>>, vector<1x1x32x8xf32>
    %165 = vector.shape_cast %164 : vector<1x1x32x8xf32> to vector<32x8xf32>
    %cst_130 = arith.constant dense<0.000000e+00> : vector<8x8xf32>
    %166 = tpu.matmul %71, %165, %cst_130 {dimension_numbers = #tpu.dot_dimension_numbers<[1], [0], [0], [1], [0, 0, 1, 1], [], []>} : vector<8x32xf32>, vector<32x8xf32>, vector<8x8xf32> -> vector<8x8xf32>
    %c0_131 = arith.constant 0 : index
    %c2_132 = arith.constant 2 : index
    %c0_133 = arith.constant 0 : index
    %c0_134 = arith.constant 0 : index
    %167 = vector.load %arg15[%c0_131, %c2_132, %c0_133, %c0_134] : memref<2x4x1x8xf32, #tpu.memory_space<vmem>>, vector<1x1x1x8xf32>
    %168 = vector.shape_cast %167 : vector<1x1x1x8xf32> to vector<1x8xf32>
    %169 = vector.broadcast %168 : vector<1x8xf32> to vector<8x8xf32>
    %170 = arith.addf %166, %169 : vector<8x8xf32>
    %c0_135 = arith.constant 0 : index
    %c2_136 = arith.constant 2 : index
    %c0_137 = arith.constant 0 : index
    %c0_138 = arith.constant 0 : index
    %171 = vector.load %arg16[%c0_135, %c2_136, %c0_137, %c0_138] : memref<2x4x32x8xf32, #tpu.memory_space<vmem>>, vector<1x1x32x8xf32>
    %172 = vector.shape_cast %171 : vector<1x1x32x8xf32> to vector<32x8xf32>
    %cst_139 = arith.constant dense<0.000000e+00> : vector<8x8xf32>
    %173 = tpu.matmul %71, %172, %cst_139 {dimension_numbers = #tpu.dot_dimension_numbers<[1], [0], [0], [1], [0, 0, 1, 1], [], []>} : vector<8x32xf32>, vector<32x8xf32>, vector<8x8xf32> -> vector<8x8xf32>
    %c0_140 = arith.constant 0 : index
    %c2_141 = arith.constant 2 : index
    %c0_142 = arith.constant 0 : index
    %c0_143 = arith.constant 0 : index
    %174 = vector.load %arg17[%c0_140, %c2_141, %c0_142, %c0_143] : memref<2x4x1x8xf32, #tpu.memory_space<vmem>>, vector<1x1x1x8xf32>
    %175 = vector.shape_cast %174 : vector<1x1x1x8xf32> to vector<1x8xf32>
    %176 = vector.broadcast %175 : vector<1x8xf32> to vector<8x8xf32>
    %177 = arith.addf %173, %176 : vector<8x8xf32>
    %cst_144 = arith.constant dense<0.000000e+00> : vector<8x8xf32>
    %178 = tpu.matmul %163, %170, %cst_144 {dimension_numbers = #tpu.dot_dimension_numbers<[1], [1], [0], [0], [0, 0, 1, 0], [], []>} : vector<8x8xf32>, vector<8x8xf32>, vector<8x8xf32> -> vector<8x8xf32>
    %cst_145 = arith.constant 0.353553385 : f32
    %179 = vector.broadcast %cst_145 : f32 to vector<8x8xf32>
    %180 = arith.mulf %178, %179 : vector<8x8xf32>
    %181 = arith.addf %180, %23 : vector<8x8xf32>
    %cst_146 = arith.constant dense<0xFF800000> : vector<8xf32>
    %182 = vector.multi_reduction <maximumf>, %181, %cst_146 [1] : vector<8x8xf32> to vector<8xf32>
    %183 = vector.shape_cast %182 : vector<8xf32> to vector<8x1xf32>
    %184 = vector.broadcast %183 : vector<8x1xf32> to vector<8x8xf32>
    %185 = arith.subf %181, %184 : vector<8x8xf32>
    %186 = math.exp %185 : vector<8x8xf32>
    %cst_147 = arith.constant dense<0.000000e+00> : vector<8xf32>
    %187 = vector.multi_reduction <add>, %186, %cst_147 [1] : vector<8x8xf32> to vector<8xf32>
    %188 = vector.shape_cast %187 : vector<8xf32> to vector<8x1xf32>
    %189 = tpu.reciprocal %188 {approx = true} : vector<8x1xf32> -> vector<8x1xf32>
    %190 = vector.broadcast %189 : vector<8x1xf32> to vector<8x8xf32>
    %191 = arith.mulf %186, %190 : vector<8x8xf32>
    %cst_148 = arith.constant dense<0.000000e+00> : vector<8x8xf32>
    %192 = tpu.matmul %191, %177, %cst_148 {dimension_numbers = #tpu.dot_dimension_numbers<[1], [0], [0], [1], [0, 0, 1, 1], [], []>} : vector<8x8xf32>, vector<8x8xf32>, vector<8x8xf32> -> vector<8x8xf32>
    %c0_149 = arith.constant 0 : index
    %c2_150 = arith.constant 2 : index
    %c0_151 = arith.constant 0 : index
    %c0_152 = arith.constant 0 : index
    %193 = vector.load %arg18[%c0_149, %c2_150, %c0_151, %c0_152] : memref<2x4x8x32xf32, #tpu.memory_space<vmem>>, vector<1x1x8x32xf32>
    %194 = vector.shape_cast %193 : vector<1x1x8x32xf32> to vector<8x32xf32>
    %cst_153 = arith.constant dense<0.000000e+00> : vector<8x32xf32>
    %195 = tpu.matmul %192, %194, %cst_153 {dimension_numbers = #tpu.dot_dimension_numbers<[1], [0], [0], [1], [0, 0, 1, 1], [], []>} : vector<8x8xf32>, vector<8x32xf32>, vector<8x32xf32> -> vector<8x32xf32>
    %196 = arith.addf %156, %195 : vector<8x32xf32>
    %c0_154 = arith.constant 0 : index
    %c3 = arith.constant 3 : index
    %c0_155 = arith.constant 0 : index
    %c0_156 = arith.constant 0 : index
    %197 = vector.load %arg12[%c0_154, %c3, %c0_155, %c0_156] : memref<2x4x32x8xf32, #tpu.memory_space<vmem>>, vector<1x1x32x8xf32>
    %198 = vector.shape_cast %197 : vector<1x1x32x8xf32> to vector<32x8xf32>
    %cst_157 = arith.constant dense<0.000000e+00> : vector<8x8xf32>
    %199 = tpu.matmul %71, %198, %cst_157 {dimension_numbers = #tpu.dot_dimension_numbers<[1], [0], [0], [1], [0, 0, 1, 1], [], []>} : vector<8x32xf32>, vector<32x8xf32>, vector<8x8xf32> -> vector<8x8xf32>
    %c0_158 = arith.constant 0 : index
    %c3_159 = arith.constant 3 : index
    %c0_160 = arith.constant 0 : index
    %c0_161 = arith.constant 0 : index
    %200 = vector.load %arg13[%c0_158, %c3_159, %c0_160, %c0_161] : memref<2x4x1x8xf32, #tpu.memory_space<vmem>>, vector<1x1x1x8xf32>
    %201 = vector.shape_cast %200 : vector<1x1x1x8xf32> to vector<1x8xf32>
    %202 = vector.broadcast %201 : vector<1x8xf32> to vector<8x8xf32>
    %203 = arith.addf %199, %202 : vector<8x8xf32>
    %c0_162 = arith.constant 0 : index
    %c3_163 = arith.constant 3 : index
    %c0_164 = arith.constant 0 : index
    %c0_165 = arith.constant 0 : index
    %204 = vector.load %arg14[%c0_162, %c3_163, %c0_164, %c0_165] : memref<2x4x32x8xf32, #tpu.memory_space<vmem>>, vector<1x1x32x8xf32>
    %205 = vector.shape_cast %204 : vector<1x1x32x8xf32> to vector<32x8xf32>
    %cst_166 = arith.constant dense<0.000000e+00> : vector<8x8xf32>
    %206 = tpu.matmul %71, %205, %cst_166 {dimension_numbers = #tpu.dot_dimension_numbers<[1], [0], [0], [1], [0, 0, 1, 1], [], []>} : vector<8x32xf32>, vector<32x8xf32>, vector<8x8xf32> -> vector<8x8xf32>
    %c0_167 = arith.constant 0 : index
    %c3_168 = arith.constant 3 : index
    %c0_169 = arith.constant 0 : index
    %c0_170 = arith.constant 0 : index
    %207 = vector.load %arg15[%c0_167, %c3_168, %c0_169, %c0_170] : memref<2x4x1x8xf32, #tpu.memory_space<vmem>>, vector<1x1x1x8xf32>
    %208 = vector.shape_cast %207 : vector<1x1x1x8xf32> to vector<1x8xf32>
    %209 = vector.broadcast %208 : vector<1x8xf32> to vector<8x8xf32>
    %210 = arith.addf %206, %209 : vector<8x8xf32>
    %c0_171 = arith.constant 0 : index
    %c3_172 = arith.constant 3 : index
    %c0_173 = arith.constant 0 : index
    %c0_174 = arith.constant 0 : index
    %211 = vector.load %arg16[%c0_171, %c3_172, %c0_173, %c0_174] : memref<2x4x32x8xf32, #tpu.memory_space<vmem>>, vector<1x1x32x8xf32>
    %212 = vector.shape_cast %211 : vector<1x1x32x8xf32> to vector<32x8xf32>
    %cst_175 = arith.constant dense<0.000000e+00> : vector<8x8xf32>
    %213 = tpu.matmul %71, %212, %cst_175 {dimension_numbers = #tpu.dot_dimension_numbers<[1], [0], [0], [1], [0, 0, 1, 1], [], []>} : vector<8x32xf32>, vector<32x8xf32>, vector<8x8xf32> -> vector<8x8xf32>
    %c0_176 = arith.constant 0 : index
    %c3_177 = arith.constant 3 : index
    %c0_178 = arith.constant 0 : index
    %c0_179 = arith.constant 0 : index
    %214 = vector.load %arg17[%c0_176, %c3_177, %c0_178, %c0_179] : memref<2x4x1x8xf32, #tpu.memory_space<vmem>>, vector<1x1x1x8xf32>
    %215 = vector.shape_cast %214 : vector<1x1x1x8xf32> to vector<1x8xf32>
    %216 = vector.broadcast %215 : vector<1x8xf32> to vector<8x8xf32>
    %217 = arith.addf %213, %216 : vector<8x8xf32>
    %cst_180 = arith.constant dense<0.000000e+00> : vector<8x8xf32>
    %218 = tpu.matmul %203, %210, %cst_180 {dimension_numbers = #tpu.dot_dimension_numbers<[1], [1], [0], [0], [0, 0, 1, 0], [], []>} : vector<8x8xf32>, vector<8x8xf32>, vector<8x8xf32> -> vector<8x8xf32>
    %cst_181 = arith.constant 0.353553385 : f32
    %219 = vector.broadcast %cst_181 : f32 to vector<8x8xf32>
    %220 = arith.mulf %218, %219 : vector<8x8xf32>
    %221 = arith.addf %220, %23 : vector<8x8xf32>
    %cst_182 = arith.constant dense<0xFF800000> : vector<8xf32>
    %222 = vector.multi_reduction <maximumf>, %221, %cst_182 [1] : vector<8x8xf32> to vector<8xf32>
    %223 = vector.shape_cast %222 : vector<8xf32> to vector<8x1xf32>
    %224 = vector.broadcast %223 : vector<8x1xf32> to vector<8x8xf32>
    %225 = arith.subf %221, %224 : vector<8x8xf32>
    %226 = math.exp %225 : vector<8x8xf32>
    %cst_183 = arith.constant dense<0.000000e+00> : vector<8xf32>
    %227 = vector.multi_reduction <add>, %226, %cst_183 [1] : vector<8x8xf32> to vector<8xf32>
    %228 = vector.shape_cast %227 : vector<8xf32> to vector<8x1xf32>
    %229 = tpu.reciprocal %228 {approx = true} : vector<8x1xf32> -> vector<8x1xf32>
    %230 = vector.broadcast %229 : vector<8x1xf32> to vector<8x8xf32>
    %231 = arith.mulf %226, %230 : vector<8x8xf32>
    %cst_184 = arith.constant dense<0.000000e+00> : vector<8x8xf32>
    %232 = tpu.matmul %231, %217, %cst_184 {dimension_numbers = #tpu.dot_dimension_numbers<[1], [0], [0], [1], [0, 0, 1, 1], [], []>} : vector<8x8xf32>, vector<8x8xf32>, vector<8x8xf32> -> vector<8x8xf32>
    %c0_185 = arith.constant 0 : index
    %c3_186 = arith.constant 3 : index
    %c0_187 = arith.constant 0 : index
    %c0_188 = arith.constant 0 : index
    %233 = vector.load %arg18[%c0_185, %c3_186, %c0_187, %c0_188] : memref<2x4x8x32xf32, #tpu.memory_space<vmem>>, vector<1x1x8x32xf32>
    %234 = vector.shape_cast %233 : vector<1x1x8x32xf32> to vector<8x32xf32>
    %cst_189 = arith.constant dense<0.000000e+00> : vector<8x32xf32>
    %235 = tpu.matmul %232, %234, %cst_189 {dimension_numbers = #tpu.dot_dimension_numbers<[1], [0], [0], [1], [0, 0, 1, 1], [], []>} : vector<8x8xf32>, vector<8x32xf32>, vector<8x32xf32> -> vector<8x32xf32>
    %236 = arith.addf %196, %235 : vector<8x32xf32>
    %237 = arith.addf %18, %236 : vector<8x32xf32>
    %238 = vector.broadcast %1 : vector<8x1xf32> to vector<8x32xf32>
    %239 = arith.mulf %237, %238 : vector<8x32xf32>
    %c0_190 = arith.constant 0 : index
    %c0_191 = arith.constant 0 : index
    %c0_192 = arith.constant 0 : index
    %240 = vector.load %arg20[%c0_190, %c0_191, %c0_192] : memref<2x1x32xf32, #tpu.memory_space<vmem>>, vector<1x1x32xf32>
    %241 = vector.shape_cast %240 : vector<1x1x32xf32> to vector<1x32xf32>
    %c0_193 = arith.constant 0 : index
    %c0_194 = arith.constant 0 : index
    %c0_195 = arith.constant 0 : index
    %242 = vector.load %arg21[%c0_193, %c0_194, %c0_195] : memref<2x1x32xf32, #tpu.memory_space<vmem>>, vector<1x1x32xf32>
    %243 = vector.shape_cast %242 : vector<1x1x32xf32> to vector<1x32xf32>
    %cst_196 = arith.constant dense<0.000000e+00> : vector<8xf32>
    %244 = vector.multi_reduction <add>, %239, %cst_196 [1] : vector<8x32xf32> to vector<8xf32>
    %245 = vector.shape_cast %244 : vector<8xf32> to vector<8x1xf32>
    %cst_197 = arith.constant 3.200000e+01 : f32
    %246 = vector.broadcast %cst_197 : f32 to vector<8x1xf32>
    %247 = arith.divf %245, %246 : vector<8x1xf32>
    %248 = vector.broadcast %247 : vector<8x1xf32> to vector<8x32xf32>
    %249 = arith.subf %239, %248 : vector<8x32xf32>
    %250 = arith.mulf %249, %249 : vector<8x32xf32>
    %cst_198 = arith.constant dense<0.000000e+00> : vector<8xf32>
    %251 = vector.multi_reduction <add>, %250, %cst_198 [1] : vector<8x32xf32> to vector<8xf32>
    %252 = vector.shape_cast %251 : vector<8xf32> to vector<8x1xf32>
    %cst_199 = arith.constant 3.200000e+01 : f32
    %253 = vector.broadcast %cst_199 : f32 to vector<8x1xf32>
    %254 = arith.divf %252, %253 : vector<8x1xf32>
    %cst_200 = arith.constant 9.99999997E-7 : f32
    %255 = vector.broadcast %cst_200 : f32 to vector<8x1xf32>
    %256 = arith.addf %254, %255 : vector<8x1xf32>
    %257 = math.rsqrt %256 : vector<8x1xf32>
    %258 = vector.broadcast %257 : vector<8x1xf32> to vector<8x32xf32>
    %259 = arith.mulf %249, %258 : vector<8x32xf32>
    %260 = vector.broadcast %241 : vector<1x32xf32> to vector<8x32xf32>
    %261 = arith.mulf %259, %260 : vector<8x32xf32>
    %262 = vector.broadcast %243 : vector<1x32xf32> to vector<8x32xf32>
    %263 = arith.addf %261, %262 : vector<8x32xf32>
    %264 = vector.broadcast %1 : vector<8x1xf32> to vector<8x32xf32>
    %265 = arith.mulf %263, %264 : vector<8x32xf32>
    %c0_201 = arith.constant 0 : index
    %c0_202 = arith.constant 0 : index
    %c0_203 = arith.constant 0 : index
    %266 = vector.load %arg22[%c0_201, %c0_202, %c0_203] : memref<2x1x32xf32, #tpu.memory_space<vmem>>, vector<1x1x32xf32>
    %267 = vector.shape_cast %266 : vector<1x1x32xf32> to vector<1x32xf32>
    %c0_204 = arith.constant 0 : index
    %c0_205 = arith.constant 0 : index
    %c0_206 = arith.constant 0 : index
    %268 = vector.load %arg23[%c0_204, %c0_205, %c0_206] : memref<2x1x32xf32, #tpu.memory_space<vmem>>, vector<1x1x32xf32>
    %269 = vector.shape_cast %268 : vector<1x1x32xf32> to vector<1x32xf32>
    %c0_207 = arith.constant 0 : index
    %c0_208 = arith.constant 0 : index
    %c0_209 = arith.constant 0 : index
    %270 = vector.load %arg24[%c0_207, %c0_208, %c0_209] : memref<2x1x32xf32, #tpu.memory_space<vmem>>, vector<1x1x32xf32>
    %271 = vector.shape_cast %270 : vector<1x1x32xf32> to vector<1x32xf32>
    %c0_210 = arith.constant 0 : index
    %c0_211 = arith.constant 0 : index
    %c0_212 = arith.constant 0 : index
    %272 = vector.load %arg25[%c0_210, %c0_211, %c0_212] : memref<2x1x32xf32, #tpu.memory_space<vmem>>, vector<1x1x32xf32>
    %273 = vector.shape_cast %272 : vector<1x1x32xf32> to vector<1x32xf32>
    %274 = vector.broadcast %0 : vector<8x1xf32> to vector<8x32xf32>
    %275 = vector.broadcast %267 : vector<1x32xf32> to vector<8x32xf32>
    %276 = arith.mulf %274, %275 : vector<8x32xf32>
    %277 = vector.broadcast %269 : vector<1x32xf32> to vector<8x32xf32>
    %278 = arith.addf %276, %277 : vector<8x32xf32>
    %279 = vector.broadcast %0 : vector<8x1xf32> to vector<8x32xf32>
    %280 = vector.broadcast %271 : vector<1x32xf32> to vector<8x32xf32>
    %281 = arith.mulf %279, %280 : vector<8x32xf32>
    %282 = vector.broadcast %273 : vector<1x32xf32> to vector<8x32xf32>
    %283 = arith.addf %281, %282 : vector<8x32xf32>
    %284 = arith.mulf %265, %278 : vector<8x32xf32>
    %285 = arith.addf %284, %283 : vector<8x32xf32>
    %c0_213 = arith.constant 0 : index
    %c0_214 = arith.constant 0 : index
    %c0_215 = arith.constant 0 : index
    %286 = vector.load %arg26[%c0_213, %c0_214, %c0_215] : memref<2x32x128xf32, #tpu.memory_space<vmem>>, vector<1x32x128xf32>
    %287 = vector.shape_cast %286 : vector<1x32x128xf32> to vector<32x128xf32>
    %cst_216 = arith.constant dense<0.000000e+00> : vector<8x128xf32>
    %288 = tpu.matmul %285, %287, %cst_216 {dimension_numbers = #tpu.dot_dimension_numbers<[1], [0], [0], [1], [0, 0, 1, 1], [], []>} : vector<8x32xf32>, vector<32x128xf32>, vector<8x128xf32> -> vector<8x128xf32>
    %c0_217 = arith.constant 0 : index
    %c0_218 = arith.constant 0 : index
    %c0_219 = arith.constant 0 : index
    %289 = vector.load %arg27[%c0_217, %c0_218, %c0_219] : memref<2x1x128xf32, #tpu.memory_space<vmem>>, vector<1x1x128xf32>
    %290 = vector.shape_cast %289 : vector<1x1x128xf32> to vector<1x128xf32>
    %291 = vector.broadcast %290 : vector<1x128xf32> to vector<8x128xf32>
    %292 = arith.addf %288, %291 : vector<8x128xf32>
    %cst_220 = arith.constant 0.707106769 : f32
    %293 = vector.broadcast %cst_220 : f32 to vector<8x128xf32>
    %294 = arith.mulf %292, %293 : vector<8x128xf32>
    %295 = math.absf %294 : vector<8x128xf32>
    %cst_221 = arith.constant 0.327591091 : f32
    %296 = vector.broadcast %cst_221 : f32 to vector<8x128xf32>
    %297 = arith.mulf %296, %295 : vector<8x128xf32>
    %cst_222 = arith.constant 1.000000e+00 : f32
    %298 = vector.broadcast %cst_222 : f32 to vector<8x128xf32>
    %299 = arith.addf %298, %297 : vector<8x128xf32>
    %cst_223 = arith.constant 1.000000e+00 : f32
    %300 = vector.broadcast %cst_223 : f32 to vector<8x128xf32>
    %301 = arith.divf %300, %299 : vector<8x128xf32>
    %cst_224 = arith.constant 1.06140542 : f32
    %302 = vector.broadcast %cst_224 : f32 to vector<8x128xf32>
    %303 = arith.mulf %301, %302 : vector<8x128xf32>
    %cst_225 = arith.constant -1.45315206 : f32
    %304 = vector.broadcast %cst_225 : f32 to vector<8x128xf32>
    %305 = arith.addf %304, %303 : vector<8x128xf32>
    %306 = arith.mulf %301, %305 : vector<8x128xf32>
    %cst_226 = arith.constant 1.42141378 : f32
    %307 = vector.broadcast %cst_226 : f32 to vector<8x128xf32>
    %308 = arith.addf %307, %306 : vector<8x128xf32>
    %309 = arith.mulf %301, %308 : vector<8x128xf32>
    %cst_227 = arith.constant -0.284496725 : f32
    %310 = vector.broadcast %cst_227 : f32 to vector<8x128xf32>
    %311 = arith.addf %310, %309 : vector<8x128xf32>
    %312 = arith.mulf %301, %311 : vector<8x128xf32>
    %cst_228 = arith.constant 0.254829586 : f32
    %313 = vector.broadcast %cst_228 : f32 to vector<8x128xf32>
    %314 = arith.addf %313, %312 : vector<8x128xf32>
    %315 = arith.mulf %301, %314 : vector<8x128xf32>
    %cst_229 = arith.constant 0.000000e+00 : f32
    %316 = vector.broadcast %cst_229 : f32 to vector<8x128xf32>
    %317 = arith.subf %316, %295 : vector<8x128xf32>
    %318 = arith.mulf %317, %295 : vector<8x128xf32>
    %319 = math.exp %318 : vector<8x128xf32>
    %320 = arith.mulf %315, %319 : vector<8x128xf32>
    %cst_230 = arith.constant 1.000000e+00 : f32
    %321 = vector.broadcast %cst_230 : f32 to vector<8x128xf32>
    %322 = arith.subf %321, %320 : vector<8x128xf32>
    %cst_231 = arith.constant 0.000000e+00 : f32
    %323 = vector.broadcast %cst_231 : f32 to vector<8x128xf32>
    %324 = arith.cmpf oge, %294, %323 : vector<8x128xf32>
    %cst_232 = arith.constant 0.000000e+00 : f32
    %325 = vector.broadcast %cst_232 : f32 to vector<8x128xf32>
    %326 = arith.subf %325, %322 : vector<8x128xf32>
    %327 = arith.select %324, %322, %326 : vector<8x128xi1>, vector<8x128xf32>
    %cst_233 = arith.constant 5.000000e-01 : f32
    %328 = vector.broadcast %cst_233 : f32 to vector<8x128xf32>
    %329 = arith.mulf %328, %292 : vector<8x128xf32>
    %cst_234 = arith.constant 1.000000e+00 : f32
    %330 = vector.broadcast %cst_234 : f32 to vector<8x128xf32>
    %331 = arith.addf %330, %327 : vector<8x128xf32>
    %332 = arith.mulf %329, %331 : vector<8x128xf32>
    %c0_235 = arith.constant 0 : index
    %c0_236 = arith.constant 0 : index
    %c0_237 = arith.constant 0 : index
    %333 = vector.load %arg28[%c0_235, %c0_236, %c0_237] : memref<2x128x32xf32, #tpu.memory_space<vmem>>, vector<1x128x32xf32>
    %334 = vector.shape_cast %333 : vector<1x128x32xf32> to vector<128x32xf32>
    %cst_238 = arith.constant dense<0.000000e+00> : vector<8x32xf32>
    %335 = tpu.matmul %332, %334, %cst_238 {dimension_numbers = #tpu.dot_dimension_numbers<[1], [0], [0], [1], [0, 0, 1, 1], [], []>} : vector<8x128xf32>, vector<128x32xf32>, vector<8x32xf32> -> vector<8x32xf32>
    %c0_239 = arith.constant 0 : index
    %c0_240 = arith.constant 0 : index
    %c0_241 = arith.constant 0 : index
    %336 = vector.load %arg29[%c0_239, %c0_240, %c0_241] : memref<2x1x32xf32, #tpu.memory_space<vmem>>, vector<1x1x32xf32>
    %337 = vector.shape_cast %336 : vector<1x1x32xf32> to vector<1x32xf32>
    %338 = vector.broadcast %337 : vector<1x32xf32> to vector<8x32xf32>
    %339 = arith.addf %335, %338 : vector<8x32xf32>
    %340 = arith.addf %237, %339 : vector<8x32xf32>
    %341 = vector.broadcast %8 : vector<1x32xf32> to vector<8x32xf32>
    %342 = arith.mulf %340, %341 : vector<8x32xf32>
    %cst_242 = arith.constant dense<0.000000e+00> : vector<8xf32>
    %343 = vector.multi_reduction <add>, %342, %cst_242 [1] : vector<8x32xf32> to vector<8xf32>
    %344 = vector.shape_cast %343 : vector<8xf32> to vector<8x1xf32>
    %cst_243 = arith.constant 1.000000e+01 : f32
    %345 = vector.broadcast %cst_243 : f32 to vector<8x1xf32>
    %346 = arith.mulf %344, %345 : vector<8x1xf32>
    %cst_244 = arith.constant 3.000000e+01 : f32
    %347 = vector.broadcast %cst_244 : f32 to vector<8x1xf32>
    %348 = arith.subf %346, %347 : vector<8x1xf32>
    %cst_245 = arith.constant 0.000000e+00 : f32
    %349 = vector.broadcast %cst_245 : f32 to vector<8x1xf32>
    %350 = arith.subf %349, %348 : vector<8x1xf32>
    %351 = math.exp %350 : vector<8x1xf32>
    %cst_246 = arith.constant 1.000000e+00 : f32
    %352 = vector.broadcast %cst_246 : f32 to vector<8x1xf32>
    %353 = arith.addf %352, %351 : vector<8x1xf32>
    %cst_247 = arith.constant 1.000000e+00 : f32
    %354 = vector.broadcast %cst_247 : f32 to vector<8x1xf32>
    %355 = arith.divf %354, %353 : vector<8x1xf32>
    %356 = vector.broadcast %1 : vector<8x1xf32> to vector<8x32xf32>
    %357 = arith.mulf %340, %356 : vector<8x32xf32>
    %358 = arith.addf %14, %355 : vector<8x1xf32>
    %cst_248 = arith.constant 9.900000e-01 : f32
    %359 = vector.broadcast %cst_248 : f32 to vector<8x1xf32>
    %360 = arith.cmpf ogt, %358, %359 : vector<8x1xf32>
    %cst_249 = arith.constant 1.000000e+00 : f32
    %cst_250 = arith.constant 0.000000e+00 : f32
    %361 = vector.broadcast %cst_249 : f32 to vector<8x1xf32>
    %362 = vector.broadcast %cst_250 : f32 to vector<8x1xf32>
    %363 = arith.select %360, %361, %362 : vector<8x1xi1>, vector<8x1xf32>
    %364 = arith.mulf %363, %1 : vector<8x1xf32>
    %365 = vector.broadcast %15 : vector<8x1xf32> to vector<8x32xf32>
    %366 = arith.mulf %357, %365 : vector<8x32xf32>
    %367 = vector.broadcast %364 : vector<8x1xf32> to vector<8x32xf32>
    %368 = arith.mulf %366, %367 : vector<8x32xf32>
    %cst_251 = arith.constant 9.900000e-01 : f32
    %369 = vector.broadcast %cst_251 : f32 to vector<8x1xf32>
    %370 = arith.cmpf olt, %358, %369 : vector<8x1xf32>
    %cst_252 = arith.constant 1.000000e+00 : f32
    %cst_253 = arith.constant 0.000000e+00 : f32
    %371 = vector.broadcast %cst_252 : f32 to vector<8x1xf32>
    %372 = vector.broadcast %cst_253 : f32 to vector<8x1xf32>
    %373 = arith.select %370, %371, %372 : vector<8x1xi1>, vector<8x1xf32>
    %374 = arith.mulf %373, %355 : vector<8x1xf32>
    %375 = arith.subf %15, %374 : vector<8x1xf32>
    %376 = vector.broadcast %355 : vector<8x1xf32> to vector<8x32xf32>
    %377 = arith.mulf %357, %376 : vector<8x32xf32>
    %378 = vector.broadcast %373 : vector<8x1xf32> to vector<8x32xf32>
    %379 = arith.mulf %377, %378 : vector<8x32xf32>
    %380 = arith.mulf %373, %1 : vector<8x1xf32>
    %381 = arith.addf %16, %368 : vector<8x32xf32>
    %382 = arith.addf %381, %379 : vector<8x32xf32>
    %383 = vector.broadcast %380 : vector<8x1xf32> to vector<8x32xf32>
    %384 = arith.mulf %340, %383 : vector<8x32xf32>
    %cst_254 = arith.constant 1.000000e+00 : f32
    %385 = vector.broadcast %cst_254 : f32 to vector<8x1xf32>
    %386 = arith.subf %385, %380 : vector<8x1xf32>
    %cst_255 = arith.constant dense<0.000000e+00> : vector<8x8xf32>
    %387 = tpu.matmul %2, %386, %cst_255 {dimension_numbers = #tpu.dot_dimension_numbers<[1], [1], [0], [0], [0, 0, 1, 0], [], []>} : vector<8x1xf32>, vector<8x1xf32>, vector<8x8xf32> -> vector<8x8xf32>
    %cst_256 = arith.constant -1.000000e+03 : f32
    %388 = vector.broadcast %cst_256 : f32 to vector<8x8xf32>
    %389 = arith.mulf %388, %387 : vector<8x8xf32>
    %390 = vector.broadcast %380 : vector<8x1xf32> to vector<8x32xf32>
    %391 = arith.mulf %384, %390 : vector<8x32xf32>
    %c1_257 = arith.constant 1 : index
    %c0_258 = arith.constant 0 : index
    %c0_259 = arith.constant 0 : index
    %392 = vector.load %arg6[%c1_257, %c0_258, %c0_259] : memref<2x1x32xf32, #tpu.memory_space<vmem>>, vector<1x1x32xf32>
    %393 = vector.shape_cast %392 : vector<1x1x32xf32> to vector<1x32xf32>
    %c1_260 = arith.constant 1 : index
    %c0_261 = arith.constant 0 : index
    %c0_262 = arith.constant 0 : index
    %394 = vector.load %arg7[%c1_260, %c0_261, %c0_262] : memref<2x1x32xf32, #tpu.memory_space<vmem>>, vector<1x1x32xf32>
    %395 = vector.shape_cast %394 : vector<1x1x32xf32> to vector<1x32xf32>
    %cst_263 = arith.constant dense<0.000000e+00> : vector<8xf32>
    %396 = vector.multi_reduction <add>, %391, %cst_263 [1] : vector<8x32xf32> to vector<8xf32>
    %397 = vector.shape_cast %396 : vector<8xf32> to vector<8x1xf32>
    %cst_264 = arith.constant 3.200000e+01 : f32
    %398 = vector.broadcast %cst_264 : f32 to vector<8x1xf32>
    %399 = arith.divf %397, %398 : vector<8x1xf32>
    %400 = vector.broadcast %399 : vector<8x1xf32> to vector<8x32xf32>
    %401 = arith.subf %391, %400 : vector<8x32xf32>
    %402 = arith.mulf %401, %401 : vector<8x32xf32>
    %cst_265 = arith.constant dense<0.000000e+00> : vector<8xf32>
    %403 = vector.multi_reduction <add>, %402, %cst_265 [1] : vector<8x32xf32> to vector<8xf32>
    %404 = vector.shape_cast %403 : vector<8xf32> to vector<8x1xf32>
    %cst_266 = arith.constant 3.200000e+01 : f32
    %405 = vector.broadcast %cst_266 : f32 to vector<8x1xf32>
    %406 = arith.divf %404, %405 : vector<8x1xf32>
    %cst_267 = arith.constant 9.99999997E-7 : f32
    %407 = vector.broadcast %cst_267 : f32 to vector<8x1xf32>
    %408 = arith.addf %406, %407 : vector<8x1xf32>
    %409 = math.rsqrt %408 : vector<8x1xf32>
    %410 = vector.broadcast %409 : vector<8x1xf32> to vector<8x32xf32>
    %411 = arith.mulf %401, %410 : vector<8x32xf32>
    %412 = vector.broadcast %393 : vector<1x32xf32> to vector<8x32xf32>
    %413 = arith.mulf %411, %412 : vector<8x32xf32>
    %414 = vector.broadcast %395 : vector<1x32xf32> to vector<8x32xf32>
    %415 = arith.addf %413, %414 : vector<8x32xf32>
    %416 = vector.broadcast %380 : vector<8x1xf32> to vector<8x32xf32>
    %417 = arith.mulf %415, %416 : vector<8x32xf32>
    %c1_268 = arith.constant 1 : index
    %c0_269 = arith.constant 0 : index
    %c0_270 = arith.constant 0 : index
    %418 = vector.load %arg8[%c1_268, %c0_269, %c0_270] : memref<2x1x32xf32, #tpu.memory_space<vmem>>, vector<1x1x32xf32>
    %419 = vector.shape_cast %418 : vector<1x1x32xf32> to vector<1x32xf32>
    %c1_271 = arith.constant 1 : index
    %c0_272 = arith.constant 0 : index
    %c0_273 = arith.constant 0 : index
    %420 = vector.load %arg9[%c1_271, %c0_272, %c0_273] : memref<2x1x32xf32, #tpu.memory_space<vmem>>, vector<1x1x32xf32>
    %421 = vector.shape_cast %420 : vector<1x1x32xf32> to vector<1x32xf32>
    %c1_274 = arith.constant 1 : index
    %c0_275 = arith.constant 0 : index
    %c0_276 = arith.constant 0 : index
    %422 = vector.load %arg10[%c1_274, %c0_275, %c0_276] : memref<2x1x32xf32, #tpu.memory_space<vmem>>, vector<1x1x32xf32>
    %423 = vector.shape_cast %422 : vector<1x1x32xf32> to vector<1x32xf32>
    %c1_277 = arith.constant 1 : index
    %c0_278 = arith.constant 0 : index
    %c0_279 = arith.constant 0 : index
    %424 = vector.load %arg11[%c1_277, %c0_278, %c0_279] : memref<2x1x32xf32, #tpu.memory_space<vmem>>, vector<1x1x32xf32>
    %425 = vector.shape_cast %424 : vector<1x1x32xf32> to vector<1x32xf32>
    %426 = vector.broadcast %0 : vector<8x1xf32> to vector<8x32xf32>
    %427 = vector.broadcast %419 : vector<1x32xf32> to vector<8x32xf32>
    %428 = arith.mulf %426, %427 : vector<8x32xf32>
    %429 = vector.broadcast %421 : vector<1x32xf32> to vector<8x32xf32>
    %430 = arith.addf %428, %429 : vector<8x32xf32>
    %431 = vector.broadcast %0 : vector<8x1xf32> to vector<8x32xf32>
    %432 = vector.broadcast %423 : vector<1x32xf32> to vector<8x32xf32>
    %433 = arith.mulf %431, %432 : vector<8x32xf32>
    %434 = vector.broadcast %425 : vector<1x32xf32> to vector<8x32xf32>
    %435 = arith.addf %433, %434 : vector<8x32xf32>
    %436 = arith.mulf %417, %430 : vector<8x32xf32>
    %437 = arith.addf %436, %435 : vector<8x32xf32>
    %cst_280 = arith.constant 0.000000e+00 : f32
    %438 = vector.broadcast %cst_280 : f32 to vector<8x32xf32>
    %c1_281 = arith.constant 1 : index
    %c0_282 = arith.constant 0 : index
    %c0_283 = arith.constant 0 : index
    %439 = vector.load %arg19[%c1_281, %c0_282, %c0_283] : memref<2x1x32xf32, #tpu.memory_space<vmem>>, vector<1x1x32xf32>
    %440 = vector.shape_cast %439 : vector<1x1x32xf32> to vector<1x32xf32>
    %441 = vector.broadcast %440 : vector<1x32xf32> to vector<8x32xf32>
    %442 = arith.addf %438, %441 : vector<8x32xf32>
    %c1_284 = arith.constant 1 : index
    %c0_285 = arith.constant 0 : index
    %c0_286 = arith.constant 0 : index
    %c0_287 = arith.constant 0 : index
    %443 = vector.load %arg12[%c1_284, %c0_285, %c0_286, %c0_287] : memref<2x4x32x8xf32, #tpu.memory_space<vmem>>, vector<1x1x32x8xf32>
    %444 = vector.shape_cast %443 : vector<1x1x32x8xf32> to vector<32x8xf32>
    %cst_288 = arith.constant dense<0.000000e+00> : vector<8x8xf32>
    %445 = tpu.matmul %437, %444, %cst_288 {dimension_numbers = #tpu.dot_dimension_numbers<[1], [0], [0], [1], [0, 0, 1, 1], [], []>} : vector<8x32xf32>, vector<32x8xf32>, vector<8x8xf32> -> vector<8x8xf32>
    %c1_289 = arith.constant 1 : index
    %c0_290 = arith.constant 0 : index
    %c0_291 = arith.constant 0 : index
    %c0_292 = arith.constant 0 : index
    %446 = vector.load %arg13[%c1_289, %c0_290, %c0_291, %c0_292] : memref<2x4x1x8xf32, #tpu.memory_space<vmem>>, vector<1x1x1x8xf32>
    %447 = vector.shape_cast %446 : vector<1x1x1x8xf32> to vector<1x8xf32>
    %448 = vector.broadcast %447 : vector<1x8xf32> to vector<8x8xf32>
    %449 = arith.addf %445, %448 : vector<8x8xf32>
    %c1_293 = arith.constant 1 : index
    %c0_294 = arith.constant 0 : index
    %c0_295 = arith.constant 0 : index
    %c0_296 = arith.constant 0 : index
    %450 = vector.load %arg14[%c1_293, %c0_294, %c0_295, %c0_296] : memref<2x4x32x8xf32, #tpu.memory_space<vmem>>, vector<1x1x32x8xf32>
    %451 = vector.shape_cast %450 : vector<1x1x32x8xf32> to vector<32x8xf32>
    %cst_297 = arith.constant dense<0.000000e+00> : vector<8x8xf32>
    %452 = tpu.matmul %437, %451, %cst_297 {dimension_numbers = #tpu.dot_dimension_numbers<[1], [0], [0], [1], [0, 0, 1, 1], [], []>} : vector<8x32xf32>, vector<32x8xf32>, vector<8x8xf32> -> vector<8x8xf32>
    %c1_298 = arith.constant 1 : index
    %c0_299 = arith.constant 0 : index
    %c0_300 = arith.constant 0 : index
    %c0_301 = arith.constant 0 : index
    %453 = vector.load %arg15[%c1_298, %c0_299, %c0_300, %c0_301] : memref<2x4x1x8xf32, #tpu.memory_space<vmem>>, vector<1x1x1x8xf32>
    %454 = vector.shape_cast %453 : vector<1x1x1x8xf32> to vector<1x8xf32>
    %455 = vector.broadcast %454 : vector<1x8xf32> to vector<8x8xf32>
    %456 = arith.addf %452, %455 : vector<8x8xf32>
    %c1_302 = arith.constant 1 : index
    %c0_303 = arith.constant 0 : index
    %c0_304 = arith.constant 0 : index
    %c0_305 = arith.constant 0 : index
    %457 = vector.load %arg16[%c1_302, %c0_303, %c0_304, %c0_305] : memref<2x4x32x8xf32, #tpu.memory_space<vmem>>, vector<1x1x32x8xf32>
    %458 = vector.shape_cast %457 : vector<1x1x32x8xf32> to vector<32x8xf32>
    %cst_306 = arith.constant dense<0.000000e+00> : vector<8x8xf32>
    %459 = tpu.matmul %437, %458, %cst_306 {dimension_numbers = #tpu.dot_dimension_numbers<[1], [0], [0], [1], [0, 0, 1, 1], [], []>} : vector<8x32xf32>, vector<32x8xf32>, vector<8x8xf32> -> vector<8x8xf32>
    %c1_307 = arith.constant 1 : index
    %c0_308 = arith.constant 0 : index
    %c0_309 = arith.constant 0 : index
    %c0_310 = arith.constant 0 : index
    %460 = vector.load %arg17[%c1_307, %c0_308, %c0_309, %c0_310] : memref<2x4x1x8xf32, #tpu.memory_space<vmem>>, vector<1x1x1x8xf32>
    %461 = vector.shape_cast %460 : vector<1x1x1x8xf32> to vector<1x8xf32>
    %462 = vector.broadcast %461 : vector<1x8xf32> to vector<8x8xf32>
    %463 = arith.addf %459, %462 : vector<8x8xf32>
    %cst_311 = arith.constant dense<0.000000e+00> : vector<8x8xf32>
    %464 = tpu.matmul %449, %456, %cst_311 {dimension_numbers = #tpu.dot_dimension_numbers<[1], [1], [0], [0], [0, 0, 1, 0], [], []>} : vector<8x8xf32>, vector<8x8xf32>, vector<8x8xf32> -> vector<8x8xf32>
    %cst_312 = arith.constant 0.353553385 : f32
    %465 = vector.broadcast %cst_312 : f32 to vector<8x8xf32>
    %466 = arith.mulf %464, %465 : vector<8x8xf32>
    %467 = arith.addf %466, %389 : vector<8x8xf32>
    %cst_313 = arith.constant dense<0xFF800000> : vector<8xf32>
    %468 = vector.multi_reduction <maximumf>, %467, %cst_313 [1] : vector<8x8xf32> to vector<8xf32>
    %469 = vector.shape_cast %468 : vector<8xf32> to vector<8x1xf32>
    %470 = vector.broadcast %469 : vector<8x1xf32> to vector<8x8xf32>
    %471 = arith.subf %467, %470 : vector<8x8xf32>
    %472 = math.exp %471 : vector<8x8xf32>
    %cst_314 = arith.constant dense<0.000000e+00> : vector<8xf32>
    %473 = vector.multi_reduction <add>, %472, %cst_314 [1] : vector<8x8xf32> to vector<8xf32>
    %474 = vector.shape_cast %473 : vector<8xf32> to vector<8x1xf32>
    %475 = tpu.reciprocal %474 {approx = true} : vector<8x1xf32> -> vector<8x1xf32>
    %476 = vector.broadcast %475 : vector<8x1xf32> to vector<8x8xf32>
    %477 = arith.mulf %472, %476 : vector<8x8xf32>
    %cst_315 = arith.constant dense<0.000000e+00> : vector<8x8xf32>
    %478 = tpu.matmul %477, %463, %cst_315 {dimension_numbers = #tpu.dot_dimension_numbers<[1], [0], [0], [1], [0, 0, 1, 1], [], []>} : vector<8x8xf32>, vector<8x8xf32>, vector<8x8xf32> -> vector<8x8xf32>
    %c1_316 = arith.constant 1 : index
    %c0_317 = arith.constant 0 : index
    %c0_318 = arith.constant 0 : index
    %c0_319 = arith.constant 0 : index
    %479 = vector.load %arg18[%c1_316, %c0_317, %c0_318, %c0_319] : memref<2x4x8x32xf32, #tpu.memory_space<vmem>>, vector<1x1x8x32xf32>
    %480 = vector.shape_cast %479 : vector<1x1x8x32xf32> to vector<8x32xf32>
    %cst_320 = arith.constant dense<0.000000e+00> : vector<8x32xf32>
    %481 = tpu.matmul %478, %480, %cst_320 {dimension_numbers = #tpu.dot_dimension_numbers<[1], [0], [0], [1], [0, 0, 1, 1], [], []>} : vector<8x8xf32>, vector<8x32xf32>, vector<8x32xf32> -> vector<8x32xf32>
    %482 = arith.addf %442, %481 : vector<8x32xf32>
    %c1_321 = arith.constant 1 : index
    %c1_322 = arith.constant 1 : index
    %c0_323 = arith.constant 0 : index
    %c0_324 = arith.constant 0 : index
    %483 = vector.load %arg12[%c1_321, %c1_322, %c0_323, %c0_324] : memref<2x4x32x8xf32, #tpu.memory_space<vmem>>, vector<1x1x32x8xf32>
    %484 = vector.shape_cast %483 : vector<1x1x32x8xf32> to vector<32x8xf32>
    %cst_325 = arith.constant dense<0.000000e+00> : vector<8x8xf32>
    %485 = tpu.matmul %437, %484, %cst_325 {dimension_numbers = #tpu.dot_dimension_numbers<[1], [0], [0], [1], [0, 0, 1, 1], [], []>} : vector<8x32xf32>, vector<32x8xf32>, vector<8x8xf32> -> vector<8x8xf32>
    %c1_326 = arith.constant 1 : index
    %c1_327 = arith.constant 1 : index
    %c0_328 = arith.constant 0 : index
    %c0_329 = arith.constant 0 : index
    %486 = vector.load %arg13[%c1_326, %c1_327, %c0_328, %c0_329] : memref<2x4x1x8xf32, #tpu.memory_space<vmem>>, vector<1x1x1x8xf32>
    %487 = vector.shape_cast %486 : vector<1x1x1x8xf32> to vector<1x8xf32>
    %488 = vector.broadcast %487 : vector<1x8xf32> to vector<8x8xf32>
    %489 = arith.addf %485, %488 : vector<8x8xf32>
    %c1_330 = arith.constant 1 : index
    %c1_331 = arith.constant 1 : index
    %c0_332 = arith.constant 0 : index
    %c0_333 = arith.constant 0 : index
    %490 = vector.load %arg14[%c1_330, %c1_331, %c0_332, %c0_333] : memref<2x4x32x8xf32, #tpu.memory_space<vmem>>, vector<1x1x32x8xf32>
    %491 = vector.shape_cast %490 : vector<1x1x32x8xf32> to vector<32x8xf32>
    %cst_334 = arith.constant dense<0.000000e+00> : vector<8x8xf32>
    %492 = tpu.matmul %437, %491, %cst_334 {dimension_numbers = #tpu.dot_dimension_numbers<[1], [0], [0], [1], [0, 0, 1, 1], [], []>} : vector<8x32xf32>, vector<32x8xf32>, vector<8x8xf32> -> vector<8x8xf32>
    %c1_335 = arith.constant 1 : index
    %c1_336 = arith.constant 1 : index
    %c0_337 = arith.constant 0 : index
    %c0_338 = arith.constant 0 : index
    %493 = vector.load %arg15[%c1_335, %c1_336, %c0_337, %c0_338] : memref<2x4x1x8xf32, #tpu.memory_space<vmem>>, vector<1x1x1x8xf32>
    %494 = vector.shape_cast %493 : vector<1x1x1x8xf32> to vector<1x8xf32>
    %495 = vector.broadcast %494 : vector<1x8xf32> to vector<8x8xf32>
    %496 = arith.addf %492, %495 : vector<8x8xf32>
    %c1_339 = arith.constant 1 : index
    %c1_340 = arith.constant 1 : index
    %c0_341 = arith.constant 0 : index
    %c0_342 = arith.constant 0 : index
    %497 = vector.load %arg16[%c1_339, %c1_340, %c0_341, %c0_342] : memref<2x4x32x8xf32, #tpu.memory_space<vmem>>, vector<1x1x32x8xf32>
    %498 = vector.shape_cast %497 : vector<1x1x32x8xf32> to vector<32x8xf32>
    %cst_343 = arith.constant dense<0.000000e+00> : vector<8x8xf32>
    %499 = tpu.matmul %437, %498, %cst_343 {dimension_numbers = #tpu.dot_dimension_numbers<[1], [0], [0], [1], [0, 0, 1, 1], [], []>} : vector<8x32xf32>, vector<32x8xf32>, vector<8x8xf32> -> vector<8x8xf32>
    %c1_344 = arith.constant 1 : index
    %c1_345 = arith.constant 1 : index
    %c0_346 = arith.constant 0 : index
    %c0_347 = arith.constant 0 : index
    %500 = vector.load %arg17[%c1_344, %c1_345, %c0_346, %c0_347] : memref<2x4x1x8xf32, #tpu.memory_space<vmem>>, vector<1x1x1x8xf32>
    %501 = vector.shape_cast %500 : vector<1x1x1x8xf32> to vector<1x8xf32>
    %502 = vector.broadcast %501 : vector<1x8xf32> to vector<8x8xf32>
    %503 = arith.addf %499, %502 : vector<8x8xf32>
    %cst_348 = arith.constant dense<0.000000e+00> : vector<8x8xf32>
    %504 = tpu.matmul %489, %496, %cst_348 {dimension_numbers = #tpu.dot_dimension_numbers<[1], [1], [0], [0], [0, 0, 1, 0], [], []>} : vector<8x8xf32>, vector<8x8xf32>, vector<8x8xf32> -> vector<8x8xf32>
    %cst_349 = arith.constant 0.353553385 : f32
    %505 = vector.broadcast %cst_349 : f32 to vector<8x8xf32>
    %506 = arith.mulf %504, %505 : vector<8x8xf32>
    %507 = arith.addf %506, %389 : vector<8x8xf32>
    %cst_350 = arith.constant dense<0xFF800000> : vector<8xf32>
    %508 = vector.multi_reduction <maximumf>, %507, %cst_350 [1] : vector<8x8xf32> to vector<8xf32>
    %509 = vector.shape_cast %508 : vector<8xf32> to vector<8x1xf32>
    %510 = vector.broadcast %509 : vector<8x1xf32> to vector<8x8xf32>
    %511 = arith.subf %507, %510 : vector<8x8xf32>
    %512 = math.exp %511 : vector<8x8xf32>
    %cst_351 = arith.constant dense<0.000000e+00> : vector<8xf32>
    %513 = vector.multi_reduction <add>, %512, %cst_351 [1] : vector<8x8xf32> to vector<8xf32>
    %514 = vector.shape_cast %513 : vector<8xf32> to vector<8x1xf32>
    %515 = tpu.reciprocal %514 {approx = true} : vector<8x1xf32> -> vector<8x1xf32>
    %516 = vector.broadcast %515 : vector<8x1xf32> to vector<8x8xf32>
    %517 = arith.mulf %512, %516 : vector<8x8xf32>
    %cst_352 = arith.constant dense<0.000000e+00> : vector<8x8xf32>
    %518 = tpu.matmul %517, %503, %cst_352 {dimension_numbers = #tpu.dot_dimension_numbers<[1], [0], [0], [1], [0, 0, 1, 1], [], []>} : vector<8x8xf32>, vector<8x8xf32>, vector<8x8xf32> -> vector<8x8xf32>
    %c1_353 = arith.constant 1 : index
    %c1_354 = arith.constant 1 : index
    %c0_355 = arith.constant 0 : index
    %c0_356 = arith.constant 0 : index
    %519 = vector.load %arg18[%c1_353, %c1_354, %c0_355, %c0_356] : memref<2x4x8x32xf32, #tpu.memory_space<vmem>>, vector<1x1x8x32xf32>
    %520 = vector.shape_cast %519 : vector<1x1x8x32xf32> to vector<8x32xf32>
    %cst_357 = arith.constant dense<0.000000e+00> : vector<8x32xf32>
    %521 = tpu.matmul %518, %520, %cst_357 {dimension_numbers = #tpu.dot_dimension_numbers<[1], [0], [0], [1], [0, 0, 1, 1], [], []>} : vector<8x8xf32>, vector<8x32xf32>, vector<8x32xf32> -> vector<8x32xf32>
    %522 = arith.addf %482, %521 : vector<8x32xf32>
    %c1_358 = arith.constant 1 : index
    %c2_359 = arith.constant 2 : index
    %c0_360 = arith.constant 0 : index
    %c0_361 = arith.constant 0 : index
    %523 = vector.load %arg12[%c1_358, %c2_359, %c0_360, %c0_361] : memref<2x4x32x8xf32, #tpu.memory_space<vmem>>, vector<1x1x32x8xf32>
    %524 = vector.shape_cast %523 : vector<1x1x32x8xf32> to vector<32x8xf32>
    %cst_362 = arith.constant dense<0.000000e+00> : vector<8x8xf32>
    %525 = tpu.matmul %437, %524, %cst_362 {dimension_numbers = #tpu.dot_dimension_numbers<[1], [0], [0], [1], [0, 0, 1, 1], [], []>} : vector<8x32xf32>, vector<32x8xf32>, vector<8x8xf32> -> vector<8x8xf32>
    %c1_363 = arith.constant 1 : index
    %c2_364 = arith.constant 2 : index
    %c0_365 = arith.constant 0 : index
    %c0_366 = arith.constant 0 : index
    %526 = vector.load %arg13[%c1_363, %c2_364, %c0_365, %c0_366] : memref<2x4x1x8xf32, #tpu.memory_space<vmem>>, vector<1x1x1x8xf32>
    %527 = vector.shape_cast %526 : vector<1x1x1x8xf32> to vector<1x8xf32>
    %528 = vector.broadcast %527 : vector<1x8xf32> to vector<8x8xf32>
    %529 = arith.addf %525, %528 : vector<8x8xf32>
    %c1_367 = arith.constant 1 : index
    %c2_368 = arith.constant 2 : index
    %c0_369 = arith.constant 0 : index
    %c0_370 = arith.constant 0 : index
    %530 = vector.load %arg14[%c1_367, %c2_368, %c0_369, %c0_370] : memref<2x4x32x8xf32, #tpu.memory_space<vmem>>, vector<1x1x32x8xf32>
    %531 = vector.shape_cast %530 : vector<1x1x32x8xf32> to vector<32x8xf32>
    %cst_371 = arith.constant dense<0.000000e+00> : vector<8x8xf32>
    %532 = tpu.matmul %437, %531, %cst_371 {dimension_numbers = #tpu.dot_dimension_numbers<[1], [0], [0], [1], [0, 0, 1, 1], [], []>} : vector<8x32xf32>, vector<32x8xf32>, vector<8x8xf32> -> vector<8x8xf32>
    %c1_372 = arith.constant 1 : index
    %c2_373 = arith.constant 2 : index
    %c0_374 = arith.constant 0 : index
    %c0_375 = arith.constant 0 : index
    %533 = vector.load %arg15[%c1_372, %c2_373, %c0_374, %c0_375] : memref<2x4x1x8xf32, #tpu.memory_space<vmem>>, vector<1x1x1x8xf32>
    %534 = vector.shape_cast %533 : vector<1x1x1x8xf32> to vector<1x8xf32>
    %535 = vector.broadcast %534 : vector<1x8xf32> to vector<8x8xf32>
    %536 = arith.addf %532, %535 : vector<8x8xf32>
    %c1_376 = arith.constant 1 : index
    %c2_377 = arith.constant 2 : index
    %c0_378 = arith.constant 0 : index
    %c0_379 = arith.constant 0 : index
    %537 = vector.load %arg16[%c1_376, %c2_377, %c0_378, %c0_379] : memref<2x4x32x8xf32, #tpu.memory_space<vmem>>, vector<1x1x32x8xf32>
    %538 = vector.shape_cast %537 : vector<1x1x32x8xf32> to vector<32x8xf32>
    %cst_380 = arith.constant dense<0.000000e+00> : vector<8x8xf32>
    %539 = tpu.matmul %437, %538, %cst_380 {dimension_numbers = #tpu.dot_dimension_numbers<[1], [0], [0], [1], [0, 0, 1, 1], [], []>} : vector<8x32xf32>, vector<32x8xf32>, vector<8x8xf32> -> vector<8x8xf32>
    %c1_381 = arith.constant 1 : index
    %c2_382 = arith.constant 2 : index
    %c0_383 = arith.constant 0 : index
    %c0_384 = arith.constant 0 : index
    %540 = vector.load %arg17[%c1_381, %c2_382, %c0_383, %c0_384] : memref<2x4x1x8xf32, #tpu.memory_space<vmem>>, vector<1x1x1x8xf32>
    %541 = vector.shape_cast %540 : vector<1x1x1x8xf32> to vector<1x8xf32>
    %542 = vector.broadcast %541 : vector<1x8xf32> to vector<8x8xf32>
    %543 = arith.addf %539, %542 : vector<8x8xf32>
    %cst_385 = arith.constant dense<0.000000e+00> : vector<8x8xf32>
    %544 = tpu.matmul %529, %536, %cst_385 {dimension_numbers = #tpu.dot_dimension_numbers<[1], [1], [0], [0], [0, 0, 1, 0], [], []>} : vector<8x8xf32>, vector<8x8xf32>, vector<8x8xf32> -> vector<8x8xf32>
    %cst_386 = arith.constant 0.353553385 : f32
    %545 = vector.broadcast %cst_386 : f32 to vector<8x8xf32>
    %546 = arith.mulf %544, %545 : vector<8x8xf32>
    %547 = arith.addf %546, %389 : vector<8x8xf32>
    %cst_387 = arith.constant dense<0xFF800000> : vector<8xf32>
    %548 = vector.multi_reduction <maximumf>, %547, %cst_387 [1] : vector<8x8xf32> to vector<8xf32>
    %549 = vector.shape_cast %548 : vector<8xf32> to vector<8x1xf32>
    %550 = vector.broadcast %549 : vector<8x1xf32> to vector<8x8xf32>
    %551 = arith.subf %547, %550 : vector<8x8xf32>
    %552 = math.exp %551 : vector<8x8xf32>
    %cst_388 = arith.constant dense<0.000000e+00> : vector<8xf32>
    %553 = vector.multi_reduction <add>, %552, %cst_388 [1] : vector<8x8xf32> to vector<8xf32>
    %554 = vector.shape_cast %553 : vector<8xf32> to vector<8x1xf32>
    %555 = tpu.reciprocal %554 {approx = true} : vector<8x1xf32> -> vector<8x1xf32>
    %556 = vector.broadcast %555 : vector<8x1xf32> to vector<8x8xf32>
    %557 = arith.mulf %552, %556 : vector<8x8xf32>
    %cst_389 = arith.constant dense<0.000000e+00> : vector<8x8xf32>
    %558 = tpu.matmul %557, %543, %cst_389 {dimension_numbers = #tpu.dot_dimension_numbers<[1], [0], [0], [1], [0, 0, 1, 1], [], []>} : vector<8x8xf32>, vector<8x8xf32>, vector<8x8xf32> -> vector<8x8xf32>
    %c1_390 = arith.constant 1 : index
    %c2_391 = arith.constant 2 : index
    %c0_392 = arith.constant 0 : index
    %c0_393 = arith.constant 0 : index
    %559 = vector.load %arg18[%c1_390, %c2_391, %c0_392, %c0_393] : memref<2x4x8x32xf32, #tpu.memory_space<vmem>>, vector<1x1x8x32xf32>
    %560 = vector.shape_cast %559 : vector<1x1x8x32xf32> to vector<8x32xf32>
    %cst_394 = arith.constant dense<0.000000e+00> : vector<8x32xf32>
    %561 = tpu.matmul %558, %560, %cst_394 {dimension_numbers = #tpu.dot_dimension_numbers<[1], [0], [0], [1], [0, 0, 1, 1], [], []>} : vector<8x8xf32>, vector<8x32xf32>, vector<8x32xf32> -> vector<8x32xf32>
    %562 = arith.addf %522, %561 : vector<8x32xf32>
    %c1_395 = arith.constant 1 : index
    %c3_396 = arith.constant 3 : index
    %c0_397 = arith.constant 0 : index
    %c0_398 = arith.constant 0 : index
    %563 = vector.load %arg12[%c1_395, %c3_396, %c0_397, %c0_398] : memref<2x4x32x8xf32, #tpu.memory_space<vmem>>, vector<1x1x32x8xf32>
    %564 = vector.shape_cast %563 : vector<1x1x32x8xf32> to vector<32x8xf32>
    %cst_399 = arith.constant dense<0.000000e+00> : vector<8x8xf32>
    %565 = tpu.matmul %437, %564, %cst_399 {dimension_numbers = #tpu.dot_dimension_numbers<[1], [0], [0], [1], [0, 0, 1, 1], [], []>} : vector<8x32xf32>, vector<32x8xf32>, vector<8x8xf32> -> vector<8x8xf32>
    %c1_400 = arith.constant 1 : index
    %c3_401 = arith.constant 3 : index
    %c0_402 = arith.constant 0 : index
    %c0_403 = arith.constant 0 : index
    %566 = vector.load %arg13[%c1_400, %c3_401, %c0_402, %c0_403] : memref<2x4x1x8xf32, #tpu.memory_space<vmem>>, vector<1x1x1x8xf32>
    %567 = vector.shape_cast %566 : vector<1x1x1x8xf32> to vector<1x8xf32>
    %568 = vector.broadcast %567 : vector<1x8xf32> to vector<8x8xf32>
    %569 = arith.addf %565, %568 : vector<8x8xf32>
    %c1_404 = arith.constant 1 : index
    %c3_405 = arith.constant 3 : index
    %c0_406 = arith.constant 0 : index
    %c0_407 = arith.constant 0 : index
    %570 = vector.load %arg14[%c1_404, %c3_405, %c0_406, %c0_407] : memref<2x4x32x8xf32, #tpu.memory_space<vmem>>, vector<1x1x32x8xf32>
    %571 = vector.shape_cast %570 : vector<1x1x32x8xf32> to vector<32x8xf32>
    %cst_408 = arith.constant dense<0.000000e+00> : vector<8x8xf32>
    %572 = tpu.matmul %437, %571, %cst_408 {dimension_numbers = #tpu.dot_dimension_numbers<[1], [0], [0], [1], [0, 0, 1, 1], [], []>} : vector<8x32xf32>, vector<32x8xf32>, vector<8x8xf32> -> vector<8x8xf32>
    %c1_409 = arith.constant 1 : index
    %c3_410 = arith.constant 3 : index
    %c0_411 = arith.constant 0 : index
    %c0_412 = arith.constant 0 : index
    %573 = vector.load %arg15[%c1_409, %c3_410, %c0_411, %c0_412] : memref<2x4x1x8xf32, #tpu.memory_space<vmem>>, vector<1x1x1x8xf32>
    %574 = vector.shape_cast %573 : vector<1x1x1x8xf32> to vector<1x8xf32>
    %575 = vector.broadcast %574 : vector<1x8xf32> to vector<8x8xf32>
    %576 = arith.addf %572, %575 : vector<8x8xf32>
    %c1_413 = arith.constant 1 : index
    %c3_414 = arith.constant 3 : index
    %c0_415 = arith.constant 0 : index
    %c0_416 = arith.constant 0 : index
    %577 = vector.load %arg16[%c1_413, %c3_414, %c0_415, %c0_416] : memref<2x4x32x8xf32, #tpu.memory_space<vmem>>, vector<1x1x32x8xf32>
    %578 = vector.shape_cast %577 : vector<1x1x32x8xf32> to vector<32x8xf32>
    %cst_417 = arith.constant dense<0.000000e+00> : vector<8x8xf32>
    %579 = tpu.matmul %437, %578, %cst_417 {dimension_numbers = #tpu.dot_dimension_numbers<[1], [0], [0], [1], [0, 0, 1, 1], [], []>} : vector<8x32xf32>, vector<32x8xf32>, vector<8x8xf32> -> vector<8x8xf32>
    %c1_418 = arith.constant 1 : index
    %c3_419 = arith.constant 3 : index
    %c0_420 = arith.constant 0 : index
    %c0_421 = arith.constant 0 : index
    %580 = vector.load %arg17[%c1_418, %c3_419, %c0_420, %c0_421] : memref<2x4x1x8xf32, #tpu.memory_space<vmem>>, vector<1x1x1x8xf32>
    %581 = vector.shape_cast %580 : vector<1x1x1x8xf32> to vector<1x8xf32>
    %582 = vector.broadcast %581 : vector<1x8xf32> to vector<8x8xf32>
    %583 = arith.addf %579, %582 : vector<8x8xf32>
    %cst_422 = arith.constant dense<0.000000e+00> : vector<8x8xf32>
    %584 = tpu.matmul %569, %576, %cst_422 {dimension_numbers = #tpu.dot_dimension_numbers<[1], [1], [0], [0], [0, 0, 1, 0], [], []>} : vector<8x8xf32>, vector<8x8xf32>, vector<8x8xf32> -> vector<8x8xf32>
    %cst_423 = arith.constant 0.353553385 : f32
    %585 = vector.broadcast %cst_423 : f32 to vector<8x8xf32>
    %586 = arith.mulf %584, %585 : vector<8x8xf32>
    %587 = arith.addf %586, %389 : vector<8x8xf32>
    %cst_424 = arith.constant dense<0xFF800000> : vector<8xf32>
    %588 = vector.multi_reduction <maximumf>, %587, %cst_424 [1] : vector<8x8xf32> to vector<8xf32>
    %589 = vector.shape_cast %588 : vector<8xf32> to vector<8x1xf32>
    %590 = vector.broadcast %589 : vector<8x1xf32> to vector<8x8xf32>
    %591 = arith.subf %587, %590 : vector<8x8xf32>
    %592 = math.exp %591 : vector<8x8xf32>
    %cst_425 = arith.constant dense<0.000000e+00> : vector<8xf32>
    %593 = vector.multi_reduction <add>, %592, %cst_425 [1] : vector<8x8xf32> to vector<8xf32>
    %594 = vector.shape_cast %593 : vector<8xf32> to vector<8x1xf32>
    %595 = tpu.reciprocal %594 {approx = true} : vector<8x1xf32> -> vector<8x1xf32>
    %596 = vector.broadcast %595 : vector<8x1xf32> to vector<8x8xf32>
    %597 = arith.mulf %592, %596 : vector<8x8xf32>
    %cst_426 = arith.constant dense<0.000000e+00> : vector<8x8xf32>
    %598 = tpu.matmul %597, %583, %cst_426 {dimension_numbers = #tpu.dot_dimension_numbers<[1], [0], [0], [1], [0, 0, 1, 1], [], []>} : vector<8x8xf32>, vector<8x8xf32>, vector<8x8xf32> -> vector<8x8xf32>
    %c1_427 = arith.constant 1 : index
    %c3_428 = arith.constant 3 : index
    %c0_429 = arith.constant 0 : index
    %c0_430 = arith.constant 0 : index
    %599 = vector.load %arg18[%c1_427, %c3_428, %c0_429, %c0_430] : memref<2x4x8x32xf32, #tpu.memory_space<vmem>>, vector<1x1x8x32xf32>
    %600 = vector.shape_cast %599 : vector<1x1x8x32xf32> to vector<8x32xf32>
    %cst_431 = arith.constant dense<0.000000e+00> : vector<8x32xf32>
    %601 = tpu.matmul %598, %600, %cst_431 {dimension_numbers = #tpu.dot_dimension_numbers<[1], [0], [0], [1], [0, 0, 1, 1], [], []>} : vector<8x8xf32>, vector<8x32xf32>, vector<8x32xf32> -> vector<8x32xf32>
    %602 = arith.addf %562, %601 : vector<8x32xf32>
    %603 = arith.addf %384, %602 : vector<8x32xf32>
    %604 = vector.broadcast %380 : vector<8x1xf32> to vector<8x32xf32>
    %605 = arith.mulf %603, %604 : vector<8x32xf32>
    %c1_432 = arith.constant 1 : index
    %c0_433 = arith.constant 0 : index
    %c0_434 = arith.constant 0 : index
    %606 = vector.load %arg20[%c1_432, %c0_433, %c0_434] : memref<2x1x32xf32, #tpu.memory_space<vmem>>, vector<1x1x32xf32>
    %607 = vector.shape_cast %606 : vector<1x1x32xf32> to vector<1x32xf32>
    %c1_435 = arith.constant 1 : index
    %c0_436 = arith.constant 0 : index
    %c0_437 = arith.constant 0 : index
    %608 = vector.load %arg21[%c1_435, %c0_436, %c0_437] : memref<2x1x32xf32, #tpu.memory_space<vmem>>, vector<1x1x32xf32>
    %609 = vector.shape_cast %608 : vector<1x1x32xf32> to vector<1x32xf32>
    %cst_438 = arith.constant dense<0.000000e+00> : vector<8xf32>
    %610 = vector.multi_reduction <add>, %605, %cst_438 [1] : vector<8x32xf32> to vector<8xf32>
    %611 = vector.shape_cast %610 : vector<8xf32> to vector<8x1xf32>
    %cst_439 = arith.constant 3.200000e+01 : f32
    %612 = vector.broadcast %cst_439 : f32 to vector<8x1xf32>
    %613 = arith.divf %611, %612 : vector<8x1xf32>
    %614 = vector.broadcast %613 : vector<8x1xf32> to vector<8x32xf32>
    %615 = arith.subf %605, %614 : vector<8x32xf32>
    %616 = arith.mulf %615, %615 : vector<8x32xf32>
    %cst_440 = arith.constant dense<0.000000e+00> : vector<8xf32>
    %617 = vector.multi_reduction <add>, %616, %cst_440 [1] : vector<8x32xf32> to vector<8xf32>
    %618 = vector.shape_cast %617 : vector<8xf32> to vector<8x1xf32>
    %cst_441 = arith.constant 3.200000e+01 : f32
    %619 = vector.broadcast %cst_441 : f32 to vector<8x1xf32>
    %620 = arith.divf %618, %619 : vector<8x1xf32>
    %cst_442 = arith.constant 9.99999997E-7 : f32
    %621 = vector.broadcast %cst_442 : f32 to vector<8x1xf32>
    %622 = arith.addf %620, %621 : vector<8x1xf32>
    %623 = math.rsqrt %622 : vector<8x1xf32>
    %624 = vector.broadcast %623 : vector<8x1xf32> to vector<8x32xf32>
    %625 = arith.mulf %615, %624 : vector<8x32xf32>
    %626 = vector.broadcast %607 : vector<1x32xf32> to vector<8x32xf32>
    %627 = arith.mulf %625, %626 : vector<8x32xf32>
    %628 = vector.broadcast %609 : vector<1x32xf32> to vector<8x32xf32>
    %629 = arith.addf %627, %628 : vector<8x32xf32>
    %630 = vector.broadcast %380 : vector<8x1xf32> to vector<8x32xf32>
    %631 = arith.mulf %629, %630 : vector<8x32xf32>
    %c1_443 = arith.constant 1 : index
    %c0_444 = arith.constant 0 : index
    %c0_445 = arith.constant 0 : index
    %632 = vector.load %arg22[%c1_443, %c0_444, %c0_445] : memref<2x1x32xf32, #tpu.memory_space<vmem>>, vector<1x1x32xf32>
    %633 = vector.shape_cast %632 : vector<1x1x32xf32> to vector<1x32xf32>
    %c1_446 = arith.constant 1 : index
    %c0_447 = arith.constant 0 : index
    %c0_448 = arith.constant 0 : index
    %634 = vector.load %arg23[%c1_446, %c0_447, %c0_448] : memref<2x1x32xf32, #tpu.memory_space<vmem>>, vector<1x1x32xf32>
    %635 = vector.shape_cast %634 : vector<1x1x32xf32> to vector<1x32xf32>
    %c1_449 = arith.constant 1 : index
    %c0_450 = arith.constant 0 : index
    %c0_451 = arith.constant 0 : index
    %636 = vector.load %arg24[%c1_449, %c0_450, %c0_451] : memref<2x1x32xf32, #tpu.memory_space<vmem>>, vector<1x1x32xf32>
    %637 = vector.shape_cast %636 : vector<1x1x32xf32> to vector<1x32xf32>
    %c1_452 = arith.constant 1 : index
    %c0_453 = arith.constant 0 : index
    %c0_454 = arith.constant 0 : index
    %638 = vector.load %arg25[%c1_452, %c0_453, %c0_454] : memref<2x1x32xf32, #tpu.memory_space<vmem>>, vector<1x1x32xf32>
    %639 = vector.shape_cast %638 : vector<1x1x32xf32> to vector<1x32xf32>
    %640 = vector.broadcast %0 : vector<8x1xf32> to vector<8x32xf32>
    %641 = vector.broadcast %633 : vector<1x32xf32> to vector<8x32xf32>
    %642 = arith.mulf %640, %641 : vector<8x32xf32>
    %643 = vector.broadcast %635 : vector<1x32xf32> to vector<8x32xf32>
    %644 = arith.addf %642, %643 : vector<8x32xf32>
    %645 = vector.broadcast %0 : vector<8x1xf32> to vector<8x32xf32>
    %646 = vector.broadcast %637 : vector<1x32xf32> to vector<8x32xf32>
    %647 = arith.mulf %645, %646 : vector<8x32xf32>
    %648 = vector.broadcast %639 : vector<1x32xf32> to vector<8x32xf32>
    %649 = arith.addf %647, %648 : vector<8x32xf32>
    %650 = arith.mulf %631, %644 : vector<8x32xf32>
    %651 = arith.addf %650, %649 : vector<8x32xf32>
    %c1_455 = arith.constant 1 : index
    %c0_456 = arith.constant 0 : index
    %c0_457 = arith.constant 0 : index
    %652 = vector.load %arg26[%c1_455, %c0_456, %c0_457] : memref<2x32x128xf32, #tpu.memory_space<vmem>>, vector<1x32x128xf32>
    %653 = vector.shape_cast %652 : vector<1x32x128xf32> to vector<32x128xf32>
    %cst_458 = arith.constant dense<0.000000e+00> : vector<8x128xf32>
    %654 = tpu.matmul %651, %653, %cst_458 {dimension_numbers = #tpu.dot_dimension_numbers<[1], [0], [0], [1], [0, 0, 1, 1], [], []>} : vector<8x32xf32>, vector<32x128xf32>, vector<8x128xf32> -> vector<8x128xf32>
    %c1_459 = arith.constant 1 : index
    %c0_460 = arith.constant 0 : index
    %c0_461 = arith.constant 0 : index
    %655 = vector.load %arg27[%c1_459, %c0_460, %c0_461] : memref<2x1x128xf32, #tpu.memory_space<vmem>>, vector<1x1x128xf32>
    %656 = vector.shape_cast %655 : vector<1x1x128xf32> to vector<1x128xf32>
    %657 = vector.broadcast %656 : vector<1x128xf32> to vector<8x128xf32>
    %658 = arith.addf %654, %657 : vector<8x128xf32>
    %cst_462 = arith.constant 0.707106769 : f32
    %659 = vector.broadcast %cst_462 : f32 to vector<8x128xf32>
    %660 = arith.mulf %658, %659 : vector<8x128xf32>
    %661 = math.absf %660 : vector<8x128xf32>
    %cst_463 = arith.constant 0.327591091 : f32
    %662 = vector.broadcast %cst_463 : f32 to vector<8x128xf32>
    %663 = arith.mulf %662, %661 : vector<8x128xf32>
    %cst_464 = arith.constant 1.000000e+00 : f32
    %664 = vector.broadcast %cst_464 : f32 to vector<8x128xf32>
    %665 = arith.addf %664, %663 : vector<8x128xf32>
    %cst_465 = arith.constant 1.000000e+00 : f32
    %666 = vector.broadcast %cst_465 : f32 to vector<8x128xf32>
    %667 = arith.divf %666, %665 : vector<8x128xf32>
    %cst_466 = arith.constant 1.06140542 : f32
    %668 = vector.broadcast %cst_466 : f32 to vector<8x128xf32>
    %669 = arith.mulf %667, %668 : vector<8x128xf32>
    %cst_467 = arith.constant -1.45315206 : f32
    %670 = vector.broadcast %cst_467 : f32 to vector<8x128xf32>
    %671 = arith.addf %670, %669 : vector<8x128xf32>
    %672 = arith.mulf %667, %671 : vector<8x128xf32>
    %cst_468 = arith.constant 1.42141378 : f32
    %673 = vector.broadcast %cst_468 : f32 to vector<8x128xf32>
    %674 = arith.addf %673, %672 : vector<8x128xf32>
    %675 = arith.mulf %667, %674 : vector<8x128xf32>
    %cst_469 = arith.constant -0.284496725 : f32
    %676 = vector.broadcast %cst_469 : f32 to vector<8x128xf32>
    %677 = arith.addf %676, %675 : vector<8x128xf32>
    %678 = arith.mulf %667, %677 : vector<8x128xf32>
    %cst_470 = arith.constant 0.254829586 : f32
    %679 = vector.broadcast %cst_470 : f32 to vector<8x128xf32>
    %680 = arith.addf %679, %678 : vector<8x128xf32>
    %681 = arith.mulf %667, %680 : vector<8x128xf32>
    %cst_471 = arith.constant 0.000000e+00 : f32
    %682 = vector.broadcast %cst_471 : f32 to vector<8x128xf32>
    %683 = arith.subf %682, %661 : vector<8x128xf32>
    %684 = arith.mulf %683, %661 : vector<8x128xf32>
    %685 = math.exp %684 : vector<8x128xf32>
    %686 = arith.mulf %681, %685 : vector<8x128xf32>
    %cst_472 = arith.constant 1.000000e+00 : f32
    %687 = vector.broadcast %cst_472 : f32 to vector<8x128xf32>
    %688 = arith.subf %687, %686 : vector<8x128xf32>
    %cst_473 = arith.constant 0.000000e+00 : f32
    %689 = vector.broadcast %cst_473 : f32 to vector<8x128xf32>
    %690 = arith.cmpf oge, %660, %689 : vector<8x128xf32>
    %cst_474 = arith.constant 0.000000e+00 : f32
    %691 = vector.broadcast %cst_474 : f32 to vector<8x128xf32>
    %692 = arith.subf %691, %688 : vector<8x128xf32>
    %693 = arith.select %690, %688, %692 : vector<8x128xi1>, vector<8x128xf32>
    %cst_475 = arith.constant 5.000000e-01 : f32
    %694 = vector.broadcast %cst_475 : f32 to vector<8x128xf32>
    %695 = arith.mulf %694, %658 : vector<8x128xf32>
    %cst_476 = arith.constant 1.000000e+00 : f32
    %696 = vector.broadcast %cst_476 : f32 to vector<8x128xf32>
    %697 = arith.addf %696, %693 : vector<8x128xf32>
    %698 = arith.mulf %695, %697 : vector<8x128xf32>
    %c1_477 = arith.constant 1 : index
    %c0_478 = arith.constant 0 : index
    %c0_479 = arith.constant 0 : index
    %699 = vector.load %arg28[%c1_477, %c0_478, %c0_479] : memref<2x128x32xf32, #tpu.memory_space<vmem>>, vector<1x128x32xf32>
    %700 = vector.shape_cast %699 : vector<1x128x32xf32> to vector<128x32xf32>
    %cst_480 = arith.constant dense<0.000000e+00> : vector<8x32xf32>
    %701 = tpu.matmul %698, %700, %cst_480 {dimension_numbers = #tpu.dot_dimension_numbers<[1], [0], [0], [1], [0, 0, 1, 1], [], []>} : vector<8x128xf32>, vector<128x32xf32>, vector<8x32xf32> -> vector<8x32xf32>
    %c1_481 = arith.constant 1 : index
    %c0_482 = arith.constant 0 : index
    %c0_483 = arith.constant 0 : index
    %702 = vector.load %arg29[%c1_481, %c0_482, %c0_483] : memref<2x1x32xf32, #tpu.memory_space<vmem>>, vector<1x1x32xf32>
    %703 = vector.shape_cast %702 : vector<1x1x32xf32> to vector<1x32xf32>
    %704 = vector.broadcast %703 : vector<1x32xf32> to vector<8x32xf32>
    %705 = arith.addf %701, %704 : vector<8x32xf32>
    %706 = arith.addf %603, %705 : vector<8x32xf32>
    %cst_484 = arith.constant 1.000000e+00 : f32
    %707 = vector.broadcast %cst_484 : f32 to vector<8x1xf32>
    %708 = vector.broadcast %380 : vector<8x1xf32> to vector<8x32xf32>
    %709 = arith.mulf %706, %708 : vector<8x32xf32>
    %710 = arith.addf %358, %707 : vector<8x1xf32>
    %cst_485 = arith.constant 9.900000e-01 : f32
    %711 = vector.broadcast %cst_485 : f32 to vector<8x1xf32>
    %712 = arith.cmpf ogt, %710, %711 : vector<8x1xf32>
    %cst_486 = arith.constant 1.000000e+00 : f32
    %cst_487 = arith.constant 0.000000e+00 : f32
    %713 = vector.broadcast %cst_486 : f32 to vector<8x1xf32>
    %714 = vector.broadcast %cst_487 : f32 to vector<8x1xf32>
    %715 = arith.select %712, %713, %714 : vector<8x1xi1>, vector<8x1xf32>
    %716 = arith.mulf %715, %380 : vector<8x1xf32>
    %717 = vector.broadcast %375 : vector<8x1xf32> to vector<8x32xf32>
    %718 = arith.mulf %709, %717 : vector<8x32xf32>
    %719 = vector.broadcast %716 : vector<8x1xf32> to vector<8x32xf32>
    %720 = arith.mulf %718, %719 : vector<8x32xf32>
    %cst_488 = arith.constant 9.900000e-01 : f32
    %721 = vector.broadcast %cst_488 : f32 to vector<8x1xf32>
    %722 = arith.cmpf olt, %710, %721 : vector<8x1xf32>
    %cst_489 = arith.constant 1.000000e+00 : f32
    %cst_490 = arith.constant 0.000000e+00 : f32
    %723 = vector.broadcast %cst_489 : f32 to vector<8x1xf32>
    %724 = vector.broadcast %cst_490 : f32 to vector<8x1xf32>
    %725 = arith.select %722, %723, %724 : vector<8x1xi1>, vector<8x1xf32>
    %726 = vector.broadcast %707 : vector<8x1xf32> to vector<8x32xf32>
    %727 = arith.mulf %709, %726 : vector<8x32xf32>
    %728 = vector.broadcast %725 : vector<8x1xf32> to vector<8x32xf32>
    %729 = arith.mulf %727, %728 : vector<8x32xf32>
    %730 = arith.addf %382, %720 : vector<8x32xf32>
    %731 = arith.addf %730, %729 : vector<8x32xf32>
    %c0_491 = arith.constant 0 : index
    %c0_492 = arith.constant 0 : index
    %732 = vector.load %arg30[%c0_491, %c0_492] : memref<1x32xf32, #tpu.memory_space<vmem>>, vector<1x32xf32>
    %c0_493 = arith.constant 0 : index
    %c0_494 = arith.constant 0 : index
    %733 = vector.load %arg31[%c0_493, %c0_494] : memref<1x32xf32, #tpu.memory_space<vmem>>, vector<1x32xf32>
    %cst_495 = arith.constant dense<0.000000e+00> : vector<8xf32>
    %734 = vector.multi_reduction <add>, %731, %cst_495 [1] : vector<8x32xf32> to vector<8xf32>
    %735 = vector.shape_cast %734 : vector<8xf32> to vector<8x1xf32>
    %cst_496 = arith.constant 3.200000e+01 : f32
    %736 = vector.broadcast %cst_496 : f32 to vector<8x1xf32>
    %737 = arith.divf %735, %736 : vector<8x1xf32>
    %738 = vector.broadcast %737 : vector<8x1xf32> to vector<8x32xf32>
    %739 = arith.subf %731, %738 : vector<8x32xf32>
    %740 = arith.mulf %739, %739 : vector<8x32xf32>
    %cst_497 = arith.constant dense<0.000000e+00> : vector<8xf32>
    %741 = vector.multi_reduction <add>, %740, %cst_497 [1] : vector<8x32xf32> to vector<8xf32>
    %742 = vector.shape_cast %741 : vector<8xf32> to vector<8x1xf32>
    %cst_498 = arith.constant 3.200000e+01 : f32
    %743 = vector.broadcast %cst_498 : f32 to vector<8x1xf32>
    %744 = arith.divf %742, %743 : vector<8x1xf32>
    %cst_499 = arith.constant 9.99999997E-7 : f32
    %745 = vector.broadcast %cst_499 : f32 to vector<8x1xf32>
    %746 = arith.addf %744, %745 : vector<8x1xf32>
    %747 = math.rsqrt %746 : vector<8x1xf32>
    %748 = vector.broadcast %747 : vector<8x1xf32> to vector<8x32xf32>
    %749 = arith.mulf %739, %748 : vector<8x32xf32>
    %750 = vector.broadcast %732 : vector<1x32xf32> to vector<8x32xf32>
    %751 = arith.mulf %749, %750 : vector<8x32xf32>
    %752 = vector.broadcast %733 : vector<1x32xf32> to vector<8x32xf32>
    %753 = arith.addf %751, %752 : vector<8x32xf32>
    %c0_500 = arith.constant 0 : index
    %c0_501 = arith.constant 0 : index
    %754 = vector.load %arg32[%c0_500, %c0_501] : memref<32x10xf32, #tpu.memory_space<vmem>>, vector<32x10xf32>
    %cst_502 = arith.constant dense<0.000000e+00> : vector<8x10xf32>
    %755 = tpu.matmul %753, %754, %cst_502 {dimension_numbers = #tpu.dot_dimension_numbers<[1], [0], [0], [1], [0, 0, 1, 1], [], []>} : vector<8x32xf32>, vector<32x10xf32>, vector<8x10xf32> -> vector<8x10xf32>
    %c0_503 = arith.constant 0 : index
    %c0_504 = arith.constant 0 : index
    %756 = vector.load %arg33[%c0_503, %c0_504] : memref<1x10xf32, #tpu.memory_space<vmem>>, vector<1x10xf32>
    %757 = vector.broadcast %756 : vector<1x10xf32> to vector<8x10xf32>
    %758 = arith.addf %755, %757 : vector<8x10xf32>
    %c0_505 = arith.constant 0 : index
    %c0_506 = arith.constant 0 : index
    %759 = vector.load %arg34[%c0_505, %c0_506] : memref<8x10xf32, #tpu.memory_space<vmem>>, vector<8x10xf32>
    tpu.vector_store %arg34[%c0_505, %c0_506], %758 {strides = array<i32>} : memref<8x10xf32, #tpu.memory_space<vmem>>, vector<8x10xf32>,
    return
  }
  func.func @transform_0(%arg0: i32) -> (i32, i32) {
    %c0_i32 = arith.constant 0 : i32
    %c0_i32_0 = arith.constant 0 : i32
    return %arg0, %c0_i32 : i32, i32
  }
  func.func @transform_1(%arg0: i32) -> (i32, i32) {
    %c0_i32 = arith.constant 0 : i32
    %c0_i32_0 = arith.constant 0 : i32
    return %arg0, %c0_i32 : i32, i32
  }
  func.func @transform_2(%arg0: i32) -> (i32, i32) {
    %c0_i32 = arith.constant 0 : i32
    %c0_i32_0 = arith.constant 0 : i32
    %c0_i32_1 = arith.constant 0 : i32
    return %c0_i32, %c0_i32_0 : i32, i32
  }
  func.func @transform_3(%arg0: i32) -> (i32, i32) {
    %c0_i32 = arith.constant 0 : i32
    %c0_i32_0 = arith.constant 0 : i32
    %c0_i32_1 = arith.constant 0 : i32
    return %c0_i32, %c0_i32_0 : i32, i32
  }
  func.func @transform_4(%arg0: i32) -> (i32, i32) {
    %c0_i32 = arith.constant 0 : i32
    %c0_i32_0 = arith.constant 0 : i32
    %c0_i32_1 = arith.constant 0 : i32
    return %c0_i32, %c0_i32_0 : i32, i32
  }
  func.func @transform_5(%arg0: i32) -> (i32, i32, i32) {
    %c0_i32 = arith.constant 0 : i32
    %c0_i32_0 = arith.constant 0 : i32
    %c0_i32_1 = arith.constant 0 : i32
    %c0_i32_2 = arith.constant 0 : i32
    return %c0_i32, %c0_i32_0, %c0_i32_1 : i32, i32, i32
  }
  func.func @transform_6(%arg0: i32) -> (i32, i32, i32) {
    %c0_i32 = arith.constant 0 : i32
    %c0_i32_0 = arith.constant 0 : i32
    %c0_i32_1 = arith.constant 0 : i32
    %c0_i32_2 = arith.constant 0 : i32
    return %c0_i32, %c0_i32_0, %c0_i32_1 : i32, i32, i32
  }
  func.func @transform_7(%arg0: i32) -> (i32, i32, i32) {
    %c0_i32 = arith.constant 0 : i32
    %c0_i32_0 = arith.constant 0 : i32
    %c0_i32_1 = arith.constant 0 : i32
    %c0_i32_2 = arith.constant 0 : i32
    return %c0_i32, %c0_i32_0, %c0_i32_1 : i32, i32, i32
  }
  func.func @transform_8(%arg0: i32) -> (i32, i32, i32) {
    %c0_i32 = arith.constant 0 : i32
    %c0_i32_0 = arith.constant 0 : i32
    %c0_i32_1 = arith.constant 0 : i32
    %c0_i32_2 = arith.constant 0 : i32
    return %c0_i32, %c0_i32_0, %c0_i32_1 : i32, i32, i32
  }
  func.func @transform_9(%arg0: i32) -> (i32, i32, i32) {
    %c0_i32 = arith.constant 0 : i32
    %c0_i32_0 = arith.constant 0 : i32
    %c0_i32_1 = arith.constant 0 : i32
    %c0_i32_2 = arith.constant 0 : i32
    return %c0_i32, %c0_i32_0, %c0_i32_1 : i32, i32, i32
  }
  func.func @transform_10(%arg0: i32) -> (i32, i32, i32) {
    %c0_i32 = arith.constant 0 : i32
    %c0_i32_0 = arith.constant 0 : i32
    %c0_i32_1 = arith.constant 0 : i32
    %c0_i32_2 = arith.constant 0 : i32
    return %c0_i32, %c0_i32_0, %c0_i32_1 : i32, i32, i32
  }
  func.func @transform_11(%arg0: i32) -> (i32, i32, i32, i32) {
    %c0_i32 = arith.constant 0 : i32
    %c0_i32_0 = arith.constant 0 : i32
    %c0_i32_1 = arith.constant 0 : i32
    %c0_i32_2 = arith.constant 0 : i32
    %c0_i32_3 = arith.constant 0 : i32
    return %c0_i32, %c0_i32_0, %c0_i32_1, %c0_i32_2 : i32, i32, i32, i32
  }
  func.func @transform_12(%arg0: i32) -> (i32, i32, i32, i32) {
    %c0_i32 = arith.constant 0 : i32
    %c0_i32_0 = arith.constant 0 : i32
    %c0_i32_1 = arith.constant 0 : i32
    %c0_i32_2 = arith.constant 0 : i32
    %c0_i32_3 = arith.constant 0 : i32
    return %c0_i32, %c0_i32_0, %c0_i32_1, %c0_i32_2 : i32, i32, i32, i32
  }
  func.func @transform_13(%arg0: i32) -> (i32, i32, i32, i32) {
    %c0_i32 = arith.constant 0 : i32
    %c0_i32_0 = arith.constant 0 : i32
    %c0_i32_1 = arith.constant 0 : i32
    %c0_i32_2 = arith.constant 0 : i32
    %c0_i32_3 = arith.constant 0 : i32
    return %c0_i32, %c0_i32_0, %c0_i32_1, %c0_i32_2 : i32, i32, i32, i32
  }
  func.func @transform_14(%arg0: i32) -> (i32, i32, i32, i32) {
    %c0_i32 = arith.constant 0 : i32
    %c0_i32_0 = arith.constant 0 : i32
    %c0_i32_1 = arith.constant 0 : i32
    %c0_i32_2 = arith.constant 0 : i32
    %c0_i32_3 = arith.constant 0 : i32
    return %c0_i32, %c0_i32_0, %c0_i32_1, %c0_i32_2 : i32, i32, i32, i32
  }
  func.func @transform_15(%arg0: i32) -> (i32, i32, i32, i32) {
    %c0_i32 = arith.constant 0 : i32
    %c0_i32_0 = arith.constant 0 : i32
    %c0_i32_1 = arith.constant 0 : i32
    %c0_i32_2 = arith.constant 0 : i32
    %c0_i32_3 = arith.constant 0 : i32
    return %c0_i32, %c0_i32_0, %c0_i32_1, %c0_i32_2 : i32, i32, i32, i32
  }
  func.func @transform_16(%arg0: i32) -> (i32, i32, i32, i32) {
    %c0_i32 = arith.constant 0 : i32
    %c0_i32_0 = arith.constant 0 : i32
    %c0_i32_1 = arith.constant 0 : i32
    %c0_i32_2 = arith.constant 0 : i32
    %c0_i32_3 = arith.constant 0 : i32
    return %c0_i32, %c0_i32_0, %c0_i32_1, %c0_i32_2 : i32, i32, i32, i32
  }
  func.func @transform_17(%arg0: i32) -> (i32, i32, i32, i32) {
    %c0_i32 = arith.constant 0 : i32
    %c0_i32_0 = arith.constant 0 : i32
    %c0_i32_1 = arith.constant 0 : i32
    %c0_i32_2 = arith.constant 0 : i32
    %c0_i32_3 = arith.constant 0 : i32
    return %c0_i32, %c0_i32_0, %c0_i32_1, %c0_i32_2 : i32, i32, i32, i32
  }
  func.func @transform_18(%arg0: i32) -> (i32, i32, i32) {
    %c0_i32 = arith.constant 0 : i32
    %c0_i32_0 = arith.constant 0 : i32
    %c0_i32_1 = arith.constant 0 : i32
    %c0_i32_2 = arith.constant 0 : i32
    return %c0_i32, %c0_i32_0, %c0_i32_1 : i32, i32, i32
  }
  func.func @transform_19(%arg0: i32) -> (i32, i32, i32) {
    %c0_i32 = arith.constant 0 : i32
    %c0_i32_0 = arith.constant 0 : i32
    %c0_i32_1 = arith.constant 0 : i32
    %c0_i32_2 = arith.constant 0 : i32
    return %c0_i32, %c0_i32_0, %c0_i32_1 : i32, i32, i32
  }
  func.func @transform_20(%arg0: i32) -> (i32, i32, i32) {
    %c0_i32 = arith.constant 0 : i32
    %c0_i32_0 = arith.constant 0 : i32
    %c0_i32_1 = arith.constant 0 : i32
    %c0_i32_2 = arith.constant 0 : i32
    return %c0_i32, %c0_i32_0, %c0_i32_1 : i32, i32, i32
  }
  func.func @transform_21(%arg0: i32) -> (i32, i32, i32) {
    %c0_i32 = arith.constant 0 : i32
    %c0_i32_0 = arith.constant 0 : i32
    %c0_i32_1 = arith.constant 0 : i32
    %c0_i32_2 = arith.constant 0 : i32
    return %c0_i32, %c0_i32_0, %c0_i32_1 : i32, i32, i32
  }
  func.func @transform_22(%arg0: i32) -> (i32, i32, i32) {
    %c0_i32 = arith.constant 0 : i32
    %c0_i32_0 = arith.constant 0 : i32
    %c0_i32_1 = arith.constant 0 : i32
    %c0_i32_2 = arith.constant 0 : i32
    return %c0_i32, %c0_i32_0, %c0_i32_1 : i32, i32, i32
  }
  func.func @transform_23(%arg0: i32) -> (i32, i32, i32) {
    %c0_i32 = arith.constant 0 : i32
    %c0_i32_0 = arith.constant 0 : i32
    %c0_i32_1 = arith.constant 0 : i32
    %c0_i32_2 = arith.constant 0 : i32
    return %c0_i32, %c0_i32_0, %c0_i32_1 : i32, i32, i32
  }
  func.func @transform_24(%arg0: i32) -> (i32, i32, i32) {
    %c0_i32 = arith.constant 0 : i32
    %c0_i32_0 = arith.constant 0 : i32
    %c0_i32_1 = arith.constant 0 : i32
    %c0_i32_2 = arith.constant 0 : i32
    return %c0_i32, %c0_i32_0, %c0_i32_1 : i32, i32, i32
  }
  func.func @transform_25(%arg0: i32) -> (i32, i32, i32) {
    %c0_i32 = arith.constant 0 : i32
    %c0_i32_0 = arith.constant 0 : i32
    %c0_i32_1 = arith.constant 0 : i32
    %c0_i32_2 = arith.constant 0 : i32
    return %c0_i32, %c0_i32_0, %c0_i32_1 : i32, i32, i32
  }
  func.func @transform_26(%arg0: i32) -> (i32, i32, i32) {
    %c0_i32 = arith.constant 0 : i32
    %c0_i32_0 = arith.constant 0 : i32
    %c0_i32_1 = arith.constant 0 : i32
    %c0_i32_2 = arith.constant 0 : i32
    return %c0_i32, %c0_i32_0, %c0_i32_1 : i32, i32, i32
  }
  func.func @transform_27(%arg0: i32) -> (i32, i32, i32) {
    %c0_i32 = arith.constant 0 : i32
    %c0_i32_0 = arith.constant 0 : i32
    %c0_i32_1 = arith.constant 0 : i32
    %c0_i32_2 = arith.constant 0 : i32
    return %c0_i32, %c0_i32_0, %c0_i32_1 : i32, i32, i32
  }
  func.func @transform_28(%arg0: i32) -> (i32, i32, i32) {
    %c0_i32 = arith.constant 0 : i32
    %c0_i32_0 = arith.constant 0 : i32
    %c0_i32_1 = arith.constant 0 : i32
    %c0_i32_2 = arith.constant 0 : i32
    return %c0_i32, %c0_i32_0, %c0_i32_1 : i32, i32, i32
  }
  func.func @transform_29(%arg0: i32) -> (i32, i32) {
    %c0_i32 = arith.constant 0 : i32
    %c0_i32_0 = arith.constant 0 : i32
    %c0_i32_1 = arith.constant 0 : i32
    return %c0_i32, %c0_i32_0 : i32, i32
  }
  func.func @transform_30(%arg0: i32) -> (i32, i32) {
    %c0_i32 = arith.constant 0 : i32
    %c0_i32_0 = arith.constant 0 : i32
    %c0_i32_1 = arith.constant 0 : i32
    return %c0_i32, %c0_i32_0 : i32, i32
  }
  func.func @transform_31(%arg0: i32) -> (i32, i32) {
    %c0_i32 = arith.constant 0 : i32
    %c0_i32_0 = arith.constant 0 : i32
    %c0_i32_1 = arith.constant 0 : i32
    return %c0_i32, %c0_i32_0 : i32, i32
  }
  func.func @transform_32(%arg0: i32) -> (i32, i32) {
    %c0_i32 = arith.constant 0 : i32
    %c0_i32_0 = arith.constant 0 : i32
    %c0_i32_1 = arith.constant 0 : i32
    return %c0_i32, %c0_i32_0 : i32, i32
  }
  func.func @transform_33(%arg0: i32) -> (i32, i32) {
    %c0_i32 = arith.constant 0 : i32
    %c0_i32_0 = arith.constant 0 : i32
    return %arg0, %c0_i32 : i32, i32
  }
}

</mosaic_0001>

<bundles_post_ra>
// kernel: forward.1
= control target key start
LH: loop header
LB: loop body
LE: loop exit
PB: predicated region body
PF: predicated region fallthrough
CT: control target
= control target key end

     0   :  { %s7282_s6 = smov 1   ;;  %s7283_s10 = smov 2   ;;  %s8278_s0 = inlined_call_operand.smem [shape: u32[34], index: -1, kind: input, shape index: {}] }
   0x1   :  { %s7327_s5 = sld [smem:[%s8278_s0]]   ;;  %s7284_s14 = smov 3  }
   0x2   :  { %s7332_s9 = sld [smem:[%s8278_s0 + %s7282_s6]]   ;;  %s7285_s18 = smov 4  }
   0x3   :  { %s7337_s13 = sld [smem:[%s8278_s0 + %s7283_s10]]   ;;  %s7286_s22 = smov 5  }
   0x4   :  { %s7342_s17 = sld [smem:[%s8278_s0 + %s7284_s14]]   ;;  %s7287_s26 = smov 6  }
   0x5   :  { %s7347_s21 = sld [smem:[%s8278_s0 + %s7285_s18]]   ;;  %s7288_s30 = smov 7  }
   0x6   :  { %s7352_s25 = sld [smem:[%s8278_s0 + %s7286_s22]]   ;;  %s7289_s4 = smov 8  }
   0x7   :  { %8299 = sst [smem:[#allocation2_spill]] %s7327_s5  ;;  %s7290_s10 = smov 9  }
   0x8   :  { %8300 = sst [smem:[#allocation3_spill]] %s7332_s9  ;;  %s7291_s15 = smov 10  }
   0x9   :  { %s7357_s29 = sld [smem:[%s8278_s0 + %s7287_s26]]   ;;  %s7292_s20 = smov 11  }
   0xa   :  { %8301 = sst [smem:[#allocation4_spill]] %s7342_s17  ;;  %s7293_s26 = smov 12  }
   0xb   :  { %8302 = sst [smem:[#allocation5_spill]] %s7347_s21  ;;  %s7294_s1 = smov 13  }
   0xc   :  { %s7362_s3 = sld [smem:[%s8278_s0 + %s7288_s30]]   ;;  %s7295_s7 = smov 14  }
   0xd   :  { %s7367_s8 = sld [smem:[%s8278_s0 + %s7289_s4]]   ;;  %s7297_s22 = smov 16  }
   0xe   :  { %s7372_s14 = sld [smem:[%s8278_s0 + %s7290_s10]]   ;;  %s7298_s28 = smov 17  }
   0xf   :  { %s7377_s19 = sld [smem:[%s8278_s0 + %s7291_s15]]   ;;  %s7296_s15 = smov 15  }
  0x10   :  { %s7382_s24 = sld [smem:[%s8278_s0 + %s7292_s20]]  }
  0x11   :  { %s7387_s30 = sld [smem:[%s8278_s0 + %s7293_s26]]  }
  0x12   :  { %s7392_s6 = sld [smem:[%s8278_s0 + %s7294_s1]]  }
  0x13   :  { %s7397_s12 = sld [smem:[%s8278_s0 + %s7295_s7]]   ;;  %s7299_s7 = smov 18  }
  0x14   :  { %s7402_s20 = sld [smem:[%s8278_s0 + %s7296_s15]]   ;;  %s7300_s15 = smov 19  }
  0x15   :  { %s7407_s27 = sld [smem:[%s8278_s0 + %s7297_s22]]   ;;  %s7301_s22 = smov 20  }
  0x16   :  { %s7412_s4 = sld [smem:[%s8278_s0 + %s7298_s28]]   ;;  %s7302_s28 = smov 21  }
  0x17   :  { %8303 = sst [smem:[#allocation6_spill]] %s7387_s30 }
  0x18   :  { %s7417_s30 = sld [smem:[%s8278_s0 + %s7299_s7]]   ;;  %s7303_s7 = smov 22  }
  0x19   :  { %8304 = sst [smem:[#allocation7_spill]] %s7397_s12 }
  0x1a   :  { %s7422_s12 = sld [smem:[%s8278_s0 + %s7300_s15]]   ;;  %s7304_s15 = smov 23  }
  0x1b   :  { %8305 = sst [smem:[#allocation8_spill]] %s7407_s27 }
  0x1c   :  { %8306 = sst [smem:[#allocation9_spill]] %s7412_s4 }
  0x1d   :  { %s7427_s27 = sld [smem:[%s8278_s0 + %s7301_s22]]   ;;  %s7305_s22 = smov 24  }
  0x1e   :  { %8307 = sst [smem:[#allocation10_spill]] %s7417_s30 }
  0x1f   :  { %s7432_s4 = sld [smem:[%s8278_s0 + %s7302_s28]]   ;;  %s7306_s28 = smov 25  }
  0x20   :  { %8308 = sst [smem:[#allocation11_spill]] %s7422_s12 }
  0x21   :  { %s7437_s30 = sld [smem:[%s8278_s0 + %s7303_s7]]   ;;  %s7307_s7 = smov 26  }
  0x22   :  { %s7442_s12 = sld [smem:[%s8278_s0 + %s7304_s15]]   ;;  %s7308_s15 = smov 27  }
  0x23   :  { %8309 = sst [smem:[#allocation12_spill]] %s7427_s27 }
  0x24   :  { %s7447_s27 = sld [smem:[%s8278_s0 + %s7305_s22]]   ;;  %s7309_s22 = smov 28  }
  0x25   :  { %8310 = sst [smem:[#allocation13_spill]] %s7432_s4 }
  0x26   :  { %s7452_s4 = sld [smem:[%s8278_s0 + %s7306_s28]]   ;;  %s7310_s28 = smov 29  }
  0x27   :  { %8311 = sst [smem:[#allocation14_spill]] %s7437_s30 }
  0x28   :  { %8312 = sst [smem:[#allocation15_spill]] %s7442_s12 }
  0x29   :  { %s7457_s30 = sld [smem:[%s8278_s0 + %s7307_s7]]   ;;  %s7311_s7 = smov 30  }
  0x2a   :  { %8313 = sst [smem:[#allocation16_spill]] %s7447_s27 }
  0x2b   :  { %s7462_s12 = sld [smem:[%s8278_s0 + %s7308_s15]]   ;;  %s7312_s15 = smov 31  }
  0x2c   :  { %8314 = sst [smem:[#allocation17_spill]] %s7452_s4 }
  0x2d   :  { %s7467_s27 = sld [smem:[%s8278_s0 + %s7309_s22]]   ;;  %s7313_s22 = smov 32  }
  0x2e   :  { %s7472_s4 = sld [smem:[%s8278_s0 + %s7310_s28]]   ;;  %s7314_s28 = smov 33  }
  0x2f   :  { %8315 = sst [smem:[#allocation18_spill]] %s7457_s30 }
  0x30   :  { %s7477_s30 = sld [smem:[%s8278_s0 + %s7311_s7]]   ;;  %s7494_s7 = smov 0  }
  0x31   :  { %8316 = sst [smem:[#allocation19_spill]] %s7462_s12 }
  0x32   :  { %s7482_s12 = sld [smem:[%s8278_s0 + %s7312_s15]]  }
  0x33   :  { %8317 = sst [smem:[#allocation20_spill]] %s7467_s27 }
  0x34   :  { %8318 = sst [smem:[#allocation21_spill]] %s7472_s4 }
  0x35   :  { %s7487_s27 = sld [smem:[%s8278_s0 + %s7313_s22]]  }
  0x36   :  { %s7492_s4 = sld [smem:[%s8278_s0 + %s7314_s28]]  }
  0x37 LB: > { %s8319_s21 = sld [smem:[#allocation5_spill]]  ;;  %s6173_s10 = sadd.s32 4294967295, %s7280_s7   ;;  %s7280_s7 = sphi %s7494_s7, %s77_s7  }
  0x38   : > { %p6177_p0 = scmp.ge.s32.totalorder %s7280_s7, 1  ;;  %p930_p1 = scmp.lt.s32.totalorder %s7280_s7, 3 }
  0x3a   : > { %p931_p2 = pnand %p6177_p0, %p930_p1 }
  0x3b   : > { %p1017_p3 = scmp.lt.s32.totalorder (!%p931_p2), %s6173_s10, 1  ;;  %s8320_s5 = sld [smem:[#allocation2_spill]] (!%p931_p2) }
  0x3c   : > { %934 = sbr.rel (%p931_p2) target bundleno = 10931 (0x2ab3), region = 152  ;;  %s8321_s17 = sld [smem:[#allocation4_spill]] (!%p931_p2) }
  0x3d   : > { %s8322_s9 = sld [smem:[#allocation3_spill]] (!%p931_p2) }
  0x3e   : > { %s8323_s18 = sld [smem:[#allocation7_spill]] (!%p931_p2) }
  0x3f   : > { %s8324_s22 = sld [smem:[#allocation6_spill]] (!%p931_p2) }
  0x40   : > { %s8325_s23 = sld [smem:[#allocation8_spill]] (!%p931_p2) }
  0x41   : > { %v1053_v0 = vld [vmem:[%s8319_s21 + $0x78] sm:$0xff]  ;;  %v7315_v1 = vmov 0.0   ;;  %v1052_v2 = vld [vmem:[%s8319_s21 + $0x70] sm:$0xff]  ;;  %s8341_s10 = smov (!%p1017_p3, %s6173_s10), 1  ;;  %v7316_v3 = vmov 0   ;;  %v1051_v4 = vld [vmem:[%s8319_s21 + $0x68] sm:$0xff] }
  0x42   : > { %1067 = vmatprep.subr.mxu0 %v7315_v1  ;;  %6675 = vmatprep.subr.mxu1 %v7315_v1  ;;  %s6453_s0 = sshll.u32 %s8341_s10, 4  ;;  %v1050_v5 = vld [vmem:[%s8319_s21 + $0x60] sm:$0xff]  ;;  %vm1063_vm0 = vcmask 523264   ;;  %v1049_v6 = vld [vmem:[%s8319_s21 + $0x58] sm:$0xff]  ;;  %v1048_v9 = vld [vmem:[%s8319_s21 + $0x50] sm:$0xff]  ;;  %vm1225_vm1 = vcmask 261120  }
  0x43   : > { %1068 = vmatpush1.msra.mxu0 %v1053_v0  ;;  %7217 = vset.pattern.permute.xlu0 %v7316_v3  ;;  %s7514_s11 = scalar_lea.vmem %s8320_s5, %s6453_s0  ;;  %v7520_v8 = vld [vmem:[%s7337_s13] sm:$0xff]  ;;  %v1047_v10 = vld [vmem:[%s8319_s21 + $0x48] sm:$0xff]  ;;  %v1045_v12 = vld [vmem:[%s8319_s21 + $0x38] sm:$0xff]  ;;  %s8294_s15 = sshll.u32 %s8341_s10, 3  ;;  %vm1144_vm2 = vcmask 7168   ;;  %vm7317_vm3 = vmmov 0  }
  0x44   : > { %1069 = vmatprep.subr.mxu0 %v7315_v1  ;;  %7218 = vset.pattern.permute.xlu1 %v7316_v3  ;;  %v1037_v7 = vld [vmem:[%s7514_s11 + $0x8] sm:$0xff]  ;;  %v1046_v11 = vld [vmem:[%s8319_s21 + $0x40] sm:$0xff]  ;;  %v1044_v13 = vld [vmem:[%s8319_s21 + $0x30] sm:$0xff]  ;;  %s1025_s16 = scalar_lea.vmem %s8322_s9, %s8294_s15  ;;  %v1143_v43 = vsub.f32 1.0, %v7520_v8  ;;  %v7318_v44 = vmov 1.0   ;;  %vm1548_vm4 = vcmask 64512  }
  0x45   : > { %1070 = vmatpush1.msra.mxu0 %v1052_v2  ;;  %6182 = vmatprep.mubr.msk.f32.mxu0 %vm1063_vm0, %v1037_v7  ;;  %v1043_v14 = vld [vmem:[%s8319_s21 + $0x28] sm:$0xff]  ;;  %v1042_v15 = vld [vmem:[%s8319_s21 + $0x20] sm:$0xff]  ;;  %v1041_v16 = vld [vmem:[%s8319_s21 + $0x18] sm:$0xff]  ;;  %s8326_s26 = sld [smem:[#allocation9_spill]]  ;;  %vm6073_vm12 = vcmask 80896  }
  0x46   : > { %1071 = vmatprep.subr.mxu0 %v7315_v1  ;;  %1139 = vperm.xlu0 %7217, %v7520_v8   ;;  %v1040_v17 = vld [vmem:[%s8319_s21 + $0x10] sm:$0xff]  ;;  %v1039_v18 = vld [vmem:[%s8319_s21 + $0x8] sm:$0xff]  ;;  %v1038_v19 = vld [vmem:[%s8319_s21] sm:$0xff]  ;;  %s8327_s28 = sld [smem:[#allocation10_spill]] }
  0x47   : > { %1072 = vmatpush1.msra.mxu0 %v1051_v4  ;;  %v1061_v20 = vld [vmem:[%s8319_s21 + $0xb8] sm:$0xff]  ;;  %v1060_v21 = vld [vmem:[%s8319_s21 + $0xb0] sm:$0xff]  ;;  %v1059_v22 = vld [vmem:[%s8319_s21 + $0xa8] sm:$0xff]  ;;  %6676 = vmatpush3.xpose.msk.msra.mxu1 %vm1144_vm2, %v1143_v43  ;;  %s8328_s1 = sld [smem:[#allocation17_spill]] }
  0x48   : > { %1073 = vmatprep.subr.mxu0 %v7315_v1  ;;  %v1058_v23 = vld [vmem:[%s8319_s21 + $0xa0] sm:$0xff]  ;;  %v1057_v24 = vld [vmem:[%s8319_s21 + $0x98] sm:$0xff]  ;;  %v1056_v25 = vld [vmem:[%s8319_s21 + $0x90] sm:$0xff]  ;;  %6691 = vmatprep.subr.mxu1 %v7315_v1  ;;  %s8329_s2 = sld [smem:[#allocation11_spill]] }
  0x49   : > { %1074 = vmatpush1.msra.mxu0 %v1050_v5  ;;  %v1055_v26 = vld [vmem:[%s8319_s21 + $0x88] sm:$0xff]  ;;  %v1054_v27 = vld [vmem:[%s8319_s21 + $0x80] sm:$0xff]  ;;  %6677 = vmatprep.mubr.msk.f32.mxu1 %vm7317_vm3, %v7315_v1  ;;  %v1305_v45 = vld [vmem:[%s7382_s24 + $0x18] sm:$0xff]  ;;  %s8330_s0 = sld [smem:[#allocation13_spill]] }
  0x4a   : > { %1075 = vmatprep.subr.mxu0 %v7315_v1  ;;  %v1036_v28 = vld [vmem:[%s7514_s11] sm:$0xff]  ;;  %6678 = vmatmul.mubr.msk.f32.vlgmr.msra.gmra.mxu1 %vm1144_vm2, %v7318_v44  ;;  %v1389_v46 = vld [vmem:[%s7392_s6 + $0x18] sm:$0xff]  ;;  %v1304_v47 = vld [vmem:[%s7382_s24 + $0x10] sm:$0xff]  ;;  %s8331_s11 = sld [smem:[#allocation12_spill]] }
  0x4b   : > { %1076 = vmatpush1.msra.mxu0 %v1049_v6  ;;  %v1062_v29 = vld [vmem:[%s8321_s17] sm:$0xff]  ;;  %6699 = vmatprep.mubr.msk.f32.mxu1 %vm7317_vm3, %v7315_v1  ;;  %v1388_v48 = vld [vmem:[%s7392_s6 + $0x10] sm:$0xff]  ;;  %v1303_v49 = vld [vmem:[%s7382_s24 + $0x8] sm:$0xff]  ;;  %s8333_s15 = sld [smem:[#allocation14_spill]] }
  0x4c   : > { %1077 = vmatprep.subr.mxu0 %v7315_v1  ;;  %v1030_v42 = vld [vmem:[%s1025_s16] sm:$0xff]  ;;  %6692 = vmatpush3.msra.mxu1 %v1389_v46  ;;  %v1387_v50 = vld [vmem:[%s7392_s6 + $0x8] sm:$0xff]  ;;  %s8332_s16 = sld [smem:[#allocation15_spill]] }
  0x4d   : > { %1078 = vmatpush1.msra.mxu0 %v1048_v9  ;;  %6693 = vmatprep.subr.mxu1 %v7315_v1  ;;  %v1302_v51 = vld [vmem:[%s7382_s24] sm:$0xff]  ;;  %s8334_s5 = sld [smem:[#allocation16_spill]] }
  0x4e   : > { %1079 = vmatprep.subr.mxu0 %v7315_v1  ;;  %6694 = vmatpush3.msra.mxu1 %v1388_v48  ;;  %v1386_v52 = vld [vmem:[%s7392_s6] sm:$0xff]  ;;  %s8335_s9 = sld [smem:[#allocation19_spill]] }
  0x4f   : > { %1080 = vmatpush1.msra.mxu0 %v1047_v10  ;;  %6695 = vmatprep.subr.mxu1 %v7315_v1  ;;  %v6187_v56 = vld [vmem:[%s7362_s3] ss:$0 sm:$0xff]  ;;  %s8336_s17 = sld [smem:[#allocation18_spill]] }
  0x50   : > { %1081 = vmatprep.subr.mxu0 %v7315_v1  ;;  %6696 = vmatpush3.msra.mxu1 %v1387_v50  ;;  %v6185_v59 = vld [vmem:[%s7352_s25] ss:$0 sm:$0xff]  ;;  %s8337_s21 = sld [smem:[#allocation20_spill]] }
  0x51   : > { %1082 = vmatpush1.msra.mxu0 %v1046_v11  ;;  %6697 = vmatprep.subr.mxu1 %v7315_v1  ;;  %v6186_v62 = vld [vmem:[%s7357_s29] ss:$0 sm:$0xff]  ;;  %v1470_v11 = vld [vmem:[%s7402_s20 + $0x18] sm:$0xff] }
  0x52   : > { %1083 = vmatprep.subr.mxu0 %v7315_v1  ;;  %6698 = vmatpush3.msra.mxu1 %v1386_v52  ;;  %v6188_v63 = vld [vmem:[%s7367_s8] ss:$0 sm:$0xff] }
  0x53   : > { %1084 = vmatpush1.msra.mxu0 %v1045_v12  ;;  %6702 = vmatprep.subr.mxu1 %v7315_v1  ;;  %v6189_v0 = vld [vmem:[%s7372_s14] ss:$0 sm:$0xff]  ;;  %v6212_v12 = vld [vmem:[%s7392_s6 + $0x38] sm:$0xff] }
  0x54   : > { %1085 = vmatprep.subr.mxu0 %v7315_v1  ;;  %v6190_v6 = vld [vmem:[%s7377_s19] ss:$0 sm:$0xff] }
  0x55   : > { %1086 = vmatpush1.msra.mxu0 %v1044_v13  ;;  %v1469_v13 = vld [vmem:[%s7402_s20 + $0x10] sm:$0xff] }
  0x56   : > { %1087 = vmatprep.subr.mxu0 %v7315_v1 }
  0x57   : > { %1088 = vmatpush1.msra.mxu0 %v1043_v14  ;;  %v6211_v14 = vld [vmem:[%s7392_s6 + $0x30] sm:$0xff] }
  0x58   : > { %1089 = vmatprep.subr.mxu0 %v7315_v1 }
  0x59   : > { %1090 = vmatpush1.msra.mxu0 %v1042_v15  ;;  %v1468_v15 = vld [vmem:[%s7402_s20 + $0x8] sm:$0xff] }
  0x5a   : > { %1091 = vmatprep.subr.mxu0 %v7315_v1 }
  0x5b   : > { %1092 = vmatpush1.msra.mxu0 %v1041_v16  ;;  %v6210_v16 = vld [vmem:[%s7392_s6 + $0x28] sm:$0xff] }
  0x5c   : > { %1093 = vmatprep.subr.mxu0 %v7315_v1 }
  0x5d   : > { %1094 = vmatpush1.msra.mxu0 %v1040_v17  ;;  %v1467_v17 = vld [vmem:[%s7402_s20] sm:$0xff] }
  0x5e   : > { %1095 = vmatprep.subr.mxu0 %v7315_v1 }
  0x5f   : > { %1096 = vmatpush1.msra.mxu0 %v1039_v18  ;;  %v6209_v18 = vld [vmem:[%s7392_s6 + $0x20] sm:$0xff] }
  0x60   : > { %1097 = vmatprep.subr.mxu0 %v7315_v1 }
  0x61   : > { %1098 = vmatpush1.msra.mxu0 %v1038_v19 }
  0x62   : > { %1115 = vmatprep.subr.mxu0 %v7315_v1 }
  0x63   : > { %1116 = vmatpush2.msra.mxu0 %v1061_v20 }
  0x64   : > { %1117 = vmatprep.subr.mxu0 %v7315_v1 }
  0x65   : > { %1118 = vmatpush2.msra.mxu0 %v1060_v21  ;;  %v6194_v21 = vld [vmem:[%s8323_s18] ss:$0 sm:$0xff] }
  0x66   : > { %1119 = vmatprep.subr.mxu0 %v7315_v1 }
  0x67   : > { %1120 = vmatpush2.msra.mxu0 %v1059_v22 }
  0x68   : > { %1121 = vmatprep.subr.mxu0 %v7315_v1 }
  0x69   : > { %1122 = vmatpush2.msra.mxu0 %v1058_v23 }
  0x6a   : > { %1123 = vmatprep.subr.mxu0 %v7315_v1 }
  0x6b   : > { %1124 = vmatpush2.msra.mxu0 %v1057_v24  ;;  %v6192_v24 = vld [vmem:[%s8324_s22] ss:$0 sm:$0xff] }
  0x6c   : > { %1125 = vmatprep.subr.mxu0 %v7315_v1 }
  0x6d   : > { %1126 = vmatpush2.msra.mxu0 %v1056_v25 }
  0x6e   : > { %1127 = vmatprep.subr.mxu0 %v7315_v1 }
  0x6f   : > { %1128 = vmatpush2.msra.mxu0 %v1055_v26 }
  0x70   : > { %1129 = vmatprep.subr.mxu0 %v7315_v1 }
  0x71   : > { %1130 = vmatpush2.msra.mxu0 %v1054_v27 }
  0x72   : > { %1132 = vmatmul.mubr.f32.vlgmr.msra.gmra.mxu0 %v1036_v28  ;;  %6680 = vmatprep.subr.mxu0 %v7315_v1 }
  0x73   : > { %6688 = vmatprep.mubr.msk.f32.mxu0 %vm7317_vm3, %v7315_v1  ;;  %6681 = vmatpush3.msra.mxu0 %v1305_v45 }
  0x74   : > { %6682 = vmatprep.subr.mxu0 %v7315_v1 }
  0x75   : > { %6683 = vmatpush3.msra.mxu0 %v1304_v47 }
  0x76   : > { %6684 = vmatprep.subr.mxu0 %v7315_v1 }
  0x77   : > { %6685 = vmatpush3.msra.mxu0 %v1303_v49 }
  0x78   : > { %6686 = vmatprep.subr.mxu0 %v7315_v1 }
  0x79   : > { %6687 = vmatpush3.msra.mxu0 %v1302_v51 }
  0x7a   : > { %6739 = vmatprep.subr.mxu0 %v7315_v1 }
  0xc1   : > { %v7565_v31 = vpop.permute.xlu0 %1139 }
 0x10a   : > { %v1217_v19 = vpop.f32.mrf.mxu1 }
 0x10c   : > { %v6679_v20 = vpop.f32.mrf.mxu1 }
 0x132   : > { %v1133_v30 = vpop.f32.mrf.mxu0 }
 0x133   : > { %v1134_v32 = vadd.f32 %v1133_v30, %v1062_v29  ;;  %v6196_v29 = vld [vmem:[%s8325_s23] ss:$0 sm:$0xff]  ;;  %v6214_v30 = vld [vmem:[%s8323_s18 + $0x1] ss:$0 sm:$0xff] }
 0x134   : > { %v1135_v33 = vpop.f32.mrf.mxu0 }
 0x135   : > { %v7568_v34 = vmul.f32 %v7565_v31, %v1134_v32 }
 0x137   : > { %v1222_v35 = vmul.f32 %v7568_v34, %v7565_v31 }
 0x139   : > { %v1226_v36 = vsel %vm1225_vm1, %v1222_v35, 0.0 }
 0x13a   : > { %1227 = vadd.xlane.f32.xlu0 %v1226_v36 }
 0x1c3   : > { %v1228_v37 = vpop.xlane.xlu0 %1227 }
 0x1c4   : > { %v1230_v38 = vmul.f32 0.03125, %v1228_v37 }
 0x1c6   : > { %v1231_v39 = vsub.f32 %v1222_v35, %v1230_v38 }
 0x1c8   : > { %v1232_v40 = vmul.f32 %v1231_v39, %v1231_v39 }
 0x1ca   : > { %v1233_v41 = vsel %vm1225_vm1, %v1232_v40, 0.0  ;;  %v7662_v40 = vmul.f32 -1000.0, %v1217_v19 }
 0x1cb   : > { %1234 = vadd.xlane.f32.xlu1 %v1233_v41 }
 0x1dc   : > { %1261 = vperm.xlu1 %7218, %v1030_v42  }
 0x254   : > { %v1235_v53 = vpop.xlane.xlu1 %1234 }
 0x255   : > { %v1236_v54 = vmul.f32 0.03125, %v1235_v53 }
 0x257   : > { %v1237_v55 = vadd.f32 1e-06, %v1236_v54  ;;  %v1711_v54 = vld [vmem:[%s8326_s26] sm:$0xff] }
 0x258   : > { %v7606_v57 = vpop.permute.xlu1 %1261 }
 0x259   : > { %7219 = vrsqrt.f32 %v1237_v55  ;;  %v1270_v61 = vmul.f32 %v6187_v56, %v7606_v57  ;;  %v1284_v5 = vmul.f32 %v6189_v0, %v7606_v57  ;;  %v6205_v55 = vld [vmem:[%s7382_s24 + $0x38] sm:$0xff]  ;;  %v6217_v0 = vld [vmem:[%s7402_s20 + $0x28] sm:$0xff] }
 0x25b   : > { %v1277_v4 = vadd.f32 %v6188_v63, %v1270_v61  ;;  %v1291_v8 = vadd.f32 %v6190_v6, %v1284_v5  ;;  %v6202_v61 = vld [vmem:[%s7382_s24 + $0x20] sm:$0xff]  ;;  %v6218_v63 = vld [vmem:[%s7402_s20 + $0x30] sm:$0xff] }
 0x25c   : > { %v6207_v5 = vld [vmem:[%s8324_s22 + $0x1] ss:$0 sm:$0xff] }
 0x266   : > { %v7220_v58 = vpop.eup %7219 }
 0x267   : > { %v1239_v60 = vmul.f32 %v7220_v58, %v1231_v39  ;;  %v6204_v58 = vld [vmem:[%s7382_s24 + $0x30] sm:$0xff] }
 0x269   : > { %v1246_v2 = vmul.f32 %v6185_v59, %v1239_v60  ;;  %v6203_v60 = vld [vmem:[%s7382_s24 + $0x28] sm:$0xff] }
 0x26b   : > { %v1253_v3 = vadd.f32 %v6186_v62, %v1246_v2  ;;  %v6219_v62 = vld [vmem:[%s7402_s20 + $0x38] sm:$0xff]  ;;  %v6216_v2 = vld [vmem:[%s7402_s20 + $0x20] sm:$0xff] }
 0x26d   : > { %v1254_v7 = vmul.f32 %v1253_v3, %v7565_v31 }
 0x26f   : > { %v1292_v9 = vmul.f32 %v1277_v4, %v1254_v7 }
 0x271   : > { %v7616_v10 = vadd.f32 %v1292_v9, %v1291_v8  ;;  %v6221_v9 = vld [vmem:[%s8325_s23 + $0x1] ss:$0 sm:$0xff] }
 0x273   : > { %6689 = vmatmul.mubr.msk.f32.vlgmr.msra.gmra.mxu0 %vm1225_vm1, %v7616_v10  ;;  %6700 = vmatmul.mubr.msk.f32.vlgmr.msra.gmra.mxu1 %vm1225_vm1, %v7616_v10 }
 0x274   : > { %6703 = vmatpush3.msra.mxu1 %v1470_v11  ;;  %6740 = vmatpush3.msra.mxu0 %v6212_v12 }
 0x275   : > { %6704 = vmatprep.subr.mxu1 %v7315_v1  ;;  %6741 = vmatprep.subr.mxu0 %v7315_v1 }
 0x276   : > { %6705 = vmatpush3.msra.mxu1 %v1469_v13  ;;  %6742 = vmatpush3.msra.mxu0 %v6211_v14 }
 0x277   : > { %6706 = vmatprep.subr.mxu1 %v7315_v1  ;;  %6743 = vmatprep.subr.mxu0 %v7315_v1 }
 0x278   : > { %6707 = vmatpush3.msra.mxu1 %v1468_v15  ;;  %6744 = vmatpush3.msra.mxu0 %v6210_v16 }
 0x279   : > { %6708 = vmatprep.subr.mxu1 %v7315_v1  ;;  %6745 = vmatprep.subr.mxu0 %v7315_v1 }
 0x27a   : > { %6709 = vmatpush3.msra.mxu1 %v1467_v17  ;;  %6710 = vmatprep.mubr.msk.f32.mxu1 %vm7317_vm3, %v7315_v1 }
 0x27b   : > { %6746 = vmatpush3.msra.mxu0 %v6209_v18  ;;  %6747 = vmatprep.mubr.msk.f32.mxu0 %vm7317_vm3, %v7315_v1 }
 0x27c   : > { %6711 = vmatmul.mubr.msk.f32.vlgmr.msra.gmra.mxu1 %vm1225_vm1, %v7616_v10  ;;  %6748 = vmatmul.mubr.msk.f32.vlgmr.msra.gmra.mxu0 %vm1225_vm1, %v7616_v10 }
 0x27d   : > { %6713 = vmatprep.subr.mxu1 %v7315_v1  ;;  %6715 = vmatprep.mubr.msk.f32.mxu1 %vm7317_vm3, %v7315_v1 }
 0x27e   : > { %6761 = vmatprep.subr.mxu0 %v7315_v1  ;;  %6763 = vmatprep.mubr.msk.f32.mxu0 %vm7317_vm3, %v7315_v1 }
 0x333   : > { %v1382_v22 = vpop.f32.mrf.mxu0  ;;  %v1463_v23 = vpop.f32.mrf.mxu1 }
 0x334   : > { %v1464_v25 = vadd.f32 %v6194_v21, %v1463_v23  ;;  %v1383_v28 = vadd.f32 %v6192_v24, %v1382_v22  ;;  %v6226_v24 = vld [vmem:[%s8326_s26 + $0x8] sm:$0xff] }
 0x335   : > { %v6690_v26 = vpop.f32.mrf.mxu0  ;;  %v6701_v27 = vpop.f32.mrf.mxu1 }
 0x336   : > { %6714 = vmatpush3.xpose.msk.msra.mxu1 %vm1548_vm4, %v1464_v25 }
 0x337   : > { %6718 = vmatprep.subr.mxu1 %v7315_v1 }
 0x339   : > { %6716 = vmatmul.mubr.msk.f32.vlgmr.msra.gmra.mxu1 %vm1548_vm4, %v1383_v28  ;;  %v6231_v28 = vld [vmem:[%s7382_s24 + $0x58] sm:$0xff] }
 0x33a   : > { %6720 = vmatprep.mubr.msk.f32.mxu1 %vm7317_vm3, %v7315_v1 }
 0x33c   : > { %v1544_v32 = vpop.f32.mrf.mxu1  ;;  %v1948_v33 = vpop.f32.mrf.mxu0 }
 0x33d   : > { %v1545_v35 = vadd.f32 %v6196_v29, %v1544_v32  ;;  %v1949_v36 = vadd.f32 %v6214_v30, %v1948_v33  ;;  %v6230_v29 = vld [vmem:[%s7382_s24 + $0x50] sm:$0xff]  ;;  %v6229_v30 = vld [vmem:[%s7382_s24 + $0x48] sm:$0xff]  ;;  %v6228_v32 = vld [vmem:[%s7382_s24 + $0x40] sm:$0xff] }
 0x33e   : > { %v6712_v37 = vpop.f32.mrf.mxu1  ;;  %v6749_v38 = vpop.f32.mrf.mxu0  ;;  %v6245_v33 = vld [vmem:[%s7402_s20 + $0x58] sm:$0xff] }
 0x33f   : > { %6719 = vmatpush3.msra.mxu1 %v1545_v35  ;;  %6762 = vmatpush3.xpose.msk.msra.mxu0 %vm1548_vm4, %v1949_v36  ;;  %v6244_v35 = vld [vmem:[%s7402_s20 + $0x50] sm:$0xff]  ;;  %v6243_v36 = vld [vmem:[%s7402_s20 + $0x48] sm:$0xff]  ;;  %v6242_v37 = vld [vmem:[%s7402_s20 + $0x40] sm:$0xff] }
 0x340   : > { %6723 = vmatprep.subr.mxu1 %v7315_v1  ;;  %6771 = vmatprep.subr.mxu0 %v7315_v1  ;;  %v6238_v38 = vld [vmem:[%s7392_s6 + $0x58] sm:$0xff] }
 0x3f9   : > { %v1621_v39 = vpop.f32.mrf.mxu1 }
 0x3fa   : > { %v1625_v41 = vmul.f32 0.35355338, %v1621_v39 }
 0x3fb   : > { %v6717_v42 = vpop.f32.mrf.mxu1 }
 0x3fc   : > { %v1626_v43 = vadd.f32 %v1625_v41, %v7662_v40  ;;  %v6237_v41 = vld [vmem:[%s7392_s6 + $0x50] sm:$0xff] }
 0x3fe   : > { %v1627_v45 = vsel %vm1548_vm4, %v1626_v43, -inf }
 0x3ff   : > { %1628 = vmax.xlane.f32.xlu1 %v1627_v45  ;;  %v6235_v45 = vld [vmem:[%s7392_s6 + $0x40] sm:$0xff] }
 0x488   : > { %v1629_v46 = vpop.xlane.xlu1 %1628 }
 0x489   : > { %v1630_v47 = vsub.f32 %v1626_v43, %v1629_v46  ;;  %v6236_v43 = vld [vmem:[%s7392_s6 + $0x48] sm:$0xff] }
 0x48b   : > { %v1631_v48 = vmul.f32 1.442695, %v1630_v47 }
 0x48d   : > { %7221 = vpow2.f32 %v1631_v48 }
 0x49a   : > { %v7222_v49 = vpop.eup %7221 }
 0x49b   : > { %v1633_v50 = vsel %vm1548_vm4, %v7222_v49, 0.0 }
 0x49c   : > { %1634 = vadd.xlane.f32.xlu0 %v1633_v50  ;;  %v6191_v50 = vld [vmem:[%s8327_s28] ss:$0 sm:$0xff] }
 0x525   : > { %v1635_v51 = vpop.xlane.xlu0 %1634 }
 0x526   : > { %7223 = vrcp.f32 %v1635_v51 }
 0x533   : > { %v7224_v52 = vpop.eup %7223 }
 0x534   : > { %v1637_v53 = vmul.f32 %v7224_v52, %v7222_v49 }
 0x536   : > { %6721 = vmatmul.mubr.msk.f32.vlgmr.msra.gmra.mxu1 %vm1548_vm4, %v1637_v53 }
 0x537   : > { %6724 = vmatpush3.msra.mxu1 %v1711_v54  ;;  %6725 = vmatprep.mubr.msk.f32.mxu1 %vm7317_vm3, %v7315_v1 }
 0x538   : > { %6728 = vmatprep.subr.mxu1 %v7315_v1 }
 0x5f6   : > { %v1707_v56 = vpop.f32.mrf.mxu1 }
 0x5f7   : > { %6726 = vmatmul.mubr.msk.f32.vlgmr.msra.gmra.mxu1 %vm1548_vm4, %v1707_v56 }
 0x5f8   : > { %6729 = vmatpush3.msra.mxu1 %v6205_v55  ;;  %v6722_v59 = vpop.f32.mrf.mxu1  ;;  %6736 = vmatprep.mubr.msk.f32.mxu1 %vm7317_vm3, %v7315_v1  ;;  %v6240_v55 = vld [vmem:[%s8323_s18 + $0x2] ss:$0 sm:$0xff] }
 0x5f9   : > { %6730 = vmatprep.subr.mxu1 %v7315_v1 }
 0x5fa   : > { %6731 = vmatpush3.msra.mxu1 %v6204_v58  ;;  %v6233_v58 = vld [vmem:[%s8324_s22 + $0x2] ss:$0 sm:$0xff] }
 0x5fb   : > { %6732 = vmatprep.subr.mxu1 %v7315_v1 }
 0x5fc   : > { %6733 = vmatpush3.msra.mxu1 %v6203_v60  ;;  %v6247_v60 = vld [vmem:[%s8325_s23 + $0x2] ss:$0 sm:$0xff] }
 0x5fd   : > { %6734 = vmatprep.subr.mxu1 %v7315_v1 }
 0x5fe   : > { %6735 = vmatpush3.msra.mxu1 %v6202_v61 }
 0x5ff   : > { %6737 = vmatmul.mubr.msk.f32.vlgmr.msra.gmra.mxu1 %vm1225_vm1, %v7616_v10  ;;  %6750 = vmatprep.subr.mxu1 %v7315_v1 }
 0x600   : > { %6751 = vmatpush3.msra.mxu1 %v6219_v62  ;;  %6758 = vmatprep.mubr.msk.f32.mxu1 %vm7317_vm3, %v7315_v1 }
 0x601   : > { %6752 = vmatprep.subr.mxu1 %v7315_v1 }
 0x602   : > { %6753 = vmatpush3.msra.mxu1 %v6218_v63 }
 0x603   : > { %6754 = vmatprep.subr.mxu1 %v7315_v1 }
 0x604   : > { %6755 = vmatpush3.msra.mxu1 %v6217_v0 }
 0x605   : > { %6756 = vmatprep.subr.mxu1 %v7315_v1 }
 0x606   : > { %6757 = vmatpush3.msra.mxu1 %v6216_v2 }
 0x607   : > { %6759 = vmatmul.mubr.msk.f32.vlgmr.msra.gmra.mxu1 %vm1225_vm1, %v7616_v10  ;;  %6766 = vmatprep.subr.mxu1 %v7315_v1 }
 0x608   : > { %6768 = vmatprep.mubr.msk.f32.mxu1 %vm7317_vm3, %v7315_v1 }
 0x6b7   : > { %v7699_v3 = vpop.f32.mrf.mxu1 }
 0x6b8   : > { %v1785_v51 = vadd.f32 %v6191_v50, %v7699_v3 }
 0x6b9   : > { %v6727_v4 = vpop.f32.mrf.mxu1 }
 0x6bf   : > { %v1865_v6 = vpop.f32.mrf.mxu1 }
 0x6c0   : > { %v1866_v7 = vadd.f32 %v6207_v5, %v1865_v6 }
 0x6c1   : > { %v6738_v8 = vpop.f32.mrf.mxu1 }
 0x6c2   : > { %6764 = vmatmul.mubr.msk.f32.vlgmr.msra.gmra.mxu0 %vm1548_vm4, %v1866_v7 }
 0x6c3   : > { %6773 = vmatprep.mubr.msk.f32.mxu0 %vm7317_vm3, %v7315_v1  ;;  %6772 = vmatpush3.msra.mxu0 %v6226_v24  ;;  %v6264_v24 = vld [vmem:[%s7392_s6 + $0x78] sm:$0xff] }
 0x6c4   : > { %6787 = vmatprep.subr.mxu0 %v7315_v1 }
 0x6c7   : > { %v2031_v11 = vpop.f32.mrf.mxu1 }
 0x6c8   : > { %v2032_v12 = vadd.f32 %v6221_v9, %v2031_v11 }
 0x6c9   : > { %v6760_v13 = vpop.f32.mrf.mxu1 }
 0x6ca   : > { %6767 = vmatpush3.msra.mxu1 %v2032_v12  ;;  %v6252_v12 = vld [vmem:[%s8326_s26 + $0x10] sm:$0xff] }
 0x6cb   : > { %6776 = vmatprep.subr.mxu1 %v7315_v1 }
 0x782   : > { %v2107_v14 = vpop.f32.mrf.mxu0 }
 0x783   : > { %v2111_v15 = vmul.f32 0.35355338, %v2107_v14 }
 0x784   : > { %v6765_v16 = vpop.f32.mrf.mxu0 }
 0x785   : > { %v2112_v17 = vadd.f32 %v2111_v15, %v7662_v40  ;;  %v6257_v16 = vld [vmem:[%s7382_s24 + $0x78] sm:$0xff] }
 0x787   : > { %v2113_v18 = vsel %vm1548_vm4, %v2112_v17, -inf }
 0x788   : > { %2114 = vmax.xlane.f32.xlu0 %v2113_v18  ;;  %v6255_v18 = vld [vmem:[%s7382_s24 + $0x68] sm:$0xff] }
 0x811   : > { %v2115_v19 = vpop.xlane.xlu0 %2114 }
 0x812   : > { %v2116_v20 = vsub.f32 %v2112_v17, %v2115_v19  ;;  %v6256_v17 = vld [vmem:[%s7382_s24 + $0x70] sm:$0xff]  ;;  %v6254_v19 = vld [vmem:[%s7382_s24 + $0x60] sm:$0xff] }
 0x814   : > { %v2117_v21 = vmul.f32 1.442695, %v2116_v20  ;;  %v6271_v20 = vld [vmem:[%s7402_s20 + $0x78] sm:$0xff] }
 0x816   : > { %7225 = vpow2.f32 %v2117_v21  ;;  %v6270_v21 = vld [vmem:[%s7402_s20 + $0x70] sm:$0xff] }
 0x823   : > { %v7226_v22 = vpop.eup %7225 }
 0x824   : > { %v2119_v23 = vsel %vm1548_vm4, %v7226_v22, 0.0 }
 0x825   : > { %2120 = vadd.xlane.f32.xlu0 %v2119_v23  ;;  %v6268_v23 = vld [vmem:[%s7402_s20 + $0x60] sm:$0xff] }
 0x8ae   : > { %v2121_v25 = vpop.xlane.xlu0 %2120 }
 0x8af   : > { %7227 = vrcp.f32 %v2121_v25 }
 0x8bc   : > { %v7228_v26 = vpop.eup %7227 }
 0x8bd   : > { %v2123_v27 = vmul.f32 %v7228_v26, %v7226_v22  ;;  %v6269_v22 = vld [vmem:[%s7402_s20 + $0x68] sm:$0xff]  ;;  %v6263_v26 = vld [vmem:[%s7392_s6 + $0x70] sm:$0xff] }
 0x8bf   : > { %6769 = vmatmul.mubr.msk.f32.vlgmr.msra.gmra.mxu1 %vm1548_vm4, %v2123_v27 }
 0x8c0   : > { %6777 = vmatpush3.msra.mxu1 %v6231_v28  ;;  %6784 = vmatprep.mubr.msk.f32.mxu1 %vm7317_vm3, %v7315_v1  ;;  %v6262_v28 = vld [vmem:[%s7392_s6 + $0x68] sm:$0xff] }
 0x8c1   : > { %6778 = vmatprep.subr.mxu1 %v7315_v1 }
 0x8c2   : > { %6779 = vmatpush3.msra.mxu1 %v6230_v29  ;;  %v6261_v29 = vld [vmem:[%s7392_s6 + $0x60] sm:$0xff] }
 0x8c3   : > { %6780 = vmatprep.subr.mxu1 %v7315_v1 }
 0x8c4   : > { %6781 = vmatpush3.msra.mxu1 %v6229_v30 }
 0x8c5   : > { %6782 = vmatprep.subr.mxu1 %v7315_v1 }
 0x8c6   : > { %6783 = vmatpush3.msra.mxu1 %v6228_v32 }
 0x8c7   : > { %6785 = vmatmul.mubr.msk.f32.vlgmr.msra.gmra.mxu1 %vm1225_vm1, %v7616_v10  ;;  %6798 = vmatprep.subr.mxu1 %v7315_v1 }
 0x8c8   : > { %6799 = vmatpush3.msra.mxu1 %v6245_v33  ;;  %6806 = vmatprep.mubr.msk.f32.mxu1 %vm7317_vm3, %v7315_v1 }
 0x8c9   : > { %6800 = vmatprep.subr.mxu1 %v7315_v1 }
 0x8ca   : > { %6801 = vmatpush3.msra.mxu1 %v6244_v35 }
 0x8cb   : > { %6802 = vmatprep.subr.mxu1 %v7315_v1 }
 0x8cc   : > { %6803 = vmatpush3.msra.mxu1 %v6243_v36 }
 0x8cd   : > { %6804 = vmatprep.subr.mxu1 %v7315_v1 }
 0x8ce   : > { %6805 = vmatpush3.msra.mxu1 %v6242_v37 }
 0x8cf   : > { %6807 = vmatmul.mubr.msk.f32.vlgmr.msra.gmra.mxu1 %vm1225_vm1, %v7616_v10  ;;  %6819 = vmatprep.subr.mxu1 %v7315_v1 }
 0x8d0   : > { %6821 = vmatprep.mubr.msk.f32.mxu1 %vm7317_vm3, %v7315_v1  ;;  %6820 = vmatpush3.msra.mxu1 %v6252_v12 }
 0x8d1   : > { %6835 = vmatprep.subr.mxu1 %v7315_v1 }
 0x97f   : > { %v2193_v39 = vpop.f32.mrf.mxu1 }
 0x980   : > { %6774 = vmatmul.mubr.msk.f32.vlgmr.msra.gmra.mxu0 %vm1548_vm4, %v2193_v39  ;;  %v6266_v39 = vld [vmem:[%s8323_s18 + $0x3] ss:$0 sm:$0xff] }
 0x981   : > { %6788 = vmatpush3.msra.mxu0 %v6238_v38  ;;  %v6770_v42 = vpop.f32.mrf.mxu1  ;;  %6795 = vmatprep.mubr.msk.f32.mxu0 %vm7317_vm3, %v7315_v1 }
 0x982   : > { %6789 = vmatprep.subr.mxu0 %v7315_v1  ;;  %v6259_v42 = vld [vmem:[%s8324_s22 + $0x3] ss:$0 sm:$0xff] }
 0x983   : > { %6790 = vmatpush3.msra.mxu0 %v6237_v41 }
 0x984   : > { %6791 = vmatprep.subr.mxu0 %v7315_v1 }
 0x985   : > { %6792 = vmatpush3.msra.mxu0 %v6236_v43 }
 0x986   : > { %6793 = vmatprep.subr.mxu0 %v7315_v1 }
 0x987   : > { %v2352_v46 = vpop.f32.mrf.mxu1  ;;  %6794 = vmatpush3.msra.mxu0 %v6235_v45  ;;  %v6273_v45 = vld [vmem:[%s8325_s23 + $0x3] ss:$0 sm:$0xff] }
 0x988   : > { %6796 = vmatmul.mubr.msk.f32.vlgmr.msra.gmra.mxu0 %vm1225_vm1, %v7616_v10  ;;  %6809 = vmatprep.subr.mxu0 %v7315_v1  ;;  %v2353_v62 = vadd.f32 %v6233_v58, %v2352_v46 }
 0x989   : > { %v6786_v47 = vpop.f32.mrf.mxu1  ;;  %6811 = vmatprep.mubr.msk.f32.mxu0 %vm7317_vm3, %v7315_v1 }
 0x98f   : > { %v2518_v48 = vpop.f32.mrf.mxu1 }
 0x990   : > { %v2519_v63 = vadd.f32 %v6247_v60, %v2518_v48 }
 0x991   : > { %v6808_v49 = vpop.f32.mrf.mxu1 }
 0xa40   : > { %v2268_v52 = vpop.f32.mrf.mxu0 }
 0xa41   : > { %v7756_v53 = vadd.f32 %v2268_v52, %v1785_v51 }
 0xa42   : > { %v6775_v54 = vpop.f32.mrf.mxu0 }
 0xa48   : > { %v2435_v56 = vpop.f32.mrf.mxu0 }
 0xa49   : > { %v2436_v59 = vadd.f32 %v6240_v55, %v2435_v56 }
 0xa4a   : > { %v6797_v61 = vpop.f32.mrf.mxu0 }
 0xa4b   : > { %6810 = vmatpush3.xpose.msk.msra.mxu0 %vm1548_vm4, %v2436_v59  ;;  %v6278_v59 = vld [vmem:[%s8326_s26 + $0x18] sm:$0xff] }
 0xa4c   : > { %6814 = vmatprep.subr.mxu0 %v7315_v1 }
 0xa4e   : > { %6812 = vmatmul.mubr.msk.f32.vlgmr.msra.gmra.mxu0 %vm1548_vm4, %v2353_v62 }
 0xa4f   : > { %6815 = vmatpush3.msra.mxu0 %v2519_v63  ;;  %6816 = vmatprep.mubr.msk.f32.mxu0 %vm7317_vm3, %v7315_v1 }
 0xa50   : > { %6824 = vmatprep.subr.mxu0 %v7315_v1 }
 0xb0e   : > { %v2594_v0 = vpop.f32.mrf.mxu0 }
 0xb0f   : > { %v2598_v2 = vmul.f32 0.35355338, %v2594_v0 }
 0xb10   : > { %v6813_v3 = vpop.f32.mrf.mxu0 }
 0xb11   : > { %v2599_v4 = vadd.f32 %v2598_v2, %v7662_v40 }
 0xb13   : > { %v2600_v5 = vsel %vm1548_vm4, %v2599_v4, -inf }
 0xb14   : > { %2601 = vmax.xlane.f32.xlu0 %v2600_v5 }
 0xb9d   : > { %v2602_v6 = vpop.xlane.xlu0 %2601 }
 0xb9e   : > { %v2603_v7 = vsub.f32 %v2599_v4, %v2602_v6 }
 0xba0   : > { %v2604_v8 = vmul.f32 1.442695, %v2603_v7 }
 0xba2   : > { %7229 = vpow2.f32 %v2604_v8 }
 0xbaf   : > { %v7230_v9 = vpop.eup %7229 }
 0xbb0   : > { %v2606_v11 = vsel %vm1548_vm4, %v7230_v9, 0.0 }
 0xbb1   : > { %2607 = vadd.xlane.f32.xlu0 %v2606_v11 }
 0xc3a   : > { %v2608_v13 = vpop.xlane.xlu0 %2607 }
 0xc3b   : > { %7231 = vrcp.f32 %v2608_v13  ;;  %v3316_v13 = vld [vmem:[%s8328_s1 + $0x18] sm:$0xff] }
 0xc48   : > { %v7232_v14 = vpop.eup %7231 }
 0xc49   : > { %v2610_v15 = vmul.f32 %v7232_v14, %v7230_v9  ;;  %v3315_v14 = vld [vmem:[%s8328_s1 + $0x10] sm:$0xff] }
 0xc4b   : > { %6817 = vmatmul.mubr.msk.f32.vlgmr.msra.gmra.mxu0 %vm1548_vm4, %v2610_v15  ;;  %v3313_v15 = vld [vmem:[%s8328_s1] sm:$0xff] }
 0xc4c   : > { %6825 = vmatpush3.msra.mxu0 %v6257_v16  ;;  %6832 = vmatprep.mubr.msk.f32.mxu0 %vm7317_vm3, %v7315_v1 }
 0xc4d   : > { %6826 = vmatprep.subr.mxu0 %v7315_v1 }
 0xc4e   : > { %6827 = vmatpush3.msra.mxu0 %v6256_v17 }
 0xc4f   : > { %6828 = vmatprep.subr.mxu0 %v7315_v1 }
 0xc50   : > { %6829 = vmatpush3.msra.mxu0 %v6255_v18 }
 0xc51   : > { %6830 = vmatprep.subr.mxu0 %v7315_v1 }
 0xc52   : > { %6831 = vmatpush3.msra.mxu0 %v6254_v19 }
 0xc53   : > { %6833 = vmatmul.mubr.msk.f32.vlgmr.msra.gmra.mxu0 %vm1225_vm1, %v7616_v10  ;;  %6846 = vmatprep.subr.mxu0 %v7315_v1 }
 0xc54   : > { %6847 = vmatpush3.msra.mxu0 %v6271_v20  ;;  %6854 = vmatprep.mubr.msk.f32.mxu0 %vm7317_vm3, %v7315_v1  ;;  %v6280_v20 = vld [vmem:[%s8329_s2] ss:$0 sm:$0xff] }
 0xc55   : > { %6848 = vmatprep.subr.mxu0 %v7315_v1 }
 0xc56   : > { %6849 = vmatpush3.msra.mxu0 %v6270_v21  ;;  %v6282_v21 = vld [vmem:[%s8330_s0] ss:$0 sm:$0xff] }
 0xc57   : > { %6850 = vmatprep.subr.mxu0 %v7315_v1 }
 0xc58   : > { %6851 = vmatpush3.msra.mxu0 %v6269_v22 }
 0xc59   : > { %6852 = vmatprep.subr.mxu0 %v7315_v1 }
 0xc5a   : > { %6853 = vmatpush3.msra.mxu0 %v6268_v23  ;;  %v6281_v23 = vld [vmem:[%s8331_s11] ss:$0 sm:$0xff] }
 0xc5b   : > { %6855 = vmatmul.mubr.msk.f32.vlgmr.msra.gmra.mxu0 %vm1225_vm1, %v7616_v10  ;;  %6867 = vmatprep.subr.mxu0 %v7315_v1 }
 0xc5c   : > { %6869 = vmatprep.mubr.msk.f32.mxu0 %vm7317_vm3, %v7315_v1  ;;  %6868 = vmatpush3.msra.mxu0 %v6278_v59 }
 0xc5d   : > { %6883 = vmatprep.subr.mxu0 %v7315_v1 }
 0xd0b   : > { %v2680_v25 = vpop.f32.mrf.mxu0 }
 0xd0c   : > { %6822 = vmatmul.mubr.msk.f32.vlgmr.msra.gmra.mxu1 %vm1548_vm4, %v2680_v25 }
 0xd0d   : > { %6836 = vmatpush3.msra.mxu1 %v6264_v24  ;;  %v6818_v27 = vpop.f32.mrf.mxu0  ;;  %6843 = vmatprep.mubr.msk.f32.mxu1 %vm7317_vm3, %v7315_v1  ;;  %v6284_v24 = vld [vmem:[%s8332_s16] ss:$0 sm:$0xff] }
 0xd0e   : > { %6837 = vmatprep.subr.mxu1 %v7315_v1  ;;  %v6283_v27 = vld [vmem:[%s8333_s15] ss:$0 sm:$0xff] }
 0xd0f   : > { %6838 = vmatpush3.msra.mxu1 %v6263_v26  ;;  %v3289_v26 = vmul.f32 %v6282_v21, %v7606_v57 }
 0xd10   : > { %6839 = vmatprep.subr.mxu1 %v7315_v1 }
 0xd11   : > { %6840 = vmatpush3.msra.mxu1 %v6262_v28 }
 0xd12   : > { %6841 = vmatprep.subr.mxu1 %v7315_v1 }
 0xd13   : > { %v2839_v30 = vpop.f32.mrf.mxu0  ;;  %6842 = vmatpush3.msra.mxu1 %v6261_v29  ;;  %v3303_v29 = vmul.f32 %v6284_v24, %v7606_v57  ;;  %v6288_v24 = vld [vmem:[%s8337_s21] ss:$0 sm:$0xff] }
 0xd14   : > { %6844 = vmatmul.mubr.msk.f32.vlgmr.msra.gmra.mxu1 %vm1225_vm1, %v7616_v10  ;;  %6857 = vmatprep.subr.mxu1 %v7315_v1  ;;  %v2840_v10 = vadd.f32 %v6259_v42, %v2839_v30  ;;  %v6285_v30 = vld [vmem:[%s8334_s5] ss:$0 sm:$0xff] }
 0xd15   : > { %v6834_v32 = vpop.f32.mrf.mxu0  ;;  %6859 = vmatprep.mubr.msk.f32.mxu1 %vm7317_vm3, %v7315_v1  ;;  %v3436_v42 = vld [vmem:[%s8335_s9 + $0x60] sm:$0xff] }
 0xd1b   : > { %v3005_v33 = vpop.f32.mrf.mxu0 }
 0xd1c   : > { %v3006_v47 = vadd.f32 %v6273_v45, %v3005_v33  ;;  %v3296_v33 = vadd.f32 %v6283_v27, %v3289_v26  ;;  %v3434_v45 = vld [vmem:[%s8335_s9 + $0x50] sm:$0xff] }
 0xd1d   : > { %v6856_v35 = vpop.f32.mrf.mxu0 }
 0xd1e   : > { %v3310_v35 = vadd.f32 %v6285_v30, %v3303_v29 }
 0xdcc   : > { %v2755_v36 = vpop.f32.mrf.mxu1 }
 0xdcd   : > { %v2759_v37 = vadd.f32 %v2755_v36, %v7756_v53 }
 0xdce   : > { %v6823_v38 = vpop.f32.mrf.mxu1 }
 0xdcf   : > { %v3439_v38 = vld [vmem:[%s8335_s9 + $0x78] sm:$0xff] }
 0xdd4   : > { %v2922_v41 = vpop.f32.mrf.mxu1 }
 0xdd5   : > { %v2923_v43 = vadd.f32 %v6266_v39, %v2922_v41  ;;  %v3438_v39 = vld [vmem:[%s8335_s9 + $0x70] sm:$0xff]  ;;  %v3437_v41 = vld [vmem:[%s8335_s9 + $0x68] sm:$0xff] }
 0xdd6   : > { %v6845_v46 = vpop.f32.mrf.mxu1 }
 0xdd7   : > { %6858 = vmatpush3.xpose.msk.msra.mxu1 %vm1548_vm4, %v2923_v43  ;;  %v3435_v43 = vld [vmem:[%s8335_s9 + $0x58] sm:$0xff]  ;;  %v3433_v46 = vld [vmem:[%s8335_s9 + $0x48] sm:$0xff] }
 0xdd8   : > { %6862 = vmatprep.subr.mxu1 %v7315_v1 }
 0xdda   : > { %6860 = vmatmul.mubr.msk.f32.vlgmr.msra.gmra.mxu1 %vm1548_vm4, %v2840_v10  ;;  %v3432_v10 = vld [vmem:[%s8335_s9 + $0x40] sm:$0xff] }
 0xddb   : > { %6863 = vmatpush3.msra.mxu1 %v3006_v47  ;;  %6864 = vmatprep.mubr.msk.f32.mxu1 %vm7317_vm3, %v7315_v1  ;;  %v3431_v47 = vld [vmem:[%s8335_s9 + $0x38] sm:$0xff] }
 0xddc   : > { %6872 = vmatprep.subr.mxu1 %v7315_v1 }
 0xe9a   : > { %v3081_v48 = vpop.f32.mrf.mxu1 }
 0xe9b   : > { %v3085_v49 = vmul.f32 0.35355338, %v3081_v48  ;;  %v3430_v48 = vld [vmem:[%s8335_s9 + $0x30] sm:$0xff] }
 0xe9c   : > { %v6861_v50 = vpop.f32.mrf.mxu1 }
 0xe9d   : > { %v3086_v51 = vadd.f32 %v3085_v49, %v7662_v40  ;;  %v3429_v49 = vld [vmem:[%s8335_s9 + $0x28] sm:$0xff]  ;;  %v3428_v50 = vld [vmem:[%s8335_s9 + $0x20] sm:$0xff] }
 0xe9f   : > { %v3087_v52 = vsel %vm1548_vm4, %v3086_v51, -inf }
 0xea0   : > { %3088 = vmax.xlane.f32.xlu0 %v3087_v52  ;;  %v3426_v52 = vld [vmem:[%s8335_s9 + $0x10] sm:$0xff] }
 0xf29   : > { %v3089_v53 = vpop.xlane.xlu0 %3088 }
 0xf2a   : > { %v3090_v54 = vsub.f32 %v3086_v51, %v3089_v53  ;;  %v3427_v51 = vld [vmem:[%s8335_s9 + $0x18] sm:$0xff]  ;;  %v3425_v53 = vld [vmem:[%s8335_s9 + $0x8] sm:$0xff] }
 0xf2c   : > { %v3091_v55 = vmul.f32 1.442695, %v3090_v54  ;;  %v3424_v54 = vld [vmem:[%s8335_s9] sm:$0xff] }
 0xf2e   : > { %7233 = vpow2.f32 %v3091_v55  ;;  %v6286_v55 = vld [vmem:[%s8336_s17] ss:$0 sm:$0xff] }
 0xf3b   : > { %v7234_v56 = vpop.eup %7233 }
 0xf3c   : > { %v3093_v58 = vsel %vm1548_vm4, %v7234_v56, 0.0 }
 0xf3d   : > { %3094 = vadd.xlane.f32.xlu1 %v3093_v58 }
 0xfc6   : > { %v3095_v60 = vpop.xlane.xlu1 %3094 }
 0xfc7   : > { %7235 = vrcp.f32 %v3095_v60 }
 0xfd4   : > { %v7236_v61 = vpop.eup %7235 }
 0xfd5   : > { %v3097_v62 = vmul.f32 %v7236_v61, %v7234_v56 }
 0xfd7   : > { %6865 = vmatmul.mubr.msk.f32.vlgmr.msra.gmra.mxu1 %vm1548_vm4, %v3097_v62 }
 0xfd8   : > { %6880 = vmatprep.mubr.msk.f32.mxu1 %vm7317_vm3, %v7315_v1  ;;  %6873 = vmatpush3.msra.mxu1 %v3316_v13 }
 0xfd9   : > { %6874 = vmatprep.subr.mxu1 %v7315_v1 }
 0xfda   : > { %6875 = vmatpush3.msra.mxu1 %v3315_v14 }
 0xfdb   : > { %6876 = vmatprep.subr.mxu1 %v7315_v1 }
0x1097   : > { %v3167_v40 = vpop.f32.mrf.mxu1 }
0x1098   : > { %6870 = vmatmul.mubr.msk.f32.vlgmr.msra.gmra.mxu0 %vm1548_vm4, %v3167_v40 }
0x1099   : > { %v6866_v63 = vpop.f32.mrf.mxu1  ;;  %6915 = vmatprep.mubr.msk.f32.mxu0 %vm7317_vm3, %v7315_v1  ;;  %6884 = vmatpush3.msra.mxu0 %v3439_v38 }
0x109a   : > { %6885 = vmatprep.subr.mxu0 %v7315_v1 }
0x109b   : > { %6886 = vmatpush3.msra.mxu0 %v3438_v39 }
0x109c   : > { %6887 = vmatprep.subr.mxu0 %v7315_v1 }
0x109d   : > { %6888 = vmatpush3.msra.mxu0 %v3437_v41 }
0x109e   : > { %6889 = vmatprep.subr.mxu0 %v7315_v1 }
0x109f   : > { %6890 = vmatpush3.msra.mxu0 %v3436_v42 }
0x10a0   : > { %6891 = vmatprep.subr.mxu0 %v7315_v1 }
0x10a1   : > { %6892 = vmatpush3.msra.mxu0 %v3435_v43 }
0x10a2   : > { %6893 = vmatprep.subr.mxu0 %v7315_v1 }
0x10a3   : > { %6894 = vmatpush3.msra.mxu0 %v3434_v45 }
0x10a4   : > { %6895 = vmatprep.subr.mxu0 %v7315_v1 }
0x10a5   : > { %6896 = vmatpush3.msra.mxu0 %v3433_v46 }
0x10a6   : > { %6897 = vmatprep.subr.mxu0 %v7315_v1 }
0x10a7   : > { %6898 = vmatpush3.msra.mxu0 %v3432_v10  ;;  %v7914_v10 = vld [vmem:[%s7337_s13] sm:$0xff] }
0x10a8   : > { %6899 = vmatprep.subr.mxu0 %v7315_v1 }
0x10a9   : > { %6900 = vmatpush3.msra.mxu0 %v3431_v47 }
0x10aa   : > { %6901 = vmatprep.subr.mxu0 %v7315_v1 }
0x10ab   : > { %6902 = vmatpush3.msra.mxu0 %v3430_v48 }
0x10ac   : > { %6903 = vmatprep.subr.mxu0 %v7315_v1 }
0x10ad   : > { %6904 = vmatpush3.msra.mxu0 %v3429_v49 }
0x10ae   : > { %6905 = vmatprep.subr.mxu0 %v7315_v1 }
0x10af   : > { %6906 = vmatpush3.msra.mxu0 %v3428_v50 }
0x10b0   : > { %6907 = vmatprep.subr.mxu0 %v7315_v1 }
0x10b1   : > { %6908 = vmatpush3.msra.mxu0 %v3427_v51 }
0x10b2   : > { %6909 = vmatprep.subr.mxu0 %v7315_v1 }
0x10b3   : > { %6910 = vmatpush3.msra.mxu0 %v3426_v52 }
0x10b4   : > { %6911 = vmatprep.subr.mxu0 %v7315_v1 }
0x10b5   : > { %6912 = vmatpush3.msra.mxu0 %v3425_v53 }
0x10b6   : > { %6913 = vmatprep.subr.mxu0 %v7315_v1 }
0x10b7   : > { %6914 = vmatpush3.msra.mxu0 %v3424_v54 }
0x10b8   : > { %6956 = vmatprep.subr.mxu0 %v7315_v1 }
0x1158   : > { %v3242_v0 = vpop.f32.mrf.mxu0 }
0x1159   : > { %v3246_v2 = vadd.f32 %v3242_v0, %v2759_v37 }
0x115a   : > { %v6871_v3 = vpop.f32.mrf.mxu0 }
0x115b   : > { %v7836_v4 = vadd.f32 %v3246_v2, %v7568_v34  ;;  %v3314_v34 = vld [vmem:[%s8328_s1 + $0x8] sm:$0xff] }
0x115c   : > { %6877 = vmatpush3.msra.mxu1 %v3314_v34 }
0x115d   : > { %v3248_v5 = vmul.f32 %v7836_v4, %v7565_v31  ;;  %6878 = vmatprep.subr.mxu1 %v7315_v1 }
0x115e   : > { %6879 = vmatpush3.msra.mxu1 %v3313_v15 }
0x115f   : > { %v3251_v6 = vsel %vm1225_vm1, %v3248_v5, 0.0  ;;  %6918 = vmatprep.subr.mxu1 %v7315_v1 }
0x1160   : > { %3252 = vadd.xlane.f32.xlu0 %v3251_v6 }
0x11e9   : > { %v3253_v7 = vpop.xlane.xlu0 %3252 }
0x11ea   : > { %v3254_v8 = vmul.f32 0.03125, %v3253_v7 }
0x11ec   : > { %v3255_v9 = vsub.f32 %v3248_v5, %v3254_v8 }
0x11ee   : > { %v3256_v11 = vmul.f32 %v3255_v9, %v3255_v9 }
0x11f0   : > { %v3257_v12 = vsel %vm1225_vm1, %v3256_v11, 0.0 }
0x11f1   : > { %3258 = vadd.xlane.f32.xlu1 %v3257_v12 }
0x127a   : > { %v3259_v16 = vpop.xlane.xlu1 %3258 }
0x127b   : > { %v3260_v17 = vmul.f32 0.03125, %v3259_v16 }
0x127d   : > { %v3261_v18 = vadd.f32 1e-06, %v3260_v17 }
0x127f   : > { %7237 = vrsqrt.f32 %v3261_v18 }
0x128c   : > { %v7238_v19 = vpop.eup %7237 }
0x128d   : > { %v3263_v22 = vmul.f32 %v7238_v19, %v3255_v9 }
0x128f   : > { %v3270_v25 = vmul.f32 %v6280_v20, %v3263_v22  ;;  %v1032_v22 = vlaneseq }
0x1291   : > { %v3277_v28 = vadd.f32 %v6281_v23, %v3270_v25  ;;  %v1033_v23 = vand.u32 127, %v1032_v22 }
0x1293   : > { %v3278_v32 = vmul.f32 %v3277_v28, %v7565_v31  ;;  %vm1034_vm6 = vcmp.eq.s32.totalorder %v1033_v23, 0 }
0x1294   : > { %v1035_v28 = vsel %vm1034_vm6, 1.0, %v7315_v1 }
0x1295   : > { %v3311_v36 = vmul.f32 %v3296_v33, %v3278_v32 }
0x1297   : > { %v3312_v37 = vadd.f32 %v3311_v36, %v3310_v35 }
0x1299   : > { %6881 = vmatmul.mubr.msk.f32.vlgmr.msra.gmra.mxu1 %vm1225_vm1, %v3312_v37 }
0x129a   : > { %6920 = vmatprep.mubr.msk.f32.mxu1 %vm7317_vm3, %v7315_v1 }
0x1359   : > { %v3393_v56 = vpop.f32.mrf.mxu1 }
0x135a   : > { %v3394_v58 = vadd.f32 %v6286_v55, %v3393_v56 }
0x135b   : > { %v6882_v59 = vpop.f32.mrf.mxu1 }
0x135c   : > { %v3397_v60 = vmul.f32 0.70710677, %v3394_v58  ;;  %v3421_v19 = vmul.f32 0.5, %v3394_v58 }
0x135e   : > { %v3398_v61 = vand.u32 2147483647, %v3397_v60  ;;  %vm3418_vm5 = vcmp.ge.f32.partialorder %v3397_v60, 0.0 }
0x1360   : > { %v3399_v62 = vmul.f32 0.3275911, %v3398_v61  ;;  %v3412_v63 = vsub.f32 0.0, %v3398_v61 }
0x1362   : > { %v3400_v40 = vadd.f32 1.0, %v3399_v62  ;;  %v3413_v0 = vmul.f32 %v3412_v63, %v3398_v61  ;;  %v6309_v61 = vld [vmem:[%s7382_s24 + $0x98] sm:$0xff]  ;;  %v6308_v62 = vld [vmem:[%s7382_s24 + $0x90] sm:$0xff]  ;;  %v6306_v63 = vld [vmem:[%s7382_s24 + $0x80] sm:$0xff] }
0x1364   : > { %7239 = vrcp.f32 %v3400_v40  ;;  %v3414_v5 = vmul.f32 1.442695, %v3413_v0  ;;  %v6307_v40 = vld [vmem:[%s7382_s24 + $0x88] sm:$0xff] }
0x1366   : > { %7241 = vpow2.f32 %v3414_v5 }
0x1371   : > { %v7240_v2 = vpop.eup %7239 }
0x1372   : > { %v3403_v3 = vmul.f32 1.0614054, %v7240_v2 }
0x1373   : > { %v7242_v34 = vpop.eup %7241 }
0x1374   : > { %v3404_v6 = vadd.f32 -1.4531521, %v3403_v3 }
0x1376   : > { %v3405_v7 = vmul.f32 %v7240_v2, %v3404_v6 }
0x1378   : > { %v3406_v8 = vadd.f32 1.4214138, %v3405_v7 }
0x137a   : > { %v3407_v9 = vmul.f32 %v7240_v2, %v3406_v8  ;;  %v6300_v8 = vld [vmem:[%s7362_s3 + $0x1] ss:$0 sm:$0xff] }
0x137c   : > { %v3408_v11 = vadd.f32 -0.28449672, %v3407_v9  ;;  %v6294_v9 = vld [vmem:[%s7352_s25 + $0x1] ss:$0 sm:$0xff] }
0x137e   : > { %v3409_v12 = vmul.f32 %v7240_v2, %v3408_v11 }
0x1380   : > { %v3410_v13 = vadd.f32 0.2548296, %v3409_v12  ;;  %v6302_v12 = vld [vmem:[%s7372_s14 + $0x1] ss:$0 sm:$0xff] }
0x1382   : > { %v3411_v14 = vmul.f32 %v7240_v2, %v3410_v13  ;;  %v6295_v13 = vld [vmem:[%s7357_s29 + $0x1] ss:$0 sm:$0xff] }
0x1384   : > { %v3416_v15 = vmul.f32 %v7242_v34, %v3411_v14  ;;  %v3678_v14 = vmul.f32 %v6300_v8, %v7606_v57  ;;  %v6333_v8 = vld [vmem:[%s7382_s24 + $0xa8] sm:$0xff] }
0x1386   : > { %v3417_v16 = vsub.f32 1.0, %v3416_v15  ;;  %v6301_v15 = vld [vmem:[%s7367_s8 + $0x1] ss:$0 sm:$0xff] }
0x1388   : > { %v3419_v17 = vsub.f32 0.0, %v3417_v16 }
0x138a   : > { %v3420_v18 = vsel %vm3418_vm5, %v3417_v16, %v3419_v17  ;;  %v3692_v16 = vmul.f32 %v6302_v12, %v7606_v57  ;;  %v6348_v12 = vld [vmem:[%s7402_s20 + $0xb0] sm:$0xff] }
0x138b   : > { %v3422_v20 = vadd.f32 1.0, %v3420_v18  ;;  %v6303_v18 = vld [vmem:[%s7377_s19 + $0x1] ss:$0 sm:$0xff] }
0x138d   : > { %v3423_v21 = vmul.f32 %v3422_v20, %v3421_v19  ;;  %v3685_v19 = vadd.f32 %v6301_v15, %v3678_v14  ;;  %v6346_v14 = vld [vmem:[%s7402_s20 + $0xa0] sm:$0xff] }
0x138f   : > { %6916 = vmatmul.mubr.f32.vlgmr.msra.gmra.mxu0 %v3423_v21  ;;  %v3699_v21 = vadd.f32 %v6303_v18, %v3692_v16  ;;  %v6341_v16 = vld [vmem:[%s7392_s6 + $0xb0] sm:$0xff]  ;;  %v6340_v18 = vld [vmem:[%s7392_s6 + $0xa8] sm:$0xff] }
0x1390   : > { %6958 = vmatprep.mubr.msk.f32.mxu0 %vm7317_vm3, %v7315_v1 }
0x144f   : > { %v3513_v25 = vpop.f32.mrf.mxu0 }
0x1450   : > { %v3514_v26 = vadd.f32 %v6288_v24, %v3513_v25  ;;  %v6316_v24 = vld [vmem:[%s7392_s6 + $0x98] sm:$0xff]  ;;  %v6315_v25 = vld [vmem:[%s7392_s6 + $0x90] sm:$0xff] }
0x1451   : > { %v6917_v27 = vpop.f32.mrf.mxu0 }
0x1452   : > { %v3517_v29 = vadd.f32 %v3514_v26, %v7836_v4  ;;  %v6314_v26 = vld [vmem:[%s7392_s6 + $0x88] sm:$0xff]  ;;  %v6313_v27 = vld [vmem:[%s7392_s6 + $0x80] sm:$0xff] }
0x1454   : > { %v3518_v30 = vmul.f32 %v3517_v29, %v1035_v28  ;;  %v7902_v42 = vmul.f32 %v3517_v29, %v7565_v31  ;;  %v6323_v28 = vld [vmem:[%s7402_s20 + $0x98] sm:$0xff] }
0x1456   : > { %v3519_v32 = vsel %vm1225_vm1, %v3518_v30, 0.0  ;;  %v6321_v30 = vld [vmem:[%s7402_s20 + $0x88] sm:$0xff] }
0x1457   : > { %3520 = vadd.xlane.f32.xlu0 %v3519_v32  ;;  %v6320_v32 = vld [vmem:[%s7402_s20 + $0x80] sm:$0xff] }
0x14e0   : > { %v3521_v33 = vpop.xlane.xlu0 %3520 }
0x14e1   : > { %v3522_v35 = vmul.f32 10.0, %v3521_v33 }
0x14e3   : > { %v6289_v36 = vadd.f32 -30.0, %v3522_v35 }
0x14e5   : > { %v3524_v37 = vsub.f32 0.0, %v6289_v36  ;;  %v6318_v36 = vld [vmem:[%s8323_s18 + $0x4] ss:$0 sm:$0xff] }
0x14e7   : > { %v3525_v38 = vmul.f32 1.442695, %v3524_v37 }
0x14e9   : > { %7243 = vpow2.f32 %v3525_v38  ;;  %v6311_v38 = vld [vmem:[%s8324_s22 + $0x4] ss:$0 sm:$0xff] }
0x14f6   : > { %v7244_v39 = vpop.eup %7243 }
0x14f7   : > { %v3527_v41 = vadd.f32 1.0, %v7244_v39 }
0x14f9   : > { %7245 = vrcp.f32 %v3527_v41 }
0x1506   : > { %v7904_v43 = vpop.eup %7245 }
0x1507   : > { %vm3541_vm7 = vcmp.lt.f32.partialorder %v7904_v43, 0.99  ;;  %v7908_v4 = vadd.f32 1.0, %v7904_v43  ;;  %v3545_v45 = vmul.f32 %v7904_v43, %v7902_v42  ;;  %vm3532_vm9 = vcmp.gt.f32.partialorder %v7904_v43, 0.99 }
0x1508   : > { %v3542_v46 = vsel %vm3541_vm7, 1.0, %v7315_v1 }
0x1509   : > { %v3547_v47 = vmul.f32 %v7914_v10, %v3542_v46  ;;  %v7918_v48 = vmul.f32 %v7904_v43, %v3542_v46  ;;  %vm5945_vm8 = vcmp.gt.f32.partialorder %v7908_v4, 0.99  ;;  %v7922_v49 = vmul.f32 %v3545_v45, %v3542_v46  ;;  %v6325_v46 = vld [vmem:[%s8325_s23 + $0x4] ss:$0 sm:$0xff] }
0x150a   : > { %v5946_v31 = vsel %vm5945_vm8, 1.0, %v7315_v1  ;;  %vm5955_vm11 = vcmp.lt.f32.partialorder %v7908_v4, 0.99 }
0x150b   : > { %3552 = vperm.xlu1 %7218, %v3547_v47   ;;  %v3556_v50 = vsub.f32 1.0, %v3547_v47  ;;  %v7924_v51 = vmul.f32 %v5946_v31, %v3547_v47 }
0x150d   : > { %6919 = vmatpush3.xpose.msk.msra.mxu1 %vm1144_vm2, %v3556_v50 }
0x150e   : > { %6923 = vmatprep.subr.mxu1 %v7315_v1 }
0x1510   : > { %6921 = vmatmul.mubr.msk.f32.vlgmr.msra.gmra.mxu1 %vm1144_vm2, %v7318_v44 }
0x1511   : > { %6931 = vmatprep.mubr.msk.f32.mxu1 %vm7317_vm3, %v7315_v1  ;;  %6924 = vmatpush3.msra.mxu1 %v6309_v61 }
0x1512   : > { %6925 = vmatprep.subr.mxu1 %v7315_v1 }
0x1513   : > { %6926 = vmatpush3.msra.mxu1 %v6308_v62 }
0x1514   : > { %6927 = vmatprep.subr.mxu1 %v7315_v1 }
0x1515   : > { %6928 = vmatpush3.msra.mxu1 %v6307_v40 }
0x1516   : > { %6929 = vmatprep.subr.mxu1 %v7315_v1 }
0x1517   : > { %6930 = vmatpush3.msra.mxu1 %v6306_v63 }
0x1518   : > { %6934 = vmatprep.subr.mxu1 %v7315_v1 }
0x1586   : > { %v7932_v52 = vpop.permute.xlu1 %3552 }
0x1587   : > { %v7935_v53 = vmul.f32 %v7932_v52, %v3517_v29  ;;  %v6322_v29 = vld [vmem:[%s7402_s20 + $0x90] sm:$0xff] }
0x1589   : > { %v3631_v54 = vmul.f32 %v7935_v53, %v7932_v52 }
0x158b   : > { %v3636_v55 = vsel %vm1225_vm1, %v3631_v54, 0.0 }
0x158c   : > { %3637 = vadd.xlane.f32.xlu0 %v3636_v55 }
0x15d0   : > { %v7949_v0 = vpop.f32.mrf.mxu1 }
0x15d1   : > { %v8000_v55 = vmul.f32 -1000.0, %v7949_v0  ;;  %v6330_v0 = vld [vmem:[%s8326_s26 + $0x20] sm:$0xff] }
0x15d2   : > { %v6922_v2 = vpop.f32.mrf.mxu1 }
0x1615   : > { %v3638_v56 = vpop.xlane.xlu0 %3637 }
0x1616   : > { %v3639_v58 = vmul.f32 0.03125, %v3638_v56 }
0x1618   : > { %v3640_v44 = vsub.f32 %v3631_v54, %v3639_v58 }
0x161a   : > { %v3641_v59 = vmul.f32 %v3640_v44, %v3640_v44 }
0x161c   : > { %v3642_v60 = vsel %vm1225_vm1, %v3641_v59, 0.0 }
0x161d   : > { %3643 = vadd.xlane.f32.xlu0 %v3642_v60 }
0x16a6   : > { %v3644_v3 = vpop.xlane.xlu0 %3643 }
0x16a7   : > { %v3645_v5 = vmul.f32 0.03125, %v3644_v3 }
0x16a9   : > { %v3646_v6 = vadd.f32 1e-06, %v3645_v5 }
0x16ab   : > { %7247 = vrsqrt.f32 %v3646_v6  ;;  %v6335_v6 = vld [vmem:[%s7382_s24 + $0xb8] sm:$0xff] }
0x16b8   : > { %v7248_v7 = vpop.eup %7247 }
0x16b9   : > { %v3648_v11 = vmul.f32 %v7248_v7, %v3640_v44  ;;  %v6334_v7 = vld [vmem:[%s7382_s24 + $0xb0] sm:$0xff] }
0x16bb   : > { %v3655_v34 = vmul.f32 %v6294_v9, %v3648_v11  ;;  %v6332_v9 = vld [vmem:[%s7382_s24 + $0xa0] sm:$0xff]  ;;  %v6349_v11 = vld [vmem:[%s7402_s20 + $0xb8] sm:$0xff] }
0x16bd   : > { %v3662_v17 = vadd.f32 %v6295_v13, %v3655_v34  ;;  %v6347_v13 = vld [vmem:[%s7402_s20 + $0xa8] sm:$0xff]  ;;  %v6342_v34 = vld [vmem:[%s7392_s6 + $0xb8] sm:$0xff] }
0x16bf   : > { %v3663_v20 = vmul.f32 %v3662_v17, %v7932_v52 }
0x16c1   : > { %v3700_v22 = vmul.f32 %v3685_v19, %v3663_v20  ;;  %v6339_v19 = vld [vmem:[%s7392_s6 + $0xa0] sm:$0xff] }
0x16c3   : > { %v7960_v23 = vadd.f32 %v3700_v22, %v3699_v21 }
0x16c5   : > { %6932 = vmatmul.mubr.msk.f32.vlgmr.msra.gmra.mxu1 %vm1225_vm1, %v7960_v23 }
0x16c6   : > { %6935 = vmatpush3.msra.mxu1 %v6316_v24  ;;  %6942 = vmatprep.mubr.msk.f32.mxu1 %vm7317_vm3, %v7315_v1 }
0x16c7   : > { %6936 = vmatprep.subr.mxu1 %v7315_v1 }
0x16c8   : > { %6937 = vmatpush3.msra.mxu1 %v6315_v25 }
0x16c9   : > { %6938 = vmatprep.subr.mxu1 %v7315_v1 }
0x16ca   : > { %6939 = vmatpush3.msra.mxu1 %v6314_v26 }
0x16cb   : > { %6940 = vmatprep.subr.mxu1 %v7315_v1 }
0x16cc   : > { %6941 = vmatpush3.msra.mxu1 %v6313_v27  ;;  %v6344_v27 = vld [vmem:[%s8323_s18 + $0x5] ss:$0 sm:$0xff] }
0x16cd   : > { %6943 = vmatmul.mubr.msk.f32.vlgmr.msra.gmra.mxu1 %vm1225_vm1, %v7960_v23  ;;  %6945 = vmatprep.subr.mxu1 %v7315_v1 }
0x16ce   : > { %6946 = vmatpush3.msra.mxu1 %v6323_v28  ;;  %6953 = vmatprep.mubr.msk.f32.mxu1 %vm7317_vm3, %v7315_v1 }
0x16cf   : > { %6947 = vmatprep.subr.mxu1 %v7315_v1 }
0x16d0   : > { %6948 = vmatpush3.msra.mxu1 %v6322_v29  ;;  %v6337_v29 = vld [vmem:[%s8324_s22 + $0x5] ss:$0 sm:$0xff] }
0x16d1   : > { %6949 = vmatprep.subr.mxu1 %v7315_v1 }
0x16d2   : > { %6950 = vmatpush3.msra.mxu1 %v6321_v30 }
0x16d3   : > { %6951 = vmatprep.subr.mxu1 %v7315_v1 }
0x16d4   : > { %6952 = vmatpush3.msra.mxu1 %v6320_v32  ;;  %v6351_v32 = vld [vmem:[%s8325_s23 + $0x5] ss:$0 sm:$0xff] }
0x16d5   : > { %6954 = vmatmul.mubr.msk.f32.vlgmr.msra.gmra.mxu1 %vm1225_vm1, %v7960_v23  ;;  %6961 = vmatprep.subr.mxu1 %v7315_v1 }
0x16d6   : > { %6963 = vmatprep.mubr.msk.f32.mxu1 %vm7317_vm3, %v7315_v1 }
0x1785   : > { %v3793_v33 = vpop.f32.mrf.mxu1 }
0x1786   : > { %v3794_v45 = vadd.f32 %v6311_v38, %v3793_v33 }
0x1787   : > { %v6933_v35 = vpop.f32.mrf.mxu1 }
0x178d   : > { %v3876_v37 = vpop.f32.mrf.mxu1 }
0x178e   : > { %v3877_v39 = vadd.f32 %v6318_v36, %v3876_v37 }
0x178f   : > { %v6944_v41 = vpop.f32.mrf.mxu1 }
0x1790   : > { %6957 = vmatpush3.xpose.msk.msra.mxu0 %vm1548_vm4, %v3877_v39 }
0x1791   : > { %6966 = vmatprep.subr.mxu0 %v7315_v1 }
0x1793   : > { %6959 = vmatmul.mubr.msk.f32.vlgmr.msra.gmra.mxu0 %vm1548_vm4, %v3794_v45 }
0x1794   : > { %6968 = vmatprep.mubr.msk.f32.mxu0 %vm7317_vm3, %v7315_v1  ;;  %6967 = vmatpush3.msra.mxu0 %v6330_v0  ;;  %v6373_v0 = vld [vmem:[%s7402_s20 + $0xc8] sm:$0xff] }
0x1795   : > { %v3959_v47 = vpop.f32.mrf.mxu1  ;;  %6982 = vmatprep.subr.mxu0 %v7315_v1 }
0x1796   : > { %v3960_v31 = vadd.f32 %v6325_v46, %v3959_v47 }
0x1797   : > { %v6955_v50 = vpop.f32.mrf.mxu1 }
0x1798   : > { %6962 = vmatpush3.msra.mxu1 %v3960_v31 }
0x1799   : > { %6971 = vmatprep.subr.mxu1 %v7315_v1 }
0x1853   : > { %v4035_v54 = vpop.f32.mrf.mxu0 }
0x1854   : > { %v4039_v56 = vmul.f32 0.35355338, %v4035_v54 }
0x1855   : > { %v6960_v58 = vpop.f32.mrf.mxu0 }
0x1856   : > { %v4040_v44 = vadd.f32 %v4039_v56, %v8000_v55  ;;  %v6356_v56 = vld [vmem:[%s8326_s26 + $0x28] sm:$0xff] }
0x1858   : > { %v4041_v59 = vsel %vm1548_vm4, %v4040_v44, -inf }
0x1859   : > { %4042 = vmax.xlane.f32.xlu0 %v4041_v59  ;;  %v6361_v59 = vld [vmem:[%s7382_s24 + $0xd8] sm:$0xff] }
0x18e2   : > { %v4043_v60 = vpop.xlane.xlu0 %4042 }
0x18e3   : > { %v4044_v61 = vsub.f32 %v4040_v44, %v4043_v60  ;;  %v6360_v60 = vld [vmem:[%s7382_s24 + $0xd0] sm:$0xff] }
0x18e5   : > { %v4045_v62 = vmul.f32 1.442695, %v4044_v61  ;;  %v6359_v61 = vld [vmem:[%s7382_s24 + $0xc8] sm:$0xff] }
0x18e7   : > { %7249 = vpow2.f32 %v4045_v62  ;;  %v6358_v62 = vld [vmem:[%s7382_s24 + $0xc0] sm:$0xff] }
0x18f4   : > { %v7250_v40 = vpop.eup %7249 }
0x18f5   : > { %v4047_v63 = vsel %vm1548_vm4, %v7250_v40, 0.0 }
0x18f6   : > { %4048 = vadd.xlane.f32.xlu0 %v4047_v63  ;;  %v6374_v63 = vld [vmem:[%s7402_s20 + $0xd0] sm:$0xff] }
0x197f   : > { %v4049_v2 = vpop.xlane.xlu0 %4048 }
0x1980   : > { %7251 = vrcp.f32 %v4049_v2  ;;  %v6372_v2 = vld [vmem:[%s7402_s20 + $0xc0] sm:$0xff] }
0x198d   : > { %v7252_v3 = vpop.eup %7251 }
0x198e   : > { %v4051_v5 = vmul.f32 %v7252_v3, %v7250_v40  ;;  %v6375_v40 = vld [vmem:[%s7402_s20 + $0xd8] sm:$0xff] }
0x198f   : > { %v6368_v3 = vld [vmem:[%s7392_s6 + $0xd8] sm:$0xff] }
0x1990   : > { %6964 = vmatmul.mubr.msk.f32.vlgmr.msra.gmra.mxu1 %vm1548_vm4, %v4051_v5 }
0x1991   : > { %6972 = vmatpush3.msra.mxu1 %v6335_v6  ;;  %6979 = vmatprep.mubr.msk.f32.mxu1 %vm7317_vm3, %v7315_v1  ;;  %v6367_v6 = vld [vmem:[%s7392_s6 + $0xd0] sm:$0xff] }
0x1992   : > { %6973 = vmatprep.subr.mxu1 %v7315_v1 }
0x1993   : > { %6974 = vmatpush3.msra.mxu1 %v6334_v7 }
0x1994   : > { %6975 = vmatprep.subr.mxu1 %v7315_v1 }
0x1995   : > { %6976 = vmatpush3.msra.mxu1 %v6333_v8  ;;  %v6366_v8 = vld [vmem:[%s7392_s6 + $0xc8] sm:$0xff] }
0x1996   : > { %6977 = vmatprep.subr.mxu1 %v7315_v1 }
0x1997   : > { %6978 = vmatpush3.msra.mxu1 %v6332_v9  ;;  %v6365_v9 = vld [vmem:[%s7392_s6 + $0xc0] sm:$0xff] }
0x1998   : > { %6980 = vmatmul.mubr.msk.f32.vlgmr.msra.gmra.mxu1 %vm1225_vm1, %v7960_v23  ;;  %6993 = vmatprep.subr.mxu1 %v7315_v1 }
0x1999   : > { %6994 = vmatpush3.msra.mxu1 %v6349_v11  ;;  %7001 = vmatprep.mubr.msk.f32.mxu1 %vm7317_vm3, %v7315_v1 }
0x199a   : > { %6995 = vmatprep.subr.mxu1 %v7315_v1 }
0x199b   : > { %6996 = vmatpush3.msra.mxu1 %v6348_v12 }
0x199c   : > { %6997 = vmatprep.subr.mxu1 %v7315_v1 }
0x199d   : > { %6998 = vmatpush3.msra.mxu1 %v6347_v13 }
0x199e   : > { %6999 = vmatprep.subr.mxu1 %v7315_v1 }
0x199f   : > { %7000 = vmatpush3.msra.mxu1 %v6346_v14 }
0x19a0   : > { %7002 = vmatmul.mubr.msk.f32.vlgmr.msra.gmra.mxu1 %vm1225_vm1, %v7960_v23  ;;  %7014 = vmatprep.subr.mxu1 %v7315_v1 }
0x19a1   : > { %7016 = vmatprep.mubr.msk.f32.mxu1 %vm7317_vm3, %v7315_v1  ;;  %7015 = vmatpush3.msra.mxu1 %v6356_v56  ;;  %v6384_v56 = vld [vmem:[%s7382_s24 + $0xe0] sm:$0xff] }
0x19a2   : > { %7030 = vmatprep.subr.mxu1 %v7315_v1 }
0x1a50   : > { %v4121_v15 = vpop.f32.mrf.mxu1 }
0x1a51   : > { %6969 = vmatmul.mubr.msk.f32.vlgmr.msra.gmra.mxu0 %vm1548_vm4, %v4121_v15 }
0x1a52   : > { %6983 = vmatpush3.msra.mxu0 %v6342_v34  ;;  %v6965_v17 = vpop.f32.mrf.mxu1  ;;  %6990 = vmatprep.mubr.msk.f32.mxu0 %vm7317_vm3, %v7315_v1  ;;  %v6305_v34 = vld [vmem:[%s8327_s28 + $0x1] ss:$0 sm:$0xff] }
0x1a53   : > { %6984 = vmatprep.subr.mxu0 %v7315_v1 }
0x1a54   : > { %6985 = vmatpush3.msra.mxu0 %v6341_v16 }
0x1a55   : > { %6986 = vmatprep.subr.mxu0 %v7315_v1 }
0x1a56   : > { %6987 = vmatpush3.msra.mxu0 %v6340_v18 }
0x1a57   : > { %6988 = vmatprep.subr.mxu0 %v7315_v1 }
0x1a58   : > { %v4280_v20 = vpop.f32.mrf.mxu1  ;;  %6989 = vmatpush3.msra.mxu0 %v6339_v19  ;;  %v6370_v19 = vld [vmem:[%s8323_s18 + $0x6] ss:$0 sm:$0xff] }
0x1a59   : > { %6991 = vmatmul.mubr.msk.f32.vlgmr.msra.gmra.mxu0 %vm1225_vm1, %v7960_v23  ;;  %7004 = vmatprep.subr.mxu0 %v7315_v1  ;;  %v4281_v35 = vadd.f32 %v6337_v29, %v4280_v20 }
0x1a5a   : > { %v6981_v21 = vpop.f32.mrf.mxu1  ;;  %7006 = vmatprep.mubr.msk.f32.mxu0 %vm7317_vm3, %v7315_v1 }
0x1a5b   : > { %v6363_v21 = vld [vmem:[%s8324_s22 + $0x6] ss:$0 sm:$0xff] }
0x1a60   : > { %v4446_v22 = vpop.f32.mrf.mxu1 }
0x1a61   : > { %v4447_v36 = vadd.f32 %v6351_v32, %v4446_v22 }
0x1a62   : > { %v7003_v24 = vpop.f32.mrf.mxu1 }
0x1a63   : > { %v6377_v24 = vld [vmem:[%s8325_s23 + $0x6] ss:$0 sm:$0xff] }
0x1b11   : > { %v8049_v25 = vpop.f32.mrf.mxu0 }
0x1b12   : > { %v4200_v15 = vadd.f32 %v6305_v34, %v8049_v25  ;;  %v6403_v34 = vld [vmem:[%s8325_s23 + $0x7] ss:$0 sm:$0xff] }
0x1b13   : > { %v6970_v26 = vpop.f32.mrf.mxu0 }
0x1b19   : > { %v4363_v28 = vpop.f32.mrf.mxu0 }
0x1b1a   : > { %v4364_v30 = vadd.f32 %v6344_v27, %v4363_v28 }
0x1b1b   : > { %v6992_v33 = vpop.f32.mrf.mxu0 }
0x1b1c   : > { %7005 = vmatpush3.xpose.msk.msra.mxu0 %vm1548_vm4, %v4364_v30 }
0x1b1d   : > { %7009 = vmatprep.subr.mxu0 %v7315_v1 }
0x1b1f   : > { %7007 = vmatmul.mubr.msk.f32.vlgmr.msra.gmra.mxu0 %vm1548_vm4, %v4281_v35 }
0x1b20   : > { %7010 = vmatpush3.msra.mxu0 %v4447_v36  ;;  %7011 = vmatprep.mubr.msk.f32.mxu0 %vm7317_vm3, %v7315_v1 }
0x1b21   : > { %7019 = vmatprep.subr.mxu0 %v7315_v1 }
0x1bdf   : > { %v4522_v37 = vpop.f32.mrf.mxu0 }
0x1be0   : > { %v4526_v38 = vmul.f32 0.35355338, %v4522_v37 }
0x1be1   : > { %v7008_v39 = vpop.f32.mrf.mxu0 }
0x1be2   : > { %v4527_v41 = vadd.f32 %v4526_v38, %v8000_v55 }
0x1be4   : > { %v4528_v45 = vsel %vm1548_vm4, %v4527_v41, -inf }
0x1be5   : > { %4529 = vmax.xlane.f32.xlu1 %v4528_v45 }
0x1bf6   : > { %5951 = vperm.xlu1 %7218, %v7924_v51  }
0x1c6e   : > { %v4530_v46 = vpop.xlane.xlu1 %4529 }
0x1c6f   : > { %v4531_v47 = vsub.f32 %v4527_v41, %v4530_v46  ;;  %v6382_v41 = vld [vmem:[%s8326_s26 + $0x30] sm:$0xff] }
0x1c71   : > { %v4532_v31 = vmul.f32 1.442695, %v4531_v47 }
0x1c73   : > { %7253 = vpow2.f32 %v4532_v31  ;;  %v6387_v31 = vld [vmem:[%s7382_s24 + $0xf8] sm:$0xff] }
0x1c80   : > { %v7254_v50 = vpop.eup %7253 }
0x1c81   : > { %v4534_v54 = vsel %vm1548_vm4, %v7254_v50, 0.0 }
0x1c82   : > { %4535 = vadd.xlane.f32.xlu0 %v4534_v54  ;;  %v6385_v54 = vld [vmem:[%s7382_s24 + $0xe8] sm:$0xff] }
0x1d0b   : > { %v4536_v58 = vpop.xlane.xlu0 %4535 }
0x1d0c   : > { %7255 = vrcp.f32 %v4536_v58  ;;  %v6401_v58 = vld [vmem:[%s7402_s20 + $0xf8] sm:$0xff] }
0x1d19   : > { %v7256_v44 = vpop.eup %7255 }
0x1d1a   : > { %v4538_v51 = vmul.f32 %v7256_v44, %v7254_v50  ;;  %v6386_v50 = vld [vmem:[%s7382_s24 + $0xf0] sm:$0xff] }
0x1d1b   : > { %v6400_v44 = vld [vmem:[%s7402_s20 + $0xf0] sm:$0xff] }
0x1d1c   : > { %7012 = vmatmul.mubr.msk.f32.vlgmr.msra.gmra.mxu0 %vm1548_vm4, %v4538_v51  ;;  %v6399_v51 = vld [vmem:[%s7402_s20 + $0xe8] sm:$0xff] }
0x1d1d   : > { %7020 = vmatpush3.msra.mxu0 %v6361_v59  ;;  %7027 = vmatprep.mubr.msk.f32.mxu0 %vm7317_vm3, %v7315_v1  ;;  %v6398_v59 = vld [vmem:[%s7402_s20 + $0xe0] sm:$0xff] }
0x1d1e   : > { %7021 = vmatprep.subr.mxu0 %v7315_v1 }
0x1d1f   : > { %7022 = vmatpush3.msra.mxu0 %v6360_v60  ;;  %v6394_v60 = vld [vmem:[%s7392_s6 + $0xf8] sm:$0xff] }
0x1d20   : > { %7023 = vmatprep.subr.mxu0 %v7315_v1 }
0x1d21   : > { %7024 = vmatpush3.msra.mxu0 %v6359_v61 }
0x1d22   : > { %7025 = vmatprep.subr.mxu0 %v7315_v1 }
0x1d23   : > { %7026 = vmatpush3.msra.mxu0 %v6358_v62  ;;  %v6393_v62 = vld [vmem:[%s7392_s6 + $0xf0] sm:$0xff] }
0x1d24   : > { %7028 = vmatmul.mubr.msk.f32.vlgmr.msra.gmra.mxu0 %vm1225_vm1, %v7960_v23  ;;  %7041 = vmatprep.subr.mxu0 %v7315_v1 }
0x1d25   : > { %7042 = vmatpush3.msra.mxu0 %v6375_v40  ;;  %7049 = vmatprep.mubr.msk.f32.mxu0 %vm7317_vm3, %v7315_v1 }
0x1d26   : > { %7043 = vmatprep.subr.mxu0 %v7315_v1 }
0x1d27   : > { %7044 = vmatpush3.msra.mxu0 %v6374_v63  ;;  %v6392_v63 = vld [vmem:[%s7392_s6 + $0xe8] sm:$0xff] }
0x1d28   : > { %7045 = vmatprep.subr.mxu0 %v7315_v1 }
0x1d29   : > { %7046 = vmatpush3.msra.mxu0 %v6373_v0  ;;  %v6391_v0 = vld [vmem:[%s7392_s6 + $0xe0] sm:$0xff] }
0x1d2a   : > { %7047 = vmatprep.subr.mxu0 %v7315_v1 }
0x1d2b   : > { %7048 = vmatpush3.msra.mxu0 %v6372_v2 }
0x1d2c   : > { %7050 = vmatmul.mubr.msk.f32.vlgmr.msra.gmra.mxu0 %vm1225_vm1, %v7960_v23  ;;  %7062 = vmatprep.subr.mxu0 %v7315_v1 }
0x1d2d   : > { %7064 = vmatprep.mubr.msk.f32.mxu0 %vm7317_vm3, %v7315_v1  ;;  %7063 = vmatpush3.msra.mxu0 %v6382_v41 }
0x1d2e   : > { %7078 = vmatprep.subr.mxu0 %v7315_v1 }
0x1ddc   : > { %v4608_v5 = vpop.f32.mrf.mxu0 }
0x1ddd   : > { %7017 = vmatmul.mubr.msk.f32.vlgmr.msra.gmra.mxu1 %vm1548_vm4, %v4608_v5 }
0x1dde   : > { %7031 = vmatpush3.msra.mxu1 %v6368_v3  ;;  %v7013_v7 = vpop.f32.mrf.mxu0  ;;  %7038 = vmatprep.mubr.msk.f32.mxu1 %vm7317_vm3, %v7315_v1 }
0x1ddf   : > { %7032 = vmatprep.subr.mxu1 %v7315_v1 }
0x1de0   : > { %7033 = vmatpush3.msra.mxu1 %v6367_v6 }
0x1de1   : > { %7034 = vmatprep.subr.mxu1 %v7315_v1 }
0x1de2   : > { %7035 = vmatpush3.msra.mxu1 %v6366_v8 }
0x1de3   : > { %7036 = vmatprep.subr.mxu1 %v7315_v1 }
0x1de4   : > { %v4767_v11 = vpop.f32.mrf.mxu0  ;;  %7037 = vmatpush3.msra.mxu1 %v6365_v9 }
0x1de5   : > { %7039 = vmatmul.mubr.msk.f32.vlgmr.msra.gmra.mxu1 %vm1225_vm1, %v7960_v23  ;;  %7052 = vmatprep.subr.mxu1 %v7315_v1  ;;  %v4768_v27 = vadd.f32 %v6363_v21, %v4767_v11  ;;  %v6396_v11 = vld [vmem:[%s8323_s18 + $0x7] ss:$0 sm:$0xff] }
0x1de6   : > { %v7029_v12 = vpop.f32.mrf.mxu0  ;;  %7054 = vmatprep.mubr.msk.f32.mxu1 %vm7317_vm3, %v7315_v1 }
0x1dec   : > { %v4933_v13 = vpop.f32.mrf.mxu0 }
0x1ded   : > { %v4934_v28 = vadd.f32 %v6377_v24, %v4933_v13  ;;  %v6389_v13 = vld [vmem:[%s8324_s22 + $0x7] ss:$0 sm:$0xff] }
0x1dee   : > { %v7051_v14 = vpop.f32.mrf.mxu0 }
0x1e9d   : > { %v4683_v16 = vpop.f32.mrf.mxu1 }
0x1e9e   : > { %v8110_v17 = vadd.f32 %v4683_v16, %v4200_v15 }
0x1e9f   : > { %v7018_v18 = vpop.f32.mrf.mxu1 }
0x1ea5   : > { %v4850_v20 = vpop.f32.mrf.mxu1 }
0x1ea6   : > { %v4851_v22 = vadd.f32 %v6370_v19, %v4850_v20 }
0x1ea7   : > { %v7040_v26 = vpop.f32.mrf.mxu1 }
0x1ea8   : > { %7053 = vmatpush3.xpose.msk.msra.mxu1 %vm1548_vm4, %v4851_v22 }
0x1ea9   : > { %7057 = vmatprep.subr.mxu1 %v7315_v1 }
0x1eab   : > { %7055 = vmatmul.mubr.msk.f32.vlgmr.msra.gmra.mxu1 %vm1548_vm4, %v4768_v27 }
0x1eac   : > { %7058 = vmatpush3.msra.mxu1 %v4934_v28  ;;  %7059 = vmatprep.mubr.msk.f32.mxu1 %vm7317_vm3, %v7315_v1 }
0x1ead   : > { %7067 = vmatprep.subr.mxu1 %v7315_v1 }
0x1f6b   : > { %v5009_v25 = vpop.f32.mrf.mxu1 }
0x1f6c   : > { %v5013_v29 = vmul.f32 0.35355338, %v5009_v25  ;;  %v6408_v25 = vld [vmem:[%s8326_s26 + $0x38] sm:$0xff] }
0x1f6d   : > { %v7056_v30 = vpop.f32.mrf.mxu1 }
0x1f6e   : > { %v5014_v32 = vadd.f32 %v5013_v29, %v8000_v55 }
0x1f70   : > { %v5015_v33 = vsel %vm1548_vm4, %v5014_v32, -inf }
0x1f71   : > { %5016 = vmax.xlane.f32.xlu0 %v5015_v33 }
0x1ffa   : > { %v5017_v35 = vpop.xlane.xlu0 %5016 }
0x1ffb   : > { %v5018_v36 = vsub.f32 %v5014_v32, %v5017_v35 }
0x1ffd   : > { %v5019_v37 = vmul.f32 1.442695, %v5018_v36 }
0x1fff   : > { %7257 = vpow2.f32 %v5019_v37 }
0x200c   : > { %v7258_v38 = vpop.eup %7257 }
0x200d   : > { %v5021_v39 = vsel %vm1548_vm4, %v7258_v38, 0.0 }
0x200e   : > { %5022 = vadd.xlane.f32.xlu0 %v5021_v39 }
0x2097   : > { %v5023_v45 = vpop.xlane.xlu0 %5022 }
0x2098   : > { %7259 = vrcp.f32 %v5023_v45 }
0x20a5   : > { %v7260_v46 = vpop.eup %7259 }
0x20a6   : > { %v5025_v47 = vmul.f32 %v7260_v46, %v7258_v38 }
0x20a8   : > { %7060 = vmatmul.mubr.msk.f32.vlgmr.msra.gmra.mxu1 %vm1548_vm4, %v5025_v47 }
0x20a9   : > { %7068 = vmatpush3.msra.mxu1 %v6387_v31  ;;  %7075 = vmatprep.mubr.msk.f32.mxu1 %vm7317_vm3, %v7315_v1 }
0x20aa   : > { %7069 = vmatprep.subr.mxu1 %v7315_v1 }
0x20ab   : > { %7070 = vmatpush3.msra.mxu1 %v6386_v50 }
0x20ac   : > { %7071 = vmatprep.subr.mxu1 %v7315_v1 }
0x20ad   : > { %7072 = vmatpush3.msra.mxu1 %v6385_v54 }
0x20ae   : > { %7073 = vmatprep.subr.mxu1 %v7315_v1 }
0x20af   : > { %7074 = vmatpush3.msra.mxu1 %v6384_v56  ;;  %v6425_v56 = vld [vmem:[%s8328_s1 + $0x38] sm:$0xff] }
0x20b0   : > { %7076 = vmatmul.mubr.msk.f32.vlgmr.msra.gmra.mxu1 %vm1225_vm1, %v7960_v23  ;;  %7089 = vmatprep.subr.mxu1 %v7315_v1 }
0x20b1   : > { %7090 = vmatpush3.msra.mxu1 %v6401_v58  ;;  %7097 = vmatprep.mubr.msk.f32.mxu1 %vm7317_vm3, %v7315_v1  ;;  %v6424_v58 = vld [vmem:[%s8328_s1 + $0x30] sm:$0xff] }
0x20b2   : > { %7091 = vmatprep.subr.mxu1 %v7315_v1 }
0x20b3   : > { %7092 = vmatpush3.msra.mxu1 %v6400_v44  ;;  %v6423_v44 = vld [vmem:[%s8328_s1 + $0x28] sm:$0xff] }
0x20b4   : > { %7093 = vmatprep.subr.mxu1 %v7315_v1 }
0x20b5   : > { %7094 = vmatpush3.msra.mxu1 %v6399_v51  ;;  %v6422_v51 = vld [vmem:[%s8328_s1 + $0x20] sm:$0xff]  ;;  %s8339_s1 = sshll.u32 %s8341_s10, 3 }
0x20b6   : > { %7095 = vmatprep.subr.mxu1 %v7315_v1 }
0x20b7   : > { %7096 = vmatpush3.msra.mxu1 %v6398_v59 }
0x20b8   : > { %7098 = vmatmul.mubr.msk.f32.vlgmr.msra.gmra.mxu1 %vm1225_vm1, %v7960_v23  ;;  %7110 = vmatprep.subr.mxu1 %v7315_v1 }
0x20b9   : > { %7112 = vmatprep.mubr.msk.f32.mxu1 %vm7317_vm3, %v7315_v1  ;;  %7111 = vmatpush3.msra.mxu1 %v6408_v25  ;;  %v6429_v25 = vld [vmem:[%s8335_s9 + $0x80] sm:$0xff] }
0x20ba   : > { %7126 = vmatprep.subr.mxu1 %v7315_v1 }
0x2168   : > { %v5095_v61 = vpop.f32.mrf.mxu1 }
0x2169   : > { %7065 = vmatmul.mubr.msk.f32.vlgmr.msra.gmra.mxu0 %vm1548_vm4, %v5095_v61  ;;  %v6412_v61 = vld [vmem:[%s8329_s2 + $0x1] ss:$0 sm:$0xff]  ;;  %s1029_s2 = scalar_lea.vmem %s7492_s4, %s8339_s1 }
0x216a   : > { %7079 = vmatpush3.msra.mxu0 %v6394_v60  ;;  %v7061_v40 = vpop.f32.mrf.mxu1  ;;  %7086 = vmatprep.mubr.msk.f32.mxu0 %vm7317_vm3, %v7315_v1 }
0x216b   : > { %7080 = vmatprep.subr.mxu0 %v7315_v1 }
0x216c   : > { %7081 = vmatpush3.msra.mxu0 %v6393_v62  ;;  %v6418_v62 = vld [vmem:[%s8330_s0 + $0x1] ss:$0 sm:$0xff]  ;;  %s8338_s0 = sld [smem:[#allocation21_spill]] }
0x216d   : > { %7082 = vmatprep.subr.mxu0 %v7315_v1 }
0x216e   : > { %7083 = vmatpush3.msra.mxu0 %v6392_v63  ;;  %v6413_v63 = vld [vmem:[%s8331_s11 + $0x1] ss:$0 sm:$0xff] }
0x216f   : > { %7084 = vmatprep.subr.mxu0 %v7315_v1 }
0x2170   : > { %v5254_v2 = vpop.f32.mrf.mxu1  ;;  %7085 = vmatpush3.msra.mxu0 %v6391_v0  ;;  %v6420_v0 = vld [vmem:[%s8332_s16 + $0x1] ss:$0 sm:$0xff] }
0x2171   : > { %7087 = vmatmul.mubr.msk.f32.vlgmr.msra.gmra.mxu0 %vm1225_vm1, %v7960_v23  ;;  %7100 = vmatprep.subr.mxu0 %v7315_v1  ;;  %v5255_v23 = vadd.f32 %v6389_v13, %v5254_v2 }
0x2172   : > { %v7077_v3 = vpop.f32.mrf.mxu1  ;;  %7102 = vmatprep.mubr.msk.f32.mxu0 %vm7317_vm3, %v7315_v1 }
0x2173   : > { %v5710_v3 = vmul.f32 %v6418_v62, %v7606_v57 }
0x2178   : > { %v5420_v5 = vpop.f32.mrf.mxu1 }
0x2179   : > { %v5421_v16 = vadd.f32 %v6403_v34, %v5420_v5  ;;  %v6419_v5 = vld [vmem:[%s8333_s15 + $0x1] ss:$0 sm:$0xff]  ;;  %v6444_v34 = vld [vmem:[%s8335_s9 + $0xf8] sm:$0xff] }
0x217a   : > { %v7099_v6 = vpop.f32.mrf.mxu1 }
0x2229   : > { %v5170_v7 = vpop.f32.mrf.mxu0 }
0x222a   : > { %v5174_v8 = vadd.f32 %v5170_v7, %v8110_v17  ;;  %v5724_v7 = vmul.f32 %v6420_v0, %v7606_v57  ;;  %v6443_v57 = vld [vmem:[%s8335_s9 + $0xf0] sm:$0xff]  ;;  %v6446_v0 = vld [vmem:[%s8337_s21 + $0x1] ss:$0 sm:$0xff] }
0x222b   : > { %v7066_v9 = vpop.f32.mrf.mxu0 }
0x2231   : > { %v5337_v12 = vpop.f32.mrf.mxu0 }
0x2232   : > { %v5338_v14 = vadd.f32 %v6396_v11, %v5337_v12  ;;  %v5717_v11 = vadd.f32 %v6419_v5, %v5710_v3 }
0x2233   : > { %v7088_v15 = vpop.f32.mrf.mxu0 }
0x2234   : > { %7101 = vmatpush3.xpose.msk.msra.mxu0 %vm1548_vm4, %v5338_v14  ;;  %v6442_v15 = vld [vmem:[%s8335_s9 + $0xe8] sm:$0xff] }
0x2235   : > { %7105 = vmatprep.subr.mxu0 %v7315_v1 }
0x2237   : > { %7103 = vmatmul.mubr.msk.f32.vlgmr.msra.gmra.mxu0 %vm1548_vm4, %v5255_v23  ;;  %v6441_v23 = vld [vmem:[%s8335_s9 + $0xe0] sm:$0xff] }
0x2238   : > { %7106 = vmatpush3.msra.mxu0 %v5421_v16  ;;  %7107 = vmatprep.mubr.msk.f32.mxu0 %vm7317_vm3, %v7315_v1  ;;  %v6440_v16 = vld [vmem:[%s8335_s9 + $0xd8] sm:$0xff] }
0x2239   : > { %7115 = vmatprep.subr.mxu0 %v7315_v1 }
0x22f7   : > { %v5496_v17 = vpop.f32.mrf.mxu0 }
0x22f8   : > { %v5500_v18 = vmul.f32 0.35355338, %v5496_v17  ;;  %v6439_v17 = vld [vmem:[%s8335_s9 + $0xd0] sm:$0xff] }
0x22f9   : > { %v7104_v19 = vpop.f32.mrf.mxu0 }
0x22fa   : > { %v5501_v20 = vadd.f32 %v5500_v18, %v8000_v55  ;;  %v6438_v18 = vld [vmem:[%s8335_s9 + $0xc8] sm:$0xff]  ;;  %v6437_v19 = vld [vmem:[%s8335_s9 + $0xc0] sm:$0xff] }
0x22fc   : > { %v5502_v21 = vsel %vm1548_vm4, %v5501_v20, -inf }
0x22fd   : > { %5503 = vmax.xlane.f32.xlu0 %v5502_v21  ;;  %v6435_v21 = vld [vmem:[%s8335_s9 + $0xb0] sm:$0xff] }
0x2386   : > { %v5504_v22 = vpop.xlane.xlu0 %5503 }
0x2387   : > { %v5505_v24 = vsub.f32 %v5501_v20, %v5504_v22  ;;  %v6436_v20 = vld [vmem:[%s8335_s9 + $0xb8] sm:$0xff]  ;;  %v6434_v22 = vld [vmem:[%s8335_s9 + $0xa8] sm:$0xff] }
0x2389   : > { %v5506_v26 = vmul.f32 1.442695, %v5505_v24  ;;  %v6433_v24 = vld [vmem:[%s8335_s9 + $0xa0] sm:$0xff] }
0x238b   : > { %7261 = vpow2.f32 %v5506_v26  ;;  %v6432_v26 = vld [vmem:[%s8335_s9 + $0x98] sm:$0xff] }
0x2398   : > { %v7262_v27 = vpop.eup %7261 }
0x2399   : > { %v5508_v28 = vsel %vm1548_vm4, %v7262_v27, 0.0 }
0x239a   : > { %5509 = vadd.xlane.f32.xlu0 %v5508_v28  ;;  %v6430_v28 = vld [vmem:[%s8335_s9 + $0x88] sm:$0xff] }
0x2423   : > { %v5510_v29 = vpop.xlane.xlu0 %5509 }
0x2424   : > { %7263 = vrcp.f32 %v5510_v29  ;;  %v6427_v29 = vld [vmem:[%s8336_s17 + $0x1] ss:$0 sm:$0xff] }
0x2431   : > { %v7264_v30 = vpop.eup %7263 }
0x2432   : > { %v5512_v32 = vmul.f32 %v7264_v30, %v7262_v27  ;;  %v6431_v27 = vld [vmem:[%s8335_s9 + $0x90] sm:$0xff] }
0x2434   : > { %7108 = vmatmul.mubr.msk.f32.vlgmr.msra.gmra.mxu0 %vm1548_vm4, %v5512_v32 }
0x2435   : > { %7123 = vmatprep.mubr.msk.f32.mxu0 %vm7317_vm3, %v7315_v1  ;;  %7116 = vmatpush3.msra.mxu0 %v6425_v56 }
0x2436   : > { %7117 = vmatprep.subr.mxu0 %v7315_v1 }
0x2437   : > { %7118 = vmatpush3.msra.mxu0 %v6424_v58 }
0x2438   : > { %7119 = vmatprep.subr.mxu0 %v7315_v1 }
0x2439   : > { %7120 = vmatpush3.msra.mxu0 %v6423_v44 }
0x243a   : > { %7121 = vmatprep.subr.mxu0 %v7315_v1 }
0x243b   : > { %7122 = vmatpush3.msra.mxu0 %v6422_v51 }
0x243c   : > { %7161 = vmatprep.subr.mxu0 %v7315_v1 }
0x24f4   : > { %v5582_v55 = vpop.f32.mrf.mxu0 }
0x24f5   : > { %7113 = vmatmul.mubr.msk.f32.vlgmr.msra.gmra.mxu1 %vm1548_vm4, %v5582_v55 }
0x24f6   : > { %v7109_v33 = vpop.f32.mrf.mxu0  ;;  %7158 = vmatprep.mubr.msk.f32.mxu1 %vm7317_vm3, %v7315_v1  ;;  %7127 = vmatpush3.msra.mxu1 %v6444_v34 }
0x24f7   : > { %7128 = vmatprep.subr.mxu1 %v7315_v1 }
0x24f8   : > { %7129 = vmatpush3.msra.mxu1 %v6443_v57  ;;  %v5956_v57 = vsel %vm5955_vm11, 1.0, %v7315_v1 }
0x24f9   : > { %7130 = vmatprep.subr.mxu1 %v7315_v1 }
0x24fa   : > { %7131 = vmatpush3.msra.mxu1 %v6442_v15 }
0x24fb   : > { %7132 = vmatprep.subr.mxu1 %v7315_v1 }
0x24fc   : > { %7133 = vmatpush3.msra.mxu1 %v6441_v23 }
0x24fd   : > { %7134 = vmatprep.subr.mxu1 %v7315_v1 }
0x24fe   : > { %7135 = vmatpush3.msra.mxu1 %v6440_v16 }
0x24ff   : > { %7136 = vmatprep.subr.mxu1 %v7315_v1 }
0x2500   : > { %7137 = vmatpush3.msra.mxu1 %v6439_v17 }
0x2501   : > { %7138 = vmatprep.subr.mxu1 %v7315_v1 }
0x2502   : > { %7139 = vmatpush3.msra.mxu1 %v6438_v18  ;;  %v5991_v18 = vld [vmem:[%s7482_s12 + $0x10] sm:$0xff] }
0x2503   : > { %7140 = vmatprep.subr.mxu1 %v7315_v1 }
0x2504   : > { %7141 = vmatpush3.msra.mxu1 %v6437_v19  ;;  %v5990_v19 = vld [vmem:[%s7482_s12 + $0x8] sm:$0xff] }
0x2505   : > { %7142 = vmatprep.subr.mxu1 %v7315_v1 }
0x2506   : > { %7143 = vmatpush3.msra.mxu1 %v6436_v20  ;;  %v5989_v20 = vld [vmem:[%s7482_s12] sm:$0xff] }
0x2507   : > { %7144 = vmatprep.subr.mxu1 %v7315_v1 }
0x2508   : > { %7145 = vmatpush3.msra.mxu1 %v6435_v21 }
0x2509   : > { %7146 = vmatprep.subr.mxu1 %v7315_v1 }
0x250a   : > { %7147 = vmatpush3.msra.mxu1 %v6434_v22 }
0x250b   : > { %7148 = vmatprep.subr.mxu1 %v7315_v1 }
0x250c   : > { %7149 = vmatpush3.msra.mxu1 %v6433_v24 }
0x250d   : > { %7150 = vmatprep.subr.mxu1 %v7315_v1 }
0x250e   : > { %7151 = vmatpush3.msra.mxu1 %v6432_v26 }
0x250f   : > { %7152 = vmatprep.subr.mxu1 %v7315_v1 }
0x2510   : > { %7153 = vmatpush3.msra.mxu1 %v6431_v27  ;;  %v6447_v27 = vld [vmem:[%s8338_s0] ss:$0 sm:$0xff] }
0x2511   : > { %7154 = vmatprep.subr.mxu1 %v7315_v1 }
0x2512   : > { %7155 = vmatpush3.msra.mxu1 %v6430_v28 }
0x2513   : > { %7156 = vmatprep.subr.mxu1 %v7315_v1 }
0x2514   : > { %7157 = vmatpush3.msra.mxu1 %v6429_v25  ;;  %v6448_v25 = vld [vmem:[%s7477_s30] ss:$0 sm:$0xff] }
0x25b5   : > { %v5657_v35 = vpop.f32.mrf.mxu1 }
0x25b6   : > { %v5661_v36 = vadd.f32 %v5657_v35, %v5174_v8  ;;  %v6421_v8 = vld [vmem:[%s8334_s5 + $0x1] ss:$0 sm:$0xff] }
0x25b7   : > { %v7114_v37 = vpop.f32.mrf.mxu1  ;;  %v5731_v12 = vadd.f32 %v6421_v8, %v5724_v7 }
0x25b8   : > { %v8190_v38 = vadd.f32 %v5661_v36, %v7935_v53  ;;  %v3533_v53 = vsel %vm3532_vm9, 1.0, %v7315_v1 }
0x25b9   : > { %v3534_v54 = vmul.f32 %v7914_v10, %v3533_v53 }
0x25ba   : > { %v5663_v39 = vmul.f32 %v8190_v38, %v7932_v52 }
0x25bc   : > { %v5668_v41 = vsel %vm1225_vm1, %v5663_v39, 0.0 }
0x25bd   : > { %5669 = vadd.xlane.f32.xlu0 %v5668_v41 }
0x2646   : > { %v5670_v45 = vpop.xlane.xlu0 %5669 }
0x2647   : > { %v5671_v46 = vmul.f32 0.03125, %v5670_v45 }
0x2649   : > { %v5672_v47 = vsub.f32 %v5663_v39, %v5671_v46 }
0x264b   : > { %v5673_v31 = vmul.f32 %v5672_v47, %v5672_v47 }
0x264d   : > { %v5674_v50 = vsel %vm1225_vm1, %v5673_v31, 0.0 }
0x264e   : > { %5675 = vadd.xlane.f32.xlu0 %v5674_v50 }
0x2664   : > { %3537 = vperm.xlu0 %7217, %v3534_v54  }
0x26d7   : > { %v5676_v43 = vpop.xlane.xlu0 %5675 }
0x26d8   : > { %v5677_v10 = vmul.f32 0.03125, %v5676_v43 }
0x26da   : > { %v5678_v59 = vadd.f32 1e-06, %v5677_v10 }
0x26dc   : > { %7265 = vrsqrt.f32 %v5678_v59 }
0x26df   : > { %v3538_v5 = vpop.permute.xlu0 %3537 }
0x26e0   : > { %v3540_v8 = vmul.f32 %v3538_v5, %v7902_v42 }
0x26e9   : > { %v7266_v60 = vpop.eup %7265 }
0x26ea   : > { %v5680_v40 = vmul.f32 %v7266_v60, %v5672_v47 }
0x26ec   : > { %v5687_v2 = vmul.f32 %v6412_v61, %v5680_v40 }
0x26ee   : > { %v5694_v6 = vadd.f32 %v6413_v63, %v5687_v2 }
0x26f0   : > { %v5695_v9 = vmul.f32 %v5694_v6, %v7932_v52 }
0x26f2   : > { %v5732_v13 = vmul.f32 %v5717_v11, %v5695_v9  ;;  %v3544_v9 = vsub.f32 1.0, %v7918_v48 }
0x26f4   : > { %v5733_v14 = vadd.f32 %v5732_v13, %v5731_v12  ;;  %v5952_v13 = vpop.permute.xlu1 %5951 }
0x26f6   : > { %7124 = vmatmul.mubr.msk.f32.vlgmr.msra.gmra.mxu0 %vm1225_vm1, %v5733_v14  ;;  %v3549_v14 = vadd.f32 %v7922_v49, %v3540_v8  ;;  %v5992_v49 = vld [vmem:[%s7482_s12 + $0x18] sm:$0xff] }
0x26f7   : > { %7169 = vmatprep.mubr.msk.f32.mxu0 %vm7317_vm3, %v7315_v1  ;;  %7162 = vmatpush3.msra.mxu0 %v5992_v49 }
0x26f8   : > { %7163 = vmatprep.subr.mxu0 %v7315_v1 }
0x26f9   : > { %7164 = vmatpush3.msra.mxu0 %v5991_v18 }
0x26fa   : > { %7165 = vmatprep.subr.mxu0 %v7315_v1 }
0x26fb   : > { %7166 = vmatpush3.msra.mxu0 %v5990_v19 }
0x26fc   : > { %7167 = vmatprep.subr.mxu0 %v7315_v1 }
0x26fd   : > { %7168 = vmatpush3.msra.mxu0 %v5989_v20 }
0x27b6   : > { %v5816_v30 = vpop.f32.mrf.mxu0 }
0x27b7   : > { %v5817_v32 = vadd.f32 %v6427_v29, %v5816_v30 }
0x27b8   : > { %v7125_v55 = vpop.f32.mrf.mxu0 }
0x27b9   : > { %v5820_v33 = vmul.f32 0.70710677, %v5817_v32  ;;  %v5844_v62 = vmul.f32 0.5, %v5817_v32  ;;  %v6449_v32 = vld [vmem:[%s7487_s27] ss:$0 sm:$0xff] }
0x27bb   : > { %v5821_v35 = vand.u32 2147483647, %v5820_v33  ;;  %vm5841_vm10 = vcmp.ge.f32.partialorder %v5820_v33, 0.0 }
0x27bd   : > { %v5822_v36 = vmul.f32 0.3275911, %v5821_v35  ;;  %v5835_v39 = vsub.f32 0.0, %v5821_v35 }
0x27bf   : > { %v5823_v37 = vadd.f32 1.0, %v5822_v36  ;;  %v5836_v41 = vmul.f32 %v5835_v39, %v5821_v35 }
0x27c1   : > { %7267 = vrcp.f32 %v5823_v37  ;;  %v5837_v47 = vmul.f32 1.442695, %v5836_v41 }
0x27c3   : > { %7269 = vpow2.f32 %v5837_v47 }
0x27ce   : > { %v7268_v45 = vpop.eup %7267 }
0x27cf   : > { %v5826_v46 = vmul.f32 1.0614054, %v7268_v45 }
0x27d0   : > { %v7270_v43 = vpop.eup %7269 }
0x27d1   : > { %v5827_v31 = vadd.f32 -1.4531521, %v5826_v46 }
0x27d3   : > { %v5828_v50 = vmul.f32 %v7268_v45, %v5827_v31 }
0x27d5   : > { %v5829_v53 = vadd.f32 1.4214138, %v5828_v50 }
0x27d7   : > { %v5830_v54 = vmul.f32 %v7268_v45, %v5829_v53 }
0x27d9   : > { %v5831_v56 = vadd.f32 -0.28449672, %v5830_v54 }
0x27db   : > { %v5832_v58 = vmul.f32 %v7268_v45, %v5831_v56 }
0x27dd   : > { %v5833_v44 = vadd.f32 0.2548296, %v5832_v58 }
0x27df   : > { %v5834_v51 = vmul.f32 %v7268_v45, %v5833_v44 }
0x27e1   : > { %v5839_v10 = vmul.f32 %v7270_v43, %v5834_v51 }
0x27e3   : > { %v5840_v59 = vsub.f32 1.0, %v5839_v10 }
0x27e5   : > { %v5842_v60 = vsub.f32 0.0, %v5840_v59 }
0x27e7   : > { %v5843_v61 = vsel %vm5841_vm10, %v5840_v59, %v5842_v60 }
0x27e8   : > { %v5845_v40 = vadd.f32 1.0, %v5843_v61 }
0x27ea   : > { %v5846_v63 = vmul.f32 %v5845_v40, %v5844_v62 }
0x27ec   : > { %7159 = vmatmul.mubr.f32.vlgmr.msra.gmra.mxu1 %v5846_v63 }
0x28ac   : > { %v5938_v2 = vpop.f32.mrf.mxu1 }
0x28ad   : > { %v5939_v3 = vadd.f32 %v6446_v0, %v5938_v2 }
0x28ae   : > { %v7160_v6 = vpop.f32.mrf.mxu1 }
0x28af   : > { %v5942_v7 = vadd.f32 %v5939_v3, %v8190_v38 }
0x28b1   : > { %v5943_v11 = vmul.f32 %v5942_v7, %v7932_v52 }
0x28b3   : > { %v5948_v12 = vmul.f32 %v5943_v11, %v3544_v9  ;;  %v5957_v15 = vmul.f32 %v5956_v57, %v5943_v11 }
0x28b5   : > { %v5954_v34 = vmul.f32 %v5952_v13, %v5948_v12 }
0x28b7   : > { %v5958_v38 = vadd.f32 %v5954_v34, %v3549_v14 }
0x28b9   : > { %v5959_v23 = vadd.f32 %v5958_v38, %v5957_v15 }
0x28bb   : > { %v5962_v42 = vsel %vm1225_vm1, %v5959_v23, 0.0 }
0x28bc   : > { %5963 = vadd.xlane.f32.xlu0 %v5962_v42 }
0x2945   : > { %v5964_v48 = vpop.xlane.xlu0 %5963 }
0x2946   : > { %v5965_v52 = vmul.f32 0.03125, %v5964_v48 }
0x2948   : > { %v5966_v16 = vsub.f32 %v5959_v23, %v5965_v52 }
0x294a   : > { %v5967_v4 = vmul.f32 %v5966_v16, %v5966_v16 }
0x294c   : > { %v5968_v17 = vsel %vm1225_vm1, %v5967_v4, 0.0 }
0x294d   : > { %5969 = vadd.xlane.f32.xlu1 %v5968_v17 }
0x29d6   : > { %v5970_v21 = vpop.xlane.xlu1 %5969 }
0x29d7   : > { %v5971_v22 = vmul.f32 0.03125, %v5970_v21 }
0x29d9   : > { %v5972_v24 = vadd.f32 1e-06, %v5971_v22 }
0x29db   : > { %7271 = vrsqrt.f32 %v5972_v24 }
0x29e8   : > { %v7272_v26 = vpop.eup %7271 }
0x29e9   : > { %v5974_v28 = vmul.f32 %v7272_v26, %v5966_v16 }
0x29eb   : > { %v5981_v29 = vmul.f32 %v6447_v27, %v5974_v28 }
0x29ed   : > { %v5988_v30 = vadd.f32 %v6448_v25, %v5981_v29 }
0x29ef   : > { %7170 = vmatmul.mubr.msk.f32.vlgmr.msra.gmra.mxu0 %vm1225_vm1, %v5988_v30 }
0x2aaf   : > { %v6069_v55 = vpop.f32.mrf.mxu0 }
0x2ab0   : > { %v6070_v33 = vadd.f32 %v6449_v32, %v6069_v55 }
0x2ab1   : > { %v7171_v1 = vpop.f32.mrf.mxu0 }
0x2ab2   : > { %6074 = vst.msk [vmem:[%s1029_s2] sm:$0xff] %vm6073_vm12, %v6070_v33 }
0x2ab3 PF: > { %s77_s7 = sadd.s32 1, %s7280_s7  }
0x2ab4   : > { %p74_p4 = scmp.ge.s32.totalorder %s77_s7, 4  }
0x2ab6   :  { %76 = sbr.rel (!%p74_p4) target bundleno = 55 (0x37), region = 284 }

</bundles_post_ra>
